<compile_context>
chip_gen: v5e
topology: v5e:2x2
jax: 0.10.0
libtpu: 0.0.40
codegen_flags: <defaults>
</compile_context>

<pallas_src>
import jax
import jax.numpy as jnp
from jax.experimental import pallas as pl
from jax.experimental.pallas import tpu as pltpu

TILE_E = 128   # edge-tile size: multiple of 8 sublanes, keeps M's lane dim 128-aligned


# --------------------------- kernel 1: conv1 ---------------------------------
def nnconv1_kernel(ea_ref, s_ref, m_ref, x_ref,
                   wea_ref, bea_ref, web_ref, beb_ref,
                   wroot_ref, bconv_ref,
                   out_ref, acc_ref):
    """relu(NNConv(2->32, nn1, aggr='mean')); one edge tile per grid step."""
    t = pl.program_id(0)
    f32 = jnp.float32

    @pl.when(t == 0)
    def _init():
        acc_ref[...] = jnp.zeros_like(acc_ref)

    # edge MLP nn1: Linear(2,16) -> relu -> Linear(16,64); K=2 layer on the VPU.
    ea = ea_ref[...]                                                   # (TE, 2)
    wea = wea_ref[...]                                                 # (2, 16)
    hid = jnp.maximum(ea[:, 0:1] * wea[0:1, :] + ea[:, 1:2] * wea[1:2, :]
                      + bea_ref[...], 0.0)                             # (TE, 16)
    z = jnp.dot(hid, web_ref[...], preferred_element_type=f32) + beb_ref[...]  # (TE, 64)

    # gather source-node features for this edge tile (one-hot matmul).
    xg = jnp.dot(s_ref[...], x_ref[...], preferred_element_type=f32)   # (TE, 2)

    # per-edge (2,32) contraction, in_channels-major layout (PyG .view(E, 2, 32)).
    msg = xg[:, 0:1] * z[:, 0:32] + xg[:, 1:2] * z[:, 32:64]           # (TE, 32)

    # scatter-mean into the node accumulator.
    acc_ref[...] += jnp.dot(m_ref[...], msg, preferred_element_type=f32)  # (N, 32)

    @pl.when(t == pl.num_programs(0) - 1)
    def _finalize():
        x = x_ref[...]
        wr = wroot_ref[...]                                            # (2, 32)
        root = x[:, 0:1] * wr[0:1, :] + x[:, 1:2] * wr[1:2, :]         # K=2 on VPU
        out_ref[...] = jnp.maximum(acc_ref[...] + root + bconv_ref[...], 0.0)


# -------------------- kernel 2: conv2 + fc1 + fc2 head ------------------------
def nnconv2_head_kernel(ea_ref, s_ref, m_ref, h_ref,
                        wea_ref, bea_ref, web_ref, beb_ref,
                        r_ref, q_ref,
                        wroot_ref, bconv_ref,
                        wfc1_ref, bfc1_ref, wfc2_ref, bfc2_ref,
                        out_ref, acc_ref):
    """relu(NNConv(32->32, nn2, aggr='mean')) then relu(fc1) and fc2 -> (N, 2)."""
    t = pl.program_id(0)
    f32 = jnp.float32

    @pl.when(t == 0)
    def _init():
        acc_ref[...] = jnp.zeros_like(acc_ref)

    # edge MLP nn2: Linear(2,16) -> relu -> Linear(16,1024); K=2 layer on the VPU.
    ea = ea_ref[...]                                                   # (TE, 2)
    wea = wea_ref[...]                                                 # (2, 16)
    hid = jnp.maximum(ea[:, 0:1] * wea[0:1, :] + ea[:, 1:2] * wea[1:2, :]
                      + bea_ref[...], 0.0)                             # (TE, 16)
    z = jnp.dot(hid, web_ref[...], preferred_element_type=f32) + beb_ref[...]  # (TE, 1024)

    # gather source-node features (one-hot matmul), then lane-dense contraction:
    # msg[e, o] = sum_k h_src[e, k] * z[e, k*32 + o]  ==  ((h_src @ R) * z) @ Q
    hg = jnp.dot(s_ref[...], h_ref[...], preferred_element_type=f32)   # (TE, 32)
    hg_rep = jnp.dot(hg, r_ref[...], preferred_element_type=f32)       # (TE, 1024)
    msg = jnp.dot(hg_rep * z, q_ref[...], preferred_element_type=f32)  # (TE, 32)

    acc_ref[...] += jnp.dot(m_ref[...], msg, preferred_element_type=f32)  # (N, 32)

    @pl.when(t == pl.num_programs(0) - 1)
    def _finalize():
        h = h_ref[...]
        h2 = jnp.maximum(acc_ref[...]
                         + jnp.dot(h, wroot_ref[...], preferred_element_type=f32)
                         + bconv_ref[...], 0.0)                        # (N, 32)
        h3 = jnp.maximum(jnp.dot(h2, wfc1_ref[...], preferred_element_type=f32)
                         + bfc1_ref[...], 0.0)                         # (N, 32)
        out_ref[...] = (jnp.dot(h3, wfc2_ref[...], preferred_element_type=f32)
                        + bfc2_ref[...])                               # (N, 2)


# -------------------------------- wrapper -------------------------------------
def _full_spec(arr):
    return pl.BlockSpec(arr.shape, lambda t: (0, 0))


@jax.jit
def net_mp_forward(x, edge_attr_pad, S, M, params):
    n = x.shape[0]
    e_pad = edge_attr_pad.shape[0]
    assert e_pad % TILE_E == 0
    grid = (e_pad // TILE_E,)
    cparams = pltpu.CompilerParams(dimension_semantics=("arbitrary",))

    edge_specs = [
        pl.BlockSpec((TILE_E, 2), lambda t: (t, 0)),   # edge_attr tile
        pl.BlockSpec((TILE_E, n), lambda t: (t, 0)),   # S: gather rows for this tile
        pl.BlockSpec((n, TILE_E), lambda t: (0, t)),   # M: scatter-mean columns
    ]

    # ---- conv1: relu(NNConv(2 -> 32)) ----
    conv1_args = (edge_attr_pad, S, M, x,
                  params["w1a"], params["b1a"], params["w1b"], params["b1b"],
                  params["wr1"], params["bc1"])
    h1 = pl.pallas_call(
        nnconv1_kernel,
        out_shape=jax.ShapeDtypeStruct((n, 32), jnp.float32),
        grid=grid,
        in_specs=edge_specs + [_full_spec(a) for a in conv1_args[3:]],
        out_specs=pl.BlockSpec((n, 32), lambda t: (0, 0)),
        scratch_shapes=[pltpu.VMEM((n, 32), jnp.float32)],
        compiler_params=cparams,
    )(*conv1_args)

    # ---- conv2: relu(NNConv(32 -> 32)) fused with relu(fc1) and fc2 ----
    conv2_args = (edge_attr_pad, S, M, h1,
                  params["w2a"], params["b2a"], params["w2b"], params["b2b"],
                  params["r2"], params["q2"],
                  params["wr2"], params["bc2"],
                  params["wfc1"], params["bfc1"], params["wfc2"], params["bfc2"])
    out = pl.pallas_call(
        nnconv2_head_kernel,
        out_shape=jax.ShapeDtypeStruct((n, 2), jnp.float32),
        grid=grid,
        in_specs=edge_specs + [_full_spec(a) for a in conv2_args[3:]],
        out_specs=pl.BlockSpec((n, 2), lambda t: (0, 0)),
        scratch_shapes=[pltpu.VMEM((n, 32), jnp.float32)],
        compiler_params=cparams,
    )(*conv2_args)
    return out


# ------------------------ parameters / graph glue -----------------------------
def init_params(key):
    """Deterministic synthetic parameters; weights stored (in, out)."""
    def lin(k, din, dout, scale=0.1):
        kw, kb = jax.random.split(k)
        w = scale * jax.random.normal(kw, (din, dout), jnp.float32)
        b = scale * jax.random.normal(kb, (1, dout), jnp.float32)
        return w, b

    keys = jax.random.split(key, 8)
    p = {}
    p["w1a"], p["b1a"] = lin(keys[0], 2, 16)       # nn1: Linear(2, 16)
    p["w1b"], p["b1b"] = lin(keys[1], 16, 64)      # nn1: Linear(16, 2*32)
    p["w2a"], p["b2a"] = lin(keys[2], 2, 16)       # nn2: Linear(2, 16)
    p["w2b"], p["b2b"] = lin(keys[3], 16, 1024)    # nn2: Linear(16, 32*32)
    p["wr1"], p["bc1"] = lin(keys[4], 2, 32)       # conv1 root weight + bias
    p["wr2"], p["bc2"] = lin(keys[5], 32, 32)      # conv2 root weight + bias
    p["wfc1"], p["bfc1"] = lin(keys[6], 32, 32)    # fc1
    p["wfc2"], p["bfc2"] = lin(keys[7], 32, 2)     # fc2

    # Constant 0/1 maps turning the per-edge (32,32) weight contraction into
    # lane-dense MXU matmuls: rep = h_src @ R ; msg = (rep * Z) @ Q.
    o = jnp.arange(32)
    j = jnp.arange(32 * 32)
    p["r2"] = (j[None, :] // 32 == o[:, None]).astype(jnp.float32)   # (32, 1024)
    p["q2"] = (j[:, None] % 32 == o[None, :]).astype(jnp.float32)    # (1024, 32)
    return p


def pad_edges(edge_attr, tile):
    e = edge_attr.shape[0]
    e_pad = ((e + tile - 1) // tile) * tile
    if e_pad != e:
        edge_attr = jnp.concatenate(
            [edge_attr, jnp.zeros((e_pad - e, edge_attr.shape[1]), edge_attr.dtype)], 0)
    return edge_attr, e_pad


def build_gather_scatter(edge_index, n, e_pad):
    """S[e, src[e]] = 1 (gather); M[dst[e], e] = 1/in_deg(dst[e]) (scatter-mean)."""
    src, dst = edge_index
    e = src.shape[0]
    eidx = jnp.arange(e)
    S = jnp.zeros((e_pad, n), jnp.float32).at[eidx, src].set(1.0)
    deg = jnp.zeros((n,), jnp.float32).at[dst].add(1.0)
    inv_deg = jnp.where(deg > 0, 1.0 / deg, 0.0)
    M = jnp.zeros((n, e_pad), jnp.float32).at[dst, eidx].set(inv_deg[dst])
    return S, M


# ------------------------------ JAX reference ---------------------------------
def reference_forward(x, edge_index, edge_attr, p):
    src, dst = edge_index
    n = x.shape[0]
    relu = lambda v: jnp.maximum(v, 0.0)

    def nnconv(h, wa, ba, wb, bb, wroot, bias, din, dout):
        z = relu(edge_attr @ wa + ba) @ wb + bb               # (E, din*dout)
        w = z.reshape(-1, din, dout)                          # PyG .view(E, in, out)
        msg = jnp.einsum("ek,eko->eo", h[src], w)
        agg = jax.ops.segment_sum(msg, dst, num_segments=n)
        cnt = jax.ops.segment_sum(jnp.ones((src.shape[0],), msg.dtype), dst,
                                  num_segments=n)
        agg = jnp.where(cnt[:, None] > 0, agg / jnp.maximum(cnt[:, None], 1.0), 0.0)
        return agg + h @ wroot + bias

    h = relu(nnconv(x, p["w1a"], p["b1a"], p["w1b"], p["b1b"], p["wr1"], p["bc1"], 2, 32))
    h = relu(nnconv(h, p["w2a"], p["b2a"], p["w2b"], p["b2b"], p["wr2"], p["bc2"], 32, 32))
    h = relu(h @ p["wfc1"] + p["bfc1"])
    return h @ p["wfc2"] + p["bfc2"]


# ---------------------------------- main ---------------------------------------
if __name__ == "__main__":
    key = jax.random.PRNGKey(0)
    k_x, k_e, k_p = jax.random.split(key, 3)

    N = 64                                                     # graph nodes
    x = jax.random.normal(k_x, (N, 2), jnp.float32)            # node features

    # deterministic synthetic graph: bidirectional ring + bidirectional chords -> 256 edges
    base = jnp.arange(N, dtype=jnp.int32)
    src = jnp.concatenate([base, base, base, base])
    dst = jnp.concatenate([(base + 1) % N, (base - 1) % N, (base + 7) % N, (base - 7) % N])
    edge_index = jnp.stack([src, dst], axis=0)                 # (2, E), messages src -> dst
    E = int(src.shape[0])
    edge_attr = jax.random.normal(k_e, (E, 2), jnp.float32)    # (E, 2) edge features

    params = init_params(k_p)
    edge_attr_pad, e_pad = pad_edges(edge_attr, TILE_E)        # padded edges contribute 0
    S, M = build_gather_scatter(edge_index, N, e_pad)

    out = net_mp_forward(x, edge_attr_pad, S, M, params)
    out = jax.block_until_ready(out)

    ref = reference_forward(x, edge_index, edge_attr, params)
    assert out.shape == (N, 2), out.shape
    err = float(jnp.max(jnp.abs(out - ref)))
    assert jnp.allclose(out, ref, atol=2e-3, rtol=2e-3), f"mismatch vs reference, max|err|={err}"

    print("KERNEL_OK")
</pallas_src>

<mosaic_0001>
module attributes {stable_mosaic.version = 11 : i64} {
  func.func @nnconv2_head_kernel(%arg0: i32, %arg1: memref<128x2xf32, #tpu.memory_space<vmem>>, %arg2: memref<128x64xf32, #tpu.memory_space<vmem>>, %arg3: memref<64x128xf32, #tpu.memory_space<vmem>>, %arg4: memref<64x32xf32, #tpu.memory_space<vmem>>, %arg5: memref<2x16xf32, #tpu.memory_space<vmem>>, %arg6: memref<1x16xf32, #tpu.memory_space<vmem>>, %arg7: memref<16x1024xf32, #tpu.memory_space<vmem>>, %arg8: memref<1x1024xf32, #tpu.memory_space<vmem>>, %arg9: memref<32x1024xf32, #tpu.memory_space<vmem>>, %arg10: memref<1024x32xf32, #tpu.memory_space<vmem>>, %arg11: memref<32x32xf32, #tpu.memory_space<vmem>>, %arg12: memref<1x32xf32, #tpu.memory_space<vmem>>, %arg13: memref<32x32xf32, #tpu.memory_space<vmem>>, %arg14: memref<1x32xf32, #tpu.memory_space<vmem>>, %arg15: memref<32x2xf32, #tpu.memory_space<vmem>>, %arg16: memref<1x2xf32, #tpu.memory_space<vmem>>, %arg17: memref<64x2xf32, #tpu.memory_space<vmem>>, %arg18: memref<64x32xf32, #tpu.memory_space<vmem>>) attributes {dimension_semantics = [#tpu.dimension_semantics<arbitrary>], iteration_bounds = array<i64: 2>, scalar_prefetch = 0 : i64, scratch_operands = 1 : i64, tpu.core_type = #tpu.core_type<tc>, window_params = [{transform_indices = @transform_0, window_bounds = array<i64: 128, 2>}, {transform_indices = @transform_1, window_bounds = array<i64: 128, 64>}, {transform_indices = @transform_2, window_bounds = array<i64: 64, 128>}, {pipeline_mode = #tpu.pipeline_mode<synchronous>, transform_indices = @transform_3, window_bounds = array<i64: 64, 32>}, {pipeline_mode = #tpu.pipeline_mode<synchronous>, transform_indices = @transform_4, window_bounds = array<i64: 2, 16>}, {pipeline_mode = #tpu.pipeline_mode<synchronous>, transform_indices = @transform_5, window_bounds = array<i64: 1, 16>}, {pipeline_mode = #tpu.pipeline_mode<synchronous>, transform_indices = @transform_6, window_bounds = array<i64: 16, 1024>}, {pipeline_mode = #tpu.pipeline_mode<synchronous>, transform_indices = @transform_7, window_bounds = array<i64: 1, 1024>}, {pipeline_mode = #tpu.pipeline_mode<synchronous>, transform_indices = @transform_8, window_bounds = array<i64: 32, 1024>}, {pipeline_mode = #tpu.pipeline_mode<synchronous>, transform_indices = @transform_9, window_bounds = array<i64: 1024, 32>}, {pipeline_mode = #tpu.pipeline_mode<synchronous>, transform_indices = @transform_10, window_bounds = array<i64: 32, 32>}, {pipeline_mode = #tpu.pipeline_mode<synchronous>, transform_indices = @transform_11, window_bounds = array<i64: 1, 32>}, {pipeline_mode = #tpu.pipeline_mode<synchronous>, transform_indices = @transform_12, window_bounds = array<i64: 32, 32>}, {pipeline_mode = #tpu.pipeline_mode<synchronous>, transform_indices = @transform_13, window_bounds = array<i64: 1, 32>}, {pipeline_mode = #tpu.pipeline_mode<synchronous>, transform_indices = @transform_14, window_bounds = array<i64: 32, 2>}, {pipeline_mode = #tpu.pipeline_mode<synchronous>, transform_indices = @transform_15, window_bounds = array<i64: 1, 2>}, {pipeline_mode = #tpu.pipeline_mode<synchronous>, transform_indices = @transform_16, window_bounds = array<i64: 64, 2>}]} {
    %c0_i32 = arith.constant 0 : i32
    %0 = arith.cmpi eq, %arg0, %c0_i32 : i32
    %1 = arith.extui %0 : i1 to i32
    %c0_i32_0 = arith.constant 0 : i32
    %2 = arith.cmpi ne, %1, %c0_i32_0 : i32
    scf.if %2 {
      %cst_30 = arith.constant 0.000000e+00 : f32
      %42 = vector.broadcast %cst_30 : f32 to vector<64x32xf32>
      %c0_31 = arith.constant 0 : index
      %c0_32 = arith.constant 0 : index
      %43 = vector.load %arg18[%c0_31, %c0_32] : memref<64x32xf32, #tpu.memory_space<vmem>>, vector<64x32xf32>
      tpu.vector_store %arg18[%c0_31, %c0_32], %42 {strides = array<i32>} : memref<64x32xf32, #tpu.memory_space<vmem>>, vector<64x32xf32>,
    } else {
    }
    %c0 = arith.constant 0 : index
    %c0_1 = arith.constant 0 : index
    %3 = vector.load %arg1[%c0, %c0_1] : memref<128x2xf32, #tpu.memory_space<vmem>>, vector<128x2xf32>
    %c0_2 = arith.constant 0 : index
    %c0_3 = arith.constant 0 : index
    %4 = vector.load %arg5[%c0_2, %c0_3] : memref<2x16xf32, #tpu.memory_space<vmem>>, vector<2x16xf32>
    %5 = vector.extract_strided_slice %3 {offsets = [0, 0], sizes = [128, 1], strides = [1, 1]} : vector<128x2xf32> to vector<128x1xf32>
    %6 = vector.extract_strided_slice %4 {offsets = [0, 0], sizes = [1, 16], strides = [1, 1]} : vector<2x16xf32> to vector<1x16xf32>
    %7 = vector.broadcast %5 : vector<128x1xf32> to vector<128x16xf32>
    %8 = vector.broadcast %6 : vector<1x16xf32> to vector<128x16xf32>
    %9 = arith.mulf %7, %8 : vector<128x16xf32>
    %10 = vector.extract_strided_slice %3 {offsets = [0, 1], sizes = [128, 1], strides = [1, 1]} : vector<128x2xf32> to vector<128x1xf32>
    %11 = vector.extract_strided_slice %4 {offsets = [1, 0], sizes = [1, 16], strides = [1, 1]} : vector<2x16xf32> to vector<1x16xf32>
    %12 = vector.broadcast %10 : vector<128x1xf32> to vector<128x16xf32>
    %13 = vector.broadcast %11 : vector<1x16xf32> to vector<128x16xf32>
    %14 = arith.mulf %12, %13 : vector<128x16xf32>
    %15 = arith.addf %9, %14 : vector<128x16xf32>
    %c0_4 = arith.constant 0 : index
    %c0_5 = arith.constant 0 : index
    %16 = vector.load %arg6[%c0_4, %c0_5] : memref<1x16xf32, #tpu.memory_space<vmem>>, vector<1x16xf32>
    %17 = vector.broadcast %16 : vector<1x16xf32> to vector<128x16xf32>
    %18 = arith.addf %15, %17 : vector<128x16xf32>
    %cst = arith.constant 0.000000e+00 : f32
    %19 = vector.broadcast %cst : f32 to vector<128x16xf32>
    %20 = arith.maximumf %18, %19 : vector<128x16xf32>
    %c0_6 = arith.constant 0 : index
    %c0_7 = arith.constant 0 : index
    %21 = vector.load %arg7[%c0_6, %c0_7] : memref<16x1024xf32, #tpu.memory_space<vmem>>, vector<16x1024xf32>
    %cst_8 = arith.constant dense<0.000000e+00> : vector<128x1024xf32>
    %22 = tpu.matmul %20, %21, %cst_8 {dimension_numbers = #tpu.dot_dimension_numbers<[1], [0], [0], [1], [0, 0, 1, 1], [], []>} : vector<128x16xf32>, vector<16x1024xf32>, vector<128x1024xf32> -> vector<128x1024xf32>
    %c0_9 = arith.constant 0 : index
    %c0_10 = arith.constant 0 : index
    %23 = vector.load %arg8[%c0_9, %c0_10] : memref<1x1024xf32, #tpu.memory_space<vmem>>, vector<1x1024xf32>
    %24 = vector.broadcast %23 : vector<1x1024xf32> to vector<128x1024xf32>
    %25 = arith.addf %22, %24 : vector<128x1024xf32>
    %c0_11 = arith.constant 0 : index
    %c0_12 = arith.constant 0 : index
    %26 = vector.load %arg2[%c0_11, %c0_12] : memref<128x64xf32, #tpu.memory_space<vmem>>, vector<128x64xf32>
    %c0_13 = arith.constant 0 : index
    %c0_14 = arith.constant 0 : index
    %27 = vector.load %arg4[%c0_13, %c0_14] : memref<64x32xf32, #tpu.memory_space<vmem>>, vector<64x32xf32>
    %cst_15 = arith.constant dense<0.000000e+00> : vector<128x32xf32>
    %28 = tpu.matmul %26, %27, %cst_15 {dimension_numbers = #tpu.dot_dimension_numbers<[1], [0], [0], [1], [0, 0, 1, 1], [], []>} : vector<128x64xf32>, vector<64x32xf32>, vector<128x32xf32> -> vector<128x32xf32>
    %c0_16 = arith.constant 0 : index
    %c0_17 = arith.constant 0 : index
    %29 = vector.load %arg9[%c0_16, %c0_17] : memref<32x1024xf32, #tpu.memory_space<vmem>>, vector<32x1024xf32>
    %cst_18 = arith.constant dense<0.000000e+00> : vector<128x1024xf32>
    %30 = tpu.matmul %28, %29, %cst_18 {dimension_numbers = #tpu.dot_dimension_numbers<[1], [0], [0], [1], [0, 0, 1, 1], [], []>} : vector<128x32xf32>, vector<32x1024xf32>, vector<128x1024xf32> -> vector<128x1024xf32>
    %31 = arith.mulf %30, %25 : vector<128x1024xf32>
    %c0_19 = arith.constant 0 : index
    %c0_20 = arith.constant 0 : index
    %32 = vector.load %arg10[%c0_19, %c0_20] : memref<1024x32xf32, #tpu.memory_space<vmem>>, vector<1024x32xf32>
    %cst_21 = arith.constant dense<0.000000e+00> : vector<128x32xf32>
    %33 = tpu.matmul %31, %32, %cst_21 {dimension_numbers = #tpu.dot_dimension_numbers<[1], [0], [0], [1], [0, 0, 1, 1], [], []>} : vector<128x1024xf32>, vector<1024x32xf32>, vector<128x32xf32> -> vector<128x32xf32>
    %c0_22 = arith.constant 0 : index
    %c0_23 = arith.constant 0 : index
    %34 = vector.load %arg18[%c0_22, %c0_23] : memref<64x32xf32, #tpu.memory_space<vmem>>, vector<64x32xf32>
    %c0_24 = arith.constant 0 : index
    %c0_25 = arith.constant 0 : index
    %35 = vector.load %arg3[%c0_24, %c0_25] : memref<64x128xf32, #tpu.memory_space<vmem>>, vector<64x128xf32>
    %cst_26 = arith.constant dense<0.000000e+00> : vector<64x32xf32>
    %36 = tpu.matmul %35, %33, %cst_26 {dimension_numbers = #tpu.dot_dimension_numbers<[1], [0], [0], [1], [0, 0, 1, 1], [], []>} : vector<64x128xf32>, vector<128x32xf32>, vector<64x32xf32> -> vector<64x32xf32>
    %37 = arith.addf %34, %36 : vector<64x32xf32>
    %c0_27 = arith.constant 0 : index
    %c0_28 = arith.constant 0 : index
    %38 = vector.load %arg18[%c0_27, %c0_28] : memref<64x32xf32, #tpu.memory_space<vmem>>, vector<64x32xf32>
    tpu.vector_store %arg18[%c0_27, %c0_28], %37 {strides = array<i32>} : memref<64x32xf32, #tpu.memory_space<vmem>>, vector<64x32xf32>,
    %c1_i32 = arith.constant 1 : i32
    %39 = arith.cmpi eq, %arg0, %c1_i32 : i32
    %40 = arith.extui %39 : i1 to i32
    %c0_i32_29 = arith.constant 0 : i32
    %41 = arith.cmpi ne, %40, %c0_i32_29 : i32
    scf.if %41 {
      %c0_30 = arith.constant 0 : index
      %c0_31 = arith.constant 0 : index
      %42 = vector.load %arg4[%c0_30, %c0_31] : memref<64x32xf32, #tpu.memory_space<vmem>>, vector<64x32xf32>
      %c0_32 = arith.constant 0 : index
      %c0_33 = arith.constant 0 : index
      %43 = vector.load %arg18[%c0_32, %c0_33] : memref<64x32xf32, #tpu.memory_space<vmem>>, vector<64x32xf32>
      %c0_34 = arith.constant 0 : index
      %c0_35 = arith.constant 0 : index
      %44 = vector.load %arg11[%c0_34, %c0_35] : memref<32x32xf32, #tpu.memory_space<vmem>>, vector<32x32xf32>
      %cst_36 = arith.constant dense<0.000000e+00> : vector<64x32xf32>
      %45 = tpu.matmul %42, %44, %cst_36 {dimension_numbers = #tpu.dot_dimension_numbers<[1], [0], [0], [1], [0, 0, 1, 1], [], []>} : vector<64x32xf32>, vector<32x32xf32>, vector<64x32xf32> -> vector<64x32xf32>
      %46 = arith.addf %43, %45 : vector<64x32xf32>
      %c0_37 = arith.constant 0 : index
      %c0_38 = arith.constant 0 : index
      %47 = vector.load %arg12[%c0_37, %c0_38] : memref<1x32xf32, #tpu.memory_space<vmem>>, vector<1x32xf32>
      %48 = vector.broadcast %47 : vector<1x32xf32> to vector<64x32xf32>
      %49 = arith.addf %46, %48 : vector<64x32xf32>
      %cst_39 = arith.constant 0.000000e+00 : f32
      %50 = vector.broadcast %cst_39 : f32 to vector<64x32xf32>
      %51 = arith.maximumf %49, %50 : vector<64x32xf32>
      %c0_40 = arith.constant 0 : index
      %c0_41 = arith.constant 0 : index
      %52 = vector.load %arg13[%c0_40, %c0_41] : memref<32x32xf32, #tpu.memory_space<vmem>>, vector<32x32xf32>
      %cst_42 = arith.constant dense<0.000000e+00> : vector<64x32xf32>
      %53 = tpu.matmul %51, %52, %cst_42 {dimension_numbers = #tpu.dot_dimension_numbers<[1], [0], [0], [1], [0, 0, 1, 1], [], []>} : vector<64x32xf32>, vector<32x32xf32>, vector<64x32xf32> -> vector<64x32xf32>
      %c0_43 = arith.constant 0 : index
      %c0_44 = arith.constant 0 : index
      %54 = vector.load %arg14[%c0_43, %c0_44] : memref<1x32xf32, #tpu.memory_space<vmem>>, vector<1x32xf32>
      %55 = vector.broadcast %54 : vector<1x32xf32> to vector<64x32xf32>
      %56 = arith.addf %53, %55 : vector<64x32xf32>
      %cst_45 = arith.constant 0.000000e+00 : f32
      %57 = vector.broadcast %cst_45 : f32 to vector<64x32xf32>
      %58 = arith.maximumf %56, %57 : vector<64x32xf32>
      %c0_46 = arith.constant 0 : index
      %c0_47 = arith.constant 0 : index
      %59 = vector.load %arg15[%c0_46, %c0_47] : memref<32x2xf32, #tpu.memory_space<vmem>>, vector<32x2xf32>
      %cst_48 = arith.constant dense<0.000000e+00> : vector<64x2xf32>
      %60 = tpu.matmul %58, %59, %cst_48 {dimension_numbers = #tpu.dot_dimension_numbers<[1], [0], [0], [1], [0, 0, 1, 1], [], []>} : vector<64x32xf32>, vector<32x2xf32>, vector<64x2xf32> -> vector<64x2xf32>
      %c0_49 = arith.constant 0 : index
      %c0_50 = arith.constant 0 : index
      %61 = vector.load %arg16[%c0_49, %c0_50] : memref<1x2xf32, #tpu.memory_space<vmem>>, vector<1x2xf32>
      %62 = vector.broadcast %61 : vector<1x2xf32> to vector<64x2xf32>
      %63 = arith.addf %60, %62 : vector<64x2xf32>
      %c0_51 = arith.constant 0 : index
      %c0_52 = arith.constant 0 : index
      %64 = vector.load %arg17[%c0_51, %c0_52] : memref<64x2xf32, #tpu.memory_space<vmem>>, vector<64x2xf32>
      tpu.vector_store %arg17[%c0_51, %c0_52], %63 {strides = array<i32>} : memref<64x2xf32, #tpu.memory_space<vmem>>, vector<64x2xf32>,
    } else {
    }
    return
  }
  func.func @transform_0(%arg0: i32) -> (i32, i32) {
    %c0_i32 = arith.constant 0 : i32
    %c0_i32_0 = arith.constant 0 : i32
    return %arg0, %c0_i32 : i32, i32
  }
  func.func @transform_1(%arg0: i32) -> (i32, i32) {
    %c0_i32 = arith.constant 0 : i32
    %c0_i32_0 = arith.constant 0 : i32
    return %arg0, %c0_i32 : i32, i32
  }
  func.func @transform_2(%arg0: i32) -> (i32, i32) {
    %c0_i32 = arith.constant 0 : i32
    %c0_i32_0 = arith.constant 0 : i32
    return %c0_i32, %arg0 : i32, i32
  }
  func.func @transform_3(%arg0: i32) -> (i32, i32) {
    %c0_i32 = arith.constant 0 : i32
    %c0_i32_0 = arith.constant 0 : i32
    %c0_i32_1 = arith.constant 0 : i32
    return %c0_i32, %c0_i32_0 : i32, i32
  }
  func.func @transform_4(%arg0: i32) -> (i32, i32) {
    %c0_i32 = arith.constant 0 : i32
    %c0_i32_0 = arith.constant 0 : i32
    %c0_i32_1 = arith.constant 0 : i32
    return %c0_i32, %c0_i32_0 : i32, i32
  }
  func.func @transform_5(%arg0: i32) -> (i32, i32) {
    %c0_i32 = arith.constant 0 : i32
    %c0_i32_0 = arith.constant 0 : i32
    %c0_i32_1 = arith.constant 0 : i32
    return %c0_i32, %c0_i32_0 : i32, i32
  }
  func.func @transform_6(%arg0: i32) -> (i32, i32) {
    %c0_i32 = arith.constant 0 : i32
    %c0_i32_0 = arith.constant 0 : i32
    %c0_i32_1 = arith.constant 0 : i32
    return %c0_i32, %c0_i32_0 : i32, i32
  }
  func.func @transform_7(%arg0: i32) -> (i32, i32) {
    %c0_i32 = arith.constant 0 : i32
    %c0_i32_0 = arith.constant 0 : i32
    %c0_i32_1 = arith.constant 0 : i32
    return %c0_i32, %c0_i32_0 : i32, i32
  }
  func.func @transform_8(%arg0: i32) -> (i32, i32) {
    %c0_i32 = arith.constant 0 : i32
    %c0_i32_0 = arith.constant 0 : i32
    %c0_i32_1 = arith.constant 0 : i32
    return %c0_i32, %c0_i32_0 : i32, i32
  }
  func.func @transform_9(%arg0: i32) -> (i32, i32) {
    %c0_i32 = arith.constant 0 : i32
    %c0_i32_0 = arith.constant 0 : i32
    %c0_i32_1 = arith.constant 0 : i32
    return %c0_i32, %c0_i32_0 : i32, i32
  }
  func.func @transform_10(%arg0: i32) -> (i32, i32) {
    %c0_i32 = arith.constant 0 : i32
    %c0_i32_0 = arith.constant 0 : i32
    %c0_i32_1 = arith.constant 0 : i32
    return %c0_i32, %c0_i32_0 : i32, i32
  }
  func.func @transform_11(%arg0: i32) -> (i32, i32) {
    %c0_i32 = arith.constant 0 : i32
    %c0_i32_0 = arith.constant 0 : i32
    %c0_i32_1 = arith.constant 0 : i32
    return %c0_i32, %c0_i32_0 : i32, i32
  }
  func.func @transform_12(%arg0: i32) -> (i32, i32) {
    %c0_i32 = arith.constant 0 : i32
    %c0_i32_0 = arith.constant 0 : i32
    %c0_i32_1 = arith.constant 0 : i32
    return %c0_i32, %c0_i32_0 : i32, i32
  }
  func.func @transform_13(%arg0: i32) -> (i32, i32) {
    %c0_i32 = arith.constant 0 : i32
    %c0_i32_0 = arith.constant 0 : i32
    %c0_i32_1 = arith.constant 0 : i32
    return %c0_i32, %c0_i32_0 : i32, i32
  }
  func.func @transform_14(%arg0: i32) -> (i32, i32) {
    %c0_i32 = arith.constant 0 : i32
    %c0_i32_0 = arith.constant 0 : i32
    %c0_i32_1 = arith.constant 0 : i32
    return %c0_i32, %c0_i32_0 : i32, i32
  }
  func.func @transform_15(%arg0: i32) -> (i32, i32) {
    %c0_i32 = arith.constant 0 : i32
    %c0_i32_0 = arith.constant 0 : i32
    %c0_i32_1 = arith.constant 0 : i32
    return %c0_i32, %c0_i32_0 : i32, i32
  }
  func.func @transform_16(%arg0: i32) -> (i32, i32) {
    %c0_i32 = arith.constant 0 : i32
    %c0_i32_0 = arith.constant 0 : i32
    %c0_i32_1 = arith.constant 0 : i32
    return %c0_i32, %c0_i32_0 : i32, i32
  }
}

module attributes {stable_mosaic.version = 11 : i64} {
  func.func @nnconv1_kernel(%arg0: i32, %arg1: memref<128x2xf32, #tpu.memory_space<vmem>>, %arg2: memref<128x64xf32, #tpu.memory_space<vmem>>, %arg3: memref<64x128xf32, #tpu.memory_space<vmem>>, %arg4: memref<64x2xf32, #tpu.memory_space<vmem>>, %arg5: memref<2x16xf32, #tpu.memory_space<vmem>>, %arg6: memref<1x16xf32, #tpu.memory_space<vmem>>, %arg7: memref<16x64xf32, #tpu.memory_space<vmem>>, %arg8: memref<1x64xf32, #tpu.memory_space<vmem>>, %arg9: memref<2x32xf32, #tpu.memory_space<vmem>>, %arg10: memref<1x32xf32, #tpu.memory_space<vmem>>, %arg11: memref<64x32xf32, #tpu.memory_space<vmem>>, %arg12: memref<64x32xf32, #tpu.memory_space<vmem>>) attributes {dimension_semantics = [#tpu.dimension_semantics<arbitrary>], iteration_bounds = array<i64: 2>, scalar_prefetch = 0 : i64, scratch_operands = 1 : i64, tpu.core_type = #tpu.core_type<tc>, window_params = [{transform_indices = @transform_0, window_bounds = array<i64: 128, 2>}, {transform_indices = @transform_1, window_bounds = array<i64: 128, 64>}, {transform_indices = @transform_2, window_bounds = array<i64: 64, 128>}, {pipeline_mode = #tpu.pipeline_mode<synchronous>, transform_indices = @transform_3, window_bounds = array<i64: 64, 2>}, {pipeline_mode = #tpu.pipeline_mode<synchronous>, transform_indices = @transform_4, window_bounds = array<i64: 2, 16>}, {pipeline_mode = #tpu.pipeline_mode<synchronous>, transform_indices = @transform_5, window_bounds = array<i64: 1, 16>}, {pipeline_mode = #tpu.pipeline_mode<synchronous>, transform_indices = @transform_6, window_bounds = array<i64: 16, 64>}, {pipeline_mode = #tpu.pipeline_mode<synchronous>, transform_indices = @transform_7, window_bounds = array<i64: 1, 64>}, {pipeline_mode = #tpu.pipeline_mode<synchronous>, transform_indices = @transform_8, window_bounds = array<i64: 2, 32>}, {pipeline_mode = #tpu.pipeline_mode<synchronous>, transform_indices = @transform_9, window_bounds = array<i64: 1, 32>}, {pipeline_mode = #tpu.pipeline_mode<synchronous>, transform_indices = @transform_10, window_bounds = array<i64: 64, 32>}]} {
    %c0_i32 = arith.constant 0 : i32
    %0 = arith.cmpi eq, %arg0, %c0_i32 : i32
    %1 = arith.extui %0 : i1 to i32
    %c0_i32_0 = arith.constant 0 : i32
    %2 = arith.cmpi ne, %1, %c0_i32_0 : i32
    scf.if %2 {
      %cst_24 = arith.constant 0.000000e+00 : f32
      %46 = vector.broadcast %cst_24 : f32 to vector<64x32xf32>
      %c0_25 = arith.constant 0 : index
      %c0_26 = arith.constant 0 : index
      %47 = vector.load %arg12[%c0_25, %c0_26] : memref<64x32xf32, #tpu.memory_space<vmem>>, vector<64x32xf32>
      tpu.vector_store %arg12[%c0_25, %c0_26], %46 {strides = array<i32>} : memref<64x32xf32, #tpu.memory_space<vmem>>, vector<64x32xf32>,
    } else {
    }
    %c0 = arith.constant 0 : index
    %c0_1 = arith.constant 0 : index
    %3 = vector.load %arg1[%c0, %c0_1] : memref<128x2xf32, #tpu.memory_space<vmem>>, vector<128x2xf32>
    %c0_2 = arith.constant 0 : index
    %c0_3 = arith.constant 0 : index
    %4 = vector.load %arg5[%c0_2, %c0_3] : memref<2x16xf32, #tpu.memory_space<vmem>>, vector<2x16xf32>
    %5 = vector.extract_strided_slice %3 {offsets = [0, 0], sizes = [128, 1], strides = [1, 1]} : vector<128x2xf32> to vector<128x1xf32>
    %6 = vector.extract_strided_slice %4 {offsets = [0, 0], sizes = [1, 16], strides = [1, 1]} : vector<2x16xf32> to vector<1x16xf32>
    %7 = vector.broadcast %5 : vector<128x1xf32> to vector<128x16xf32>
    %8 = vector.broadcast %6 : vector<1x16xf32> to vector<128x16xf32>
    %9 = arith.mulf %7, %8 : vector<128x16xf32>
    %10 = vector.extract_strided_slice %3 {offsets = [0, 1], sizes = [128, 1], strides = [1, 1]} : vector<128x2xf32> to vector<128x1xf32>
    %11 = vector.extract_strided_slice %4 {offsets = [1, 0], sizes = [1, 16], strides = [1, 1]} : vector<2x16xf32> to vector<1x16xf32>
    %12 = vector.broadcast %10 : vector<128x1xf32> to vector<128x16xf32>
    %13 = vector.broadcast %11 : vector<1x16xf32> to vector<128x16xf32>
    %14 = arith.mulf %12, %13 : vector<128x16xf32>
    %15 = arith.addf %9, %14 : vector<128x16xf32>
    %c0_4 = arith.constant 0 : index
    %c0_5 = arith.constant 0 : index
    %16 = vector.load %arg6[%c0_4, %c0_5] : memref<1x16xf32, #tpu.memory_space<vmem>>, vector<1x16xf32>
    %17 = vector.broadcast %16 : vector<1x16xf32> to vector<128x16xf32>
    %18 = arith.addf %15, %17 : vector<128x16xf32>
    %cst = arith.constant 0.000000e+00 : f32
    %19 = vector.broadcast %cst : f32 to vector<128x16xf32>
    %20 = arith.maximumf %18, %19 : vector<128x16xf32>
    %c0_6 = arith.constant 0 : index
    %c0_7 = arith.constant 0 : index
    %21 = vector.load %arg7[%c0_6, %c0_7] : memref<16x64xf32, #tpu.memory_space<vmem>>, vector<16x64xf32>
    %cst_8 = arith.constant dense<0.000000e+00> : vector<128x64xf32>
    %22 = tpu.matmul %20, %21, %cst_8 {dimension_numbers = #tpu.dot_dimension_numbers<[1], [0], [0], [1], [0, 0, 1, 1], [], []>} : vector<128x16xf32>, vector<16x64xf32>, vector<128x64xf32> -> vector<128x64xf32>
    %c0_9 = arith.constant 0 : index
    %c0_10 = arith.constant 0 : index
    %23 = vector.load %arg8[%c0_9, %c0_10] : memref<1x64xf32, #tpu.memory_space<vmem>>, vector<1x64xf32>
    %24 = vector.broadcast %23 : vector<1x64xf32> to vector<128x64xf32>
    %25 = arith.addf %22, %24 : vector<128x64xf32>
    %c0_11 = arith.constant 0 : index
    %c0_12 = arith.constant 0 : index
    %26 = vector.load %arg2[%c0_11, %c0_12] : memref<128x64xf32, #tpu.memory_space<vmem>>, vector<128x64xf32>
    %c0_13 = arith.constant 0 : index
    %c0_14 = arith.constant 0 : index
    %27 = vector.load %arg4[%c0_13, %c0_14] : memref<64x2xf32, #tpu.memory_space<vmem>>, vector<64x2xf32>
    %cst_15 = arith.constant dense<0.000000e+00> : vector<128x2xf32>
    %28 = tpu.matmul %26, %27, %cst_15 {dimension_numbers = #tpu.dot_dimension_numbers<[1], [0], [0], [1], [0, 0, 1, 1], [], []>} : vector<128x64xf32>, vector<64x2xf32>, vector<128x2xf32> -> vector<128x2xf32>
    %29 = vector.extract_strided_slice %28 {offsets = [0, 0], sizes = [128, 1], strides = [1, 1]} : vector<128x2xf32> to vector<128x1xf32>
    %30 = vector.extract_strided_slice %25 {offsets = [0, 0], sizes = [128, 32], strides = [1, 1]} : vector<128x64xf32> to vector<128x32xf32>
    %31 = vector.broadcast %29 : vector<128x1xf32> to vector<128x32xf32>
    %32 = arith.mulf %31, %30 : vector<128x32xf32>
    %33 = vector.extract_strided_slice %28 {offsets = [0, 1], sizes = [128, 1], strides = [1, 1]} : vector<128x2xf32> to vector<128x1xf32>
    %34 = vector.extract_strided_slice %25 {offsets = [0, 32], sizes = [128, 32], strides = [1, 1]} : vector<128x64xf32> to vector<128x32xf32>
    %35 = vector.broadcast %33 : vector<128x1xf32> to vector<128x32xf32>
    %36 = arith.mulf %35, %34 : vector<128x32xf32>
    %37 = arith.addf %32, %36 : vector<128x32xf32>
    %c0_16 = arith.constant 0 : index
    %c0_17 = arith.constant 0 : index
    %38 = vector.load %arg12[%c0_16, %c0_17] : memref<64x32xf32, #tpu.memory_space<vmem>>, vector<64x32xf32>
    %c0_18 = arith.constant 0 : index
    %c0_19 = arith.constant 0 : index
    %39 = vector.load %arg3[%c0_18, %c0_19] : memref<64x128xf32, #tpu.memory_space<vmem>>, vector<64x128xf32>
    %cst_20 = arith.constant dense<0.000000e+00> : vector<64x32xf32>
    %40 = tpu.matmul %39, %37, %cst_20 {dimension_numbers = #tpu.dot_dimension_numbers<[1], [0], [0], [1], [0, 0, 1, 1], [], []>} : vector<64x128xf32>, vector<128x32xf32>, vector<64x32xf32> -> vector<64x32xf32>
    %41 = arith.addf %38, %40 : vector<64x32xf32>
    %c0_21 = arith.constant 0 : index
    %c0_22 = arith.constant 0 : index
    %42 = vector.load %arg12[%c0_21, %c0_22] : memref<64x32xf32, #tpu.memory_space<vmem>>, vector<64x32xf32>
    tpu.vector_store %arg12[%c0_21, %c0_22], %41 {strides = array<i32>} : memref<64x32xf32, #tpu.memory_space<vmem>>, vector<64x32xf32>,
    %c1_i32 = arith.constant 1 : i32
    %43 = arith.cmpi eq, %arg0, %c1_i32 : i32
    %44 = arith.extui %43 : i1 to i32
    %c0_i32_23 = arith.constant 0 : i32
    %45 = arith.cmpi ne, %44, %c0_i32_23 : i32
    scf.if %45 {
      %c0_24 = arith.constant 0 : index
      %c0_25 = arith.constant 0 : index
      %46 = vector.load %arg4[%c0_24, %c0_25] : memref<64x2xf32, #tpu.memory_space<vmem>>, vector<64x2xf32>
      %c0_26 = arith.constant 0 : index
      %c0_27 = arith.constant 0 : index
      %47 = vector.load %arg9[%c0_26, %c0_27] : memref<2x32xf32, #tpu.memory_space<vmem>>, vector<2x32xf32>
      %48 = vector.extract_strided_slice %46 {offsets = [0, 0], sizes = [64, 1], strides = [1, 1]} : vector<64x2xf32> to vector<64x1xf32>
      %49 = vector.extract_strided_slice %47 {offsets = [0, 0], sizes = [1, 32], strides = [1, 1]} : vector<2x32xf32> to vector<1x32xf32>
      %50 = vector.broadcast %48 : vector<64x1xf32> to vector<64x32xf32>
      %51 = vector.broadcast %49 : vector<1x32xf32> to vector<64x32xf32>
      %52 = arith.mulf %50, %51 : vector<64x32xf32>
      %53 = vector.extract_strided_slice %46 {offsets = [0, 1], sizes = [64, 1], strides = [1, 1]} : vector<64x2xf32> to vector<64x1xf32>
      %54 = vector.extract_strided_slice %47 {offsets = [1, 0], sizes = [1, 32], strides = [1, 1]} : vector<2x32xf32> to vector<1x32xf32>
      %55 = vector.broadcast %53 : vector<64x1xf32> to vector<64x32xf32>
      %56 = vector.broadcast %54 : vector<1x32xf32> to vector<64x32xf32>
      %57 = arith.mulf %55, %56 : vector<64x32xf32>
      %58 = arith.addf %52, %57 : vector<64x32xf32>
      %c0_28 = arith.constant 0 : index
      %c0_29 = arith.constant 0 : index
      %59 = vector.load %arg12[%c0_28, %c0_29] : memref<64x32xf32, #tpu.memory_space<vmem>>, vector<64x32xf32>
      %60 = arith.addf %59, %58 : vector<64x32xf32>
      %c0_30 = arith.constant 0 : index
      %c0_31 = arith.constant 0 : index
      %61 = vector.load %arg10[%c0_30, %c0_31] : memref<1x32xf32, #tpu.memory_space<vmem>>, vector<1x32xf32>
      %62 = vector.broadcast %61 : vector<1x32xf32> to vector<64x32xf32>
      %63 = arith.addf %60, %62 : vector<64x32xf32>
      %cst_32 = arith.constant 0.000000e+00 : f32
      %64 = vector.broadcast %cst_32 : f32 to vector<64x32xf32>
      %65 = arith.maximumf %63, %64 : vector<64x32xf32>
      %c0_33 = arith.constant 0 : index
      %c0_34 = arith.constant 0 : index
      %66 = vector.load %arg11[%c0_33, %c0_34] : memref<64x32xf32, #tpu.memory_space<vmem>>, vector<64x32xf32>
      tpu.vector_store %arg11[%c0_33, %c0_34], %65 {strides = array<i32>} : memref<64x32xf32, #tpu.memory_space<vmem>>, vector<64x32xf32>,
    } else {
    }
    return
  }
  func.func @transform_0(%arg0: i32) -> (i32, i32) {
    %c0_i32 = arith.constant 0 : i32
    %c0_i32_0 = arith.constant 0 : i32
    return %arg0, %c0_i32 : i32, i32
  }
  func.func @transform_1(%arg0: i32) -> (i32, i32) {
    %c0_i32 = arith.constant 0 : i32
    %c0_i32_0 = arith.constant 0 : i32
    return %arg0, %c0_i32 : i32, i32
  }
  func.func @transform_2(%arg0: i32) -> (i32, i32) {
    %c0_i32 = arith.constant 0 : i32
    %c0_i32_0 = arith.constant 0 : i32
    return %c0_i32, %arg0 : i32, i32
  }
  func.func @transform_3(%arg0: i32) -> (i32, i32) {
    %c0_i32 = arith.constant 0 : i32
    %c0_i32_0 = arith.constant 0 : i32
    %c0_i32_1 = arith.constant 0 : i32
    return %c0_i32, %c0_i32_0 : i32, i32
  }
  func.func @transform_4(%arg0: i32) -> (i32, i32) {
    %c0_i32 = arith.constant 0 : i32
    %c0_i32_0 = arith.constant 0 : i32
    %c0_i32_1 = arith.constant 0 : i32
    return %c0_i32, %c0_i32_0 : i32, i32
  }
  func.func @transform_5(%arg0: i32) -> (i32, i32) {
    %c0_i32 = arith.constant 0 : i32
    %c0_i32_0 = arith.constant 0 : i32
    %c0_i32_1 = arith.constant 0 : i32
    return %c0_i32, %c0_i32_0 : i32, i32
  }
  func.func @transform_6(%arg0: i32) -> (i32, i32) {
    %c0_i32 = arith.constant 0 : i32
    %c0_i32_0 = arith.constant 0 : i32
    %c0_i32_1 = arith.constant 0 : i32
    return %c0_i32, %c0_i32_0 : i32, i32
  }
  func.func @transform_7(%arg0: i32) -> (i32, i32) {
    %c0_i32 = arith.constant 0 : i32
    %c0_i32_0 = arith.constant 0 : i32
    %c0_i32_1 = arith.constant 0 : i32
    return %c0_i32, %c0_i32_0 : i32, i32
  }
  func.func @transform_8(%arg0: i32) -> (i32, i32) {
    %c0_i32 = arith.constant 0 : i32
    %c0_i32_0 = arith.constant 0 : i32
    %c0_i32_1 = arith.constant 0 : i32
    return %c0_i32, %c0_i32_0 : i32, i32
  }
  func.func @transform_9(%arg0: i32) -> (i32, i32) {
    %c0_i32 = arith.constant 0 : i32
    %c0_i32_0 = arith.constant 0 : i32
    %c0_i32_1 = arith.constant 0 : i32
    return %c0_i32, %c0_i32_0 : i32, i32
  }
  func.func @transform_10(%arg0: i32) -> (i32, i32) {
    %c0_i32 = arith.constant 0 : i32
    %c0_i32_0 = arith.constant 0 : i32
    %c0_i32_1 = arith.constant 0 : i32
    return %c0_i32, %c0_i32_0 : i32, i32
  }
}

</mosaic_0001>

<bundles_post_ra>
// kernel: net_mp_forward.2
= control target key start
LH: loop header
LB: loop body
LE: loop exit
PB: predicated region body
PF: predicated region fallthrough
CT: control target
= control target key end

     0   :  { %s1728_s13 = smov 0   ;;  %s1730_s14 = smov 0   ;;  %s2288_s0 = inlined_call_operand.vmem [shape: f32[256,2], index: 0, kind: input, shape index: {}]   ;;  %s2289_s1 = inlined_call_operand.vmem [shape: f32[256,64], index: 1, kind: input, shape index: {}]   ;;  %s2290_s2 = inlined_call_operand.vmem [shape: f32[64,256], index: 2, kind: input, shape index: {}]   ;;  %s2291_s3 = inlined_call_operand.vmem [shape: f32[64,2], index: 3, kind: input, shape index: {}]   ;;  %s2292_s4 = inlined_call_operand.vmem [shape: f32[2,16], index: 4, kind: input, shape index: {}]   ;;  %s2293_s5 = inlined_call_operand.vmem [shape: f32[1,16], index: 5, kind: input, shape index: {}]   ;;  %s2294_s6 = inlined_call_operand.vmem [shape: f32[16,64], index: 6, kind: input, shape index: {}]   ;;  %s2295_s7 = inlined_call_operand.vmem [shape: f32[1,64], index: 7, kind: input, shape index: {}]   ;;  %s2296_s8 = inlined_call_operand.vmem [shape: f32[2,32], index: 8, kind: input, shape index: {}]   ;;  %s2297_s9 = inlined_call_operand.vmem [shape: f32[1,32], index: 9, kind: input, shape index: {}]   ;;  %s2298_s10 = inlined_call_operand.vmem [shape: f32[64,32], index: 10, kind: output, shape index: {}]  }
   0x1   :  { %s1732_s15 = smov 0  }
   0x2 LB: > { %s1744_s16 = sadd.s32 4294967295, %s1665_s15   ;;  %s1747_s17 = sadd.s32 1, %s1665_s15   ;;  %s1665_s15 = sphi %s1732_s15, %s2301_s15   ;;  %s1661_s14 = sphi %s1730_s14, %s2300_s14   ;;  %s1657_s13 = sphi %s1728_s13, %s2299_s13  }
   0x3   : > { %s76_s18 = ssub.s32 %s1665_s15, %s1747_s17  ;;  %s79_s19 = sadd.s32 1, %s1661_s14 }
   0x4   : > { %p77_p0 = scmp.eq.s32.totalorder %s76_s18, 0  ;;  %p86_p1 = scmp.ne.s32.totalorder %s1661_s14, %s1657_s13 }
   0x5   : > { %p87_p2 = scmp.eq.s32.totalorder %s1665_s15, 0  ;;  %p1515_p4 = scmp.ge.s32.totalorder %s1665_s15, 2 }
   0x6   : > { %s1756_s20 = scalar_select %p77_p0, %s1661_s14, %s79_s19  }
   0x7   : > { %p88_p3 = por %p87_p2, %p86_p1  ;;  %301 = sbr.rel (%p1515_p4) target bundleno = 24 (0x18), region = 44 }
   0xc   : > { %322 = sbr.rel (!%p88_p3) target bundleno = 24 (0x18), region = 56  ;;  %s324_s21 = sand.u32 (%p88_p3), 1, %s1661_s14  }
   0xd   : > { %s1517_s22 = sshll.u32 (%p88_p3), %s1665_s15, 3  ;;  %s1516_s23 = sshll.u32 (%p88_p3), %s324_s21, 6 }
   0xe   : > { %s328_s26 = scalar_lea.vmem (%p88_p3), %s2290_s2, %s1517_s22  ;;  %s326_s27 = scalar_lea.vmem (%p88_p3), [#allocation3], %s1516_s23 }
   0xf   : > { %v371_v0 = vld [vmem:[%s328_s26] sm:$0xff] (%p88_p3)  ;;  %v373_v1 = vld [vmem:[%s328_s26 + $0x10] sm:$0xff] (%p88_p3) }
  0x10   : > { %v375_v2 = vld [vmem:[%s328_s26 + $0x20] sm:$0xff] (%p88_p3)  ;;  %372 = vst [vmem:[%s326_s27] sm:$0xff] (%p88_p3), %v371_v0  ;;  %v377_v3 = vld [vmem:[%s328_s26 + $0x30] sm:$0xff] (%p88_p3) }
  0x11   : > { %374 = vst [vmem:[%s326_s27 + $0x8] sm:$0xff] %v373_v1  ;;  %v379_v4 = vld [vmem:[%s328_s26 + $0x40] sm:$0xff]  ;;  %v381_v5 = vld [vmem:[%s328_s26 + $0x50] sm:$0xff] }
  0x12   : > { %376 = vst [vmem:[%s326_s27 + $0x10] sm:$0xff] %v375_v2  ;;  %v383_v6 = vld [vmem:[%s328_s26 + $0x60] sm:$0xff]  ;;  %v385_v7 = vld [vmem:[%s328_s26 + $0x70] sm:$0xff] }
  0x13   : > { %378 = vst [vmem:[%s326_s27 + $0x18] sm:$0xff] %v377_v3 }
  0x14   : > { %380 = vst [vmem:[%s326_s27 + $0x20] sm:$0xff] %v379_v4 }
  0x15   : > { %382 = vst [vmem:[%s326_s27 + $0x28] sm:$0xff] %v381_v5 }
  0x16   : > { %384 = vst [vmem:[%s326_s27 + $0x30] sm:$0xff] %v383_v6 }
  0x17   : > { %386 = vst [vmem:[%s326_s27 + $0x38] sm:$0xff] %v385_v7 }
  0x18 PF: > { %p1518_p5 = scmp.ge.s32.totalorder %s1665_s15, 1  ;;  %p391_p6 = scmp.lt.s32.totalorder %s1665_s15, 3 }
  0x1a   : > { %p392_p7 = pnand %p1518_p5, %p391_p6 }
  0x1b   : > { %s398_s28 = sand.u32 (!%p392_p7), 1, %s1657_s13   ;;  %s1520_s29 = sshll.u32 (!%p392_p7), %s1744_s16, 4 }
  0x1c   : > { %395 = sbr.rel (%p392_p7) target bundleno = 996 (0x3e4), region = 94  ;;  %s1519_s30 = sshll.u32 (!%p392_p7), %s398_s28, 6 }
  0x1d   : > { %p441_p8 = scmp.lt.s32.totalorder (!%p392_p7), %s1520_s29, 31  ;;  %s1778_s15 = scalar_lea.vmem (!%p392_p7), [#allocation3], %s1519_s30 }
  0x1e   : > { %p1524_p9 = scmp.ne.s32.totalorder (!%p392_p7), %s1744_s16, 0 }
  0x21   : > { %s2303_s29 = smov (!%p441_p8, %s1520_s29), 31  ;;  %455 = sbr.rel (%p1524_p9) target bundleno = 47 (0x2f), region = 102 }
  0x22   : > { %s1521_s11 = sshll.u32 %s2303_s29, 3 }
  0x23   : > { %s1771_s19 = scalar_lea.vmem %s2288_s0, %s1521_s11  ;;  %s1776_s23 = scalar_lea.vmem %s2289_s1, %s1521_s11 }
  0x26   : > { %vm456_vm0 = vcmask 261120   ;;  %v1667_v8 = vmov 0.0  }
  0x27   : > { %457 = vst.msk [vmem:[#allocation2] sm:$0xff] %vm456_vm0, %v1667_v8 }
  0x28   : > { %458 = vst.msk [vmem:[#allocation2 + $0x8] sm:$0xff] %vm456_vm0, %v1667_v8 }
  0x29   : > { %459 = vst.msk [vmem:[#allocation2 + $0x10] sm:$0xff] %vm456_vm0, %v1667_v8 }
  0x2a   : > { %460 = vst.msk [vmem:[#allocation2 + $0x18] sm:$0xff] %vm456_vm0, %v1667_v8 }
  0x2b   : > { %461 = vst.msk [vmem:[#allocation2 + $0x20] sm:$0xff] %vm456_vm0, %v1667_v8 }
  0x2c   : > { %462 = vst.msk [vmem:[#allocation2 + $0x28] sm:$0xff] %vm456_vm0, %v1667_v8 }
  0x2d   : > { %463 = vst.msk [vmem:[#allocation2 + $0x30] sm:$0xff] %vm456_vm0, %v1667_v8 }
  0x2e   : > { %464 = vst.msk [vmem:[#allocation2 + $0x38] sm:$0xff] %vm456_vm0, %v1667_v8 }
  0x2f PF: > { %v1784_v9 = vld [vmem:[%s2291_s3 + $0x38] sm:$0xff]  ;;  %v478_v10 = vld [vmem:[%s1771_s19 + $0x68] sm:$0xff]  ;;  %v477_v11 = vld [vmem:[%s1771_s19 + $0x60] sm:$0xff]  ;;  %v1668_v12 = vmov 0   ;;  %v1669_v19 = vmov 1   ;;  %vm856_vm1 = vcmask 523264  }
  0x30   : > { %913 = vmatpush.msra.mxu1 %v1784_v9  ;;  %1602 = vset.pattern.permute.xlu1 %v1668_v12  ;;  %v1793_v13 = vld [vmem:[%s2291_s3 + $0x30] sm:$0xff]  ;;  %v1799_v14 = vld [vmem:[%s2291_s3 + $0x28] sm:$0xff]  ;;  %v1805_v15 = vld [vmem:[%s2291_s3 + $0x20] sm:$0xff]  ;;  %vm718_vm2 = vcmask 130048   ;;  %s1670_s21 = smov 96   ;;  %vm1291_vm3 = vcmask 261120  }
  0x31   : > { %1600 = vset.pattern.permute.xlu0 %v1668_v12  ;;  %549 = vperm.xlu1 %1602, %v478_v10   ;;  %v479_v16 = vld [vmem:[%s1771_s19 + $0x70] sm:$0xff]  ;;  %v1813_v17 = vld [vmem:[%s2291_s3 + $0x18] sm:$0xff]  ;;  %v1826_v20 = vld [vmem:[%s2291_s3 + $0x8] sm:$0xff]  ;;  %p1557_p10 = scmp.ne.s32.totalorder %s1744_s16, 1 }
  0x32   : > { %544 = vperm.xlu0 %1600, %v477_v11   ;;  %914 = vmatpush.msra.mxu1 %v1793_v13  ;;  %v1819_v18 = vld [vmem:[%s2291_s3 + $0x10] sm:$0xff]  ;;  %v1833_v21 = vld [vmem:[%s2291_s3] sm:$0xff]  ;;  %v480_v23 = vld [vmem:[%s1771_s19 + $0x78] sm:$0xff] }
  0x33   : > { %1604 = vset.pattern.permute.xlu2 %v1668_v12  ;;  %v832_v22 = vld [vmem:[%s1776_s23] sm:$0xff]  ;;  %v833_v25 = vld [vmem:[%s1776_s23 + $0x8] sm:$0xff]  ;;  %v467_v26 = vld [vmem:[%s1771_s19 + $0x10] sm:$0xff] }
  0x34   : > { %915 = vmatpush.msra.mxu1 %v1799_v14  ;;  %554 = vperm.xlu2 %1604, %v479_v16   ;;  %v465_v24 = vld [vmem:[%s1771_s19] sm:$0xff]  ;;  %v834_v27 = vld [vmem:[%s1776_s23 + $0x10] sm:$0xff]  ;;  %v466_v28 = vld [vmem:[%s1771_s19 + $0x8] sm:$0xff] }
  0x35   : > { %v470_v29 = vld [vmem:[%s1771_s19 + $0x28] sm:$0xff]  ;;  %v835_v30 = vld [vmem:[%s1776_s23 + $0x18] sm:$0xff]  ;;  %v836_v32 = vld [vmem:[%s1776_s23 + $0x20] sm:$0xff] }
  0x36   : > { %916 = vmatpush.msra.mxu1 %v1805_v15  ;;  %v468_v31 = vld [vmem:[%s1771_s19 + $0x18] sm:$0xff]  ;;  %v469_v34 = vld [vmem:[%s1771_s19 + $0x20] sm:$0xff]  ;;  %v837_v35 = vld [vmem:[%s1776_s23 + $0x28] sm:$0xff] }
  0x37   : > { %v472_v33 = vld [vmem:[%s1771_s19 + $0x38] sm:$0xff]  ;;  %v838_v36 = vld [vmem:[%s1776_s23 + $0x30] sm:$0xff]  ;;  %v840_v39 = vld [vmem:[%s1776_s23 + $0x40] sm:$0xff] }
  0x38   : > { %917 = vmatpush.msra.mxu1 %v1813_v17  ;;  %v471_v37 = vld [vmem:[%s1771_s19 + $0x30] sm:$0xff]  ;;  %v839_v38 = vld [vmem:[%s1776_s23 + $0x38] sm:$0xff]  ;;  %v473_v40 = vld [vmem:[%s1771_s19 + $0x40] sm:$0xff] }
  0x39   : > { %1603 = vset.pattern.permute.xlu1 %v1669_v19  ;;  %v474_v41 = vld [vmem:[%s1771_s19 + $0x48] sm:$0xff]  ;;  %v712_v44 = vld [vmem:[%s2294_s6] sm:$0xff]  ;;  %v475_v45 = vld [vmem:[%s1771_s19 + $0x50] sm:$0xff] }
  0x3a   : > { %1601 = vset.pattern.permute.xlu0 %v1669_v19  ;;  %918 = vmatpush.msra.mxu1 %v1819_v18  ;;  %v841_v42 = vld [vmem:[%s1776_s23 + $0x48] sm:$0xff]  ;;  %v476_v47 = vld [vmem:[%s1771_s19 + $0x58] sm:$0xff]  ;;  %v481_v51 = vld [vmem:[%s2292_s4] sm:$0x3] }
  0x3b   : > { %632 = vperm.xlu1 %1603, %v478_v10   ;;  %628 = vperm.xlu0 %1601, %v477_v11   ;;  %v713_v43 = vld [vmem:[%s2294_s6 + $0x8] sm:$0xff]  ;;  %v1905_v52 = vperm.slane %v481_v51, 0  ;;  %v1907_v53 = vperm.slane %v481_v51, 1  ;;  %v1915_v58 = vld [vmem:[%s2293_s5] ss:$0 sm:$0xff] }
  0x3c   : > { %919 = vmatpush.msra.mxu1 %v1826_v20  ;;  %1605 = vset.pattern.permute.xlu2 %v1669_v19 }
  0x3d   : > { %636 = vperm.xlu2 %1605, %v479_v16   ;;  %1560 = vmatpush.msra.mxu3 %v713_v43 }
  0x3e   : > { %920 = vmatpush.msra.mxu1 %v1833_v21  ;;  %781 = vmatpush.msra.mxu0 %v713_v43 }
  0x3f   : > { %1541 = vmatmul.msk.f32.vlgmr.msra.gmra.mxu1 %vm856_vm1, %v832_v22  ;;  %1561 = vmatpush.msra.mxu3 %v712_v44 }
  0x40   : > { %782 = vmatpush.msra.mxu0 %v712_v44  ;;  %v842_v44 = vld [vmem:[%s1776_s23 + $0x50] sm:$0xff] }
  0x41   : > { %1562 = vmatpush.msrb.mxu3 %v1784_v9 }
  0x43   : > { %1606 = vset.pattern.permute.xlu1 %v1668_v12  ;;  %1607 = vset.pattern.permute.xlu0 %v1668_v12 }
  0x44   : > { %559 = vperm.xlu1 %1606, %v480_v23   ;;  %484 = vperm.xlu0 %1607, %v465_v24  }
  0x45   : > { %640 = vperm.xlu2 %1605, %v480_v23   ;;  %1563 = vmatpush.msrb.mxu3 %v1793_v13 }
  0x47   : > { %1542 = vmatmul.msk.f32.gmra.mxu1 %vm856_vm1, %v833_v25  ;;  %1564 = vmatpush.msrb.mxu3 %v1799_v14 }
  0x49   : > { %1565 = vmatpush.msrb.mxu3 %v1805_v15 }
  0x4b   : > { %1566 = vmatpush.msrb.mxu3 %v1813_v17 }
  0x4c   : > { %1608 = vset.pattern.permute.xlu1 %v1669_v19  ;;  %1610 = vset.pattern.permute.xlu0 %v1669_v19 }
  0x4d   : > { %580 = vperm.xlu1 %1608, %v465_v24   ;;  %588 = vperm.xlu0 %1610, %v467_v26  }
  0x4e   : > { %1609 = vset.pattern.permute.xlu2 %v1668_v12  ;;  %1567 = vmatpush.msrb.mxu3 %v1819_v18 }
  0x4f   : > { %1543 = vmatmul.msk.f32.gmra.mxu1 %vm856_vm1, %v834_v27  ;;  %489 = vperm.xlu2 %1609, %v466_v28  }
  0x50   : > { %1568 = vmatpush.msrb.mxu3 %v1826_v20 }
  0x52   : > { %1569 = vmatpush.msrb.mxu3 %v1833_v21 }
  0x55   : > { %584 = vperm.xlu1 %1608, %v466_v28   ;;  %1613 = vset.pattern.permute.xlu0 %v1668_v12 }
  0x56   : > { %509 = vperm.xlu0 %1613, %v470_v29  }
  0x57   : > { %1544 = vmatmul.msk.f32.gmra.mxu1 %vm856_vm1, %v835_v30  ;;  %494 = vperm.xlu2 %1609, %v467_v26  }
  0x5d   : > { %1611 = vset.pattern.permute.xlu1 %v1668_v12 }
  0x5e   : > { %499 = vperm.xlu1 %1611, %v468_v31   ;;  %1616 = vset.pattern.permute.xlu0 %v1669_v19 }
  0x5f   : > { %1545 = vmatmul.msk.f32.gmra.mxu1 %vm856_vm1, %v836_v32  ;;  %1612 = vset.pattern.permute.xlu2 %v1669_v19 }
  0x60   : > { %592 = vperm.xlu2 %1612, %v468_v31   ;;  %608 = vperm.xlu0 %1616, %v472_v33  }
  0x66   : > { %504 = vperm.xlu1 %1611, %v469_v34  }
  0x67   : > { %1546 = vmatmul.msk.f32.gmra.mxu1 %vm856_vm1, %v837_v35 }
  0x68   : > { %596 = vperm.xlu2 %1612, %v469_v34   ;;  %1619 = vset.pattern.permute.xlu0 %v1668_v12 }
  0x69   : > { %534 = vperm.xlu0 %1619, %v475_v45  }
  0x6e   : > { %1614 = vset.pattern.permute.xlu1 %v1669_v19 }
  0x6f   : > { %1547 = vmatmul.msk.f32.gmra.mxu1 %vm856_vm1, %v838_v36  ;;  %600 = vperm.xlu1 %1614, %v470_v29  }
  0x70   : > { %1615 = vset.pattern.permute.xlu2 %v1668_v12 }
  0x71   : > { %514 = vperm.xlu2 %1615, %v471_v37   ;;  %1622 = vset.pattern.permute.xlu0 %v1669_v19 }
  0x77   : > { %1548 = vmatmul.msk.f32.gmra.mxu1 %vm856_vm1, %v839_v38  ;;  %604 = vperm.xlu1 %1614, %v471_v37  }
  0x79   : > { %519 = vperm.xlu2 %1615, %v472_v33  }
  0x7f   : > { %1549 = vmatmul.msk.f32.gmra.mxu1 %vm856_vm1, %v840_v39  ;;  %1617 = vset.pattern.permute.xlu1 %v1668_v12 }
  0x80   : > { %524 = vperm.xlu1 %1617, %v473_v40  }
  0x81   : > { %1618 = vset.pattern.permute.xlu2 %v1669_v19 }
  0x82   : > { %612 = vperm.xlu2 %1618, %v473_v40  }
  0x87   : > { %1550 = vmatmul.msk.f32.gmra.mxu1 %vm856_vm1, %v841_v42 }
  0x88   : > { %529 = vperm.xlu1 %1617, %v474_v41  }
  0x8a   : > { %616 = vperm.xlu2 %1618, %v474_v41  }
  0x8e   : > { %v555_v46 = vpop.permute.xlu2 %554 }
  0x8f   : > { %v577_v4 = vmul.f32 %v1905_v52, %v555_v46 }
  0x90   : > { %1620 = vset.pattern.permute.xlu1 %v1669_v19 }
  0x91   : > { %620 = vperm.xlu1 %1620, %v475_v45  }
  0x92   : > { %1621 = vset.pattern.permute.xlu2 %v1668_v12 }
  0x93   : > { %539 = vperm.xlu2 %1621, %v476_v47  }
  0x97   : > { %v637_v50 = vpop.permute.xlu2 %636 }
  0x98   : > { %v658_v5 = vmul.f32 %v1907_v53, %v637_v50 }
  0x99   : > { %624 = vperm.xlu1 %1620, %v476_v47  }
  0x9a   : > { %v674_v8 = vadd.f32 %v658_v5, %v577_v4 }
  0x9b   : > { %1623 = vset.pattern.permute.xlu2 %v1669_v19 }
  0x9c   : > { %v694_v17 = vadd.f32 %v1915_v58, %v674_v8 }
  0x9e   : > { %v710_v23 = vmax.f32 %v694_v17, 0.0 }
  0x9f   : > { %v641_v59 = vpop.permute.xlu2 %640 }
  0xa0   : > { %v659_v15 = vmul.f32 %v1907_v53, %v641_v59 }
  0xa3   : > { %v550_v48 = vpop.permute.xlu1 %549 }
  0xa4   : > { %v545_v49 = vpop.permute.xlu0 %544  ;;  %v576_v60 = vmul.f32 %v1905_v52, %v550_v48 }
  0xa5   : > { %v575_v56 = vmul.f32 %v1905_v52, %v545_v49 }
  0xa9   : > { %v490_v3 = vpop.permute.xlu2 %489 }
  0xaa   : > { %v564_v26 = vmul.f32 %v1905_v52, %v490_v3 }
  0xad   : > { %v633_v54 = vpop.permute.xlu1 %632  ;;  %v629_v55 = vpop.permute.xlu0 %628 }
  0xae   : > { %v656_v57 = vmul.f32 %v1907_v53, %v629_v55  ;;  %v657_v61 = vmul.f32 %v1907_v53, %v633_v54  ;;  %v843_v55 = vld [vmem:[%s1776_s23 + $0x58] sm:$0xff] }
  0xb0   : > { %v672_v62 = vadd.f32 %v656_v57, %v575_v56  ;;  %v673_v0 = vadd.f32 %v657_v61, %v576_v60 }
  0xb1   : > { %v495_v18 = vpop.permute.xlu2 %494 }
  0xb2   : > { %v692_v63 = vadd.f32 %v1915_v58, %v672_v62  ;;  %v693_v6 = vadd.f32 %v1915_v58, %v673_v0  ;;  %v565_v31 = vmul.f32 %v1905_v52, %v495_v18 }
  0xb4   : > { %v708_v1 = vmax.f32 %v692_v63, 0.0  ;;  %v709_v10 = vmax.f32 %v693_v6, 0.0 }
  0xb6   : > { %1537 = vmatmul.msk.f32.vlgmr.msra.gmra.mxu3 %vm718_vm2, %v708_v1  ;;  %v560_v2 = vpop.permute.xlu1 %559  ;;  %v485_v7 = vpop.permute.xlu0 %484 }
  0xb7   : > { %v563_v11 = vmul.f32 %v1905_v52, %v485_v7  ;;  %v578_v14 = vmul.f32 %v1905_v52, %v560_v2  ;;  %v844_v2 = vld [vmem:[%s1776_s23 + $0x60] sm:$0xff] }
  0xb9   : > { %v675_v21 = vadd.f32 %v659_v15, %v578_v14 }
  0xba   : > { %v593_v34 = vpop.permute.xlu2 %592 }
  0xbb   : > { %v695_v30 = vadd.f32 %v1915_v58, %v675_v21  ;;  %v647_v40 = vmul.f32 %v1907_v53, %v593_v34 }
  0xbc   : > { %v1924_v9 = vpop.f32.mrf.mxu1 }
  0xbd   : > { %1067 = vperm.xlu0 %1622, %v1924_v9   ;;  %v711_v36 = vmax.f32 %v695_v30, 0.0 }
  0xbe   : > { %1538 = vmatmul.msk.f32.gmra.mxu3 %vm718_vm2, %v709_v10 }
  0xbf   : > { %v581_v13 = vpop.permute.xlu1 %580  ;;  %v589_v25 = vpop.permute.xlu0 %588 }
  0xc0   : > { %v644_v16 = vmul.f32 %v1907_v53, %v581_v13  ;;  %v646_v32 = vmul.f32 %v1907_v53, %v589_v25 }
  0xc2   : > { %v660_v20 = vadd.f32 %v644_v16, %v563_v11  ;;  %v662_v37 = vadd.f32 %v646_v32, %v565_v31  ;;  %v597_v48 = vpop.permute.xlu2 %596  ;;  %v845_v11 = vld [vmem:[%s1776_s23 + $0x68] sm:$0xff]  ;;  %v847_v32 = vld [vmem:[%s1776_s23 + $0x78] sm:$0xff] }
  0xc3   : > { %v648_v49 = vmul.f32 %v1907_v53, %v597_v48 }
  0xc4   : > { %v1933_v22 = vpop.f32.mrf.mxu1  ;;  %v680_v24 = vadd.f32 %v1915_v58, %v660_v20  ;;  %v682_v42 = vadd.f32 %v1915_v58, %v662_v37 }
  0xc5   : > { %1071 = vperm.xlu2 %1623, %v1933_v22  }
  0xc6   : > { %1539 = vmatmul.msk.f32.gmra.mxu3 %vm718_vm2, %v710_v23  ;;  %v696_v27 = vmax.f32 %v680_v24, 0.0  ;;  %v698_v47 = vmax.f32 %v682_v42, 0.0  ;;  %v846_v23 = vld [vmem:[%s1776_s23 + $0x70] sm:$0xff] }
  0xc7   : > { %v585_v28 = vpop.permute.xlu1 %584 }
  0xc8   : > { %v645_v29 = vmul.f32 %v1907_v53, %v585_v28  ;;  %1525 = vmatmul.msk.f32.vlgmr.msra.gmra.mxu0 %vm718_vm2, %v696_v27  ;;  %v510_v60 = vpop.permute.xlu0 %509 }
  0xc9   : > { %v568_v61 = vmul.f32 %v1905_v52, %v510_v60 }
  0xca   : > { %v661_v33 = vadd.f32 %v645_v29, %v564_v26 }
  0xcb   : > { %v515_v0 = vpop.permute.xlu2 %514 }
  0xcc   : > { %v1944_v35 = vpop.f32.mrf.mxu1  ;;  %v681_v38 = vadd.f32 %v1915_v58, %v661_v33  ;;  %v569_v6 = vmul.f32 %v1905_v52, %v515_v0 }
  0xcd   : > { %1075 = vperm.xlu1 %1620, %v1944_v35  }
  0xce   : > { %1540 = vmatmul.msk.f32.gmra.mxu3 %vm718_vm2, %v711_v36  ;;  %v697_v39 = vmax.f32 %v681_v38, 0.0 }
  0xd0   : > { %1526 = vmatmul.msk.f32.gmra.mxu0 %vm718_vm2, %v697_v39  ;;  %v500_v41 = vpop.permute.xlu1 %499 }
  0xd1   : > { %v566_v43 = vmul.f32 %v1905_v52, %v500_v41 }
  0xd2   : > { %v609_v17 = vpop.permute.xlu0 %608 }
  0xd3   : > { %v663_v46 = vadd.f32 %v647_v40, %v566_v43  ;;  %v520_v13 = vpop.permute.xlu2 %519  ;;  %v651_v20 = vmul.f32 %v1907_v53, %v609_v17 }
  0xd4   : > { %v1954_v45 = vpop.f32.mrf.mxu1  ;;  %v570_v18 = vmul.f32 %v1905_v52, %v520_v13 }
  0xd5   : > { %1079 = vperm.xlu0 %1622, %v1954_v45   ;;  %v683_v51 = vadd.f32 %v1915_v58, %v663_v46 }
  0xd6   : > { %1551 = vmatmul.msk.f32.vlgmr.msrb.gmra.mxu3 %vm856_vm1, %v842_v44  ;;  %v667_v25 = vadd.f32 %v651_v20, %v570_v18 }
  0xd7   : > { %v699_v59 = vmax.f32 %v683_v51, 0.0 }
  0xd8   : > { %1527 = vmatmul.msk.f32.gmra.mxu0 %vm718_vm2, %v698_v47  ;;  %v505_v50 = vpop.permute.xlu1 %504  ;;  %v687_v31 = vadd.f32 %v1915_v58, %v667_v25 }
  0xd9   : > { %v567_v54 = vmul.f32 %v1905_v52, %v505_v50 }
  0xda   : > { %v703_v36 = vmax.f32 %v687_v31, 0.0 }
  0xdb   : > { %v664_v57 = vadd.f32 %v648_v49, %v567_v54  ;;  %v535_v47 = vpop.permute.xlu0 %534 }
  0xdc   : > { %v1963_v56 = vpop.f32.mrf.mxu1  ;;  %v613_v27 = vpop.permute.xlu2 %612  ;;  %v573_v49 = vmul.f32 %v1905_v52, %v535_v47 }
  0xdd   : > { %1083 = vperm.xlu2 %1623, %v1963_v56   ;;  %v684_v62 = vadd.f32 %v1915_v58, %v664_v57  ;;  %v652_v29 = vmul.f32 %v1907_v53, %v613_v27 }
  0xde   : > { %1552 = vmatmul.msk.f32.gmra.mxu3 %vm856_vm1, %v843_v55 }
  0xdf   : > { %v700_v5 = vmax.f32 %v684_v62, 0.0 }
  0xe0   : > { %1528 = vmatmul.msk.f32.gmra.mxu0 %vm718_vm2, %v699_v59 }
  0xe1   : > { %v601_v63 = vpop.permute.xlu1 %600 }
  0xe2   : > { %v649_v1 = vmul.f32 %v1907_v53, %v601_v63 }
  0xe4   : > { %v1972_v3 = vpop.f32.mrf.mxu1  ;;  %v665_v4 = vadd.f32 %v649_v1, %v568_v61  ;;  %v617_v37 = vpop.permute.xlu2 %616 }
  0xe5   : > { %1087 = vperm.xlu1 %1620, %v1972_v3   ;;  %v653_v40 = vmul.f32 %v1907_v53, %v617_v37 }
  0xe6   : > { %1553 = vmatmul.msk.f32.gmra.mxu3 %vm856_vm1, %v844_v2  ;;  %v685_v7 = vadd.f32 %v1915_v58, %v665_v4 }
  0xe8   : > { %1529 = vmatmul.msk.f32.gmra.mxu0 %vm718_vm2, %v700_v5  ;;  %v701_v16 = vmax.f32 %v685_v7, 0.0 }
  0xe9   : > { %v605_v8 = vpop.permute.xlu1 %604 }
  0xea   : > { %v650_v10 = vmul.f32 %v1907_v53, %v605_v8 }
  0xec   : > { %v1981_v14 = vpop.f32.mrf.mxu1  ;;  %v666_v15 = vadd.f32 %v650_v10, %v569_v6 }
  0xed   : > { %1091 = vperm.xlu0 %1622, %v1981_v14   ;;  %v540_v57 = vpop.permute.xlu2 %539 }
  0xee   : > { %1554 = vmatmul.msk.f32.gmra.mxu3 %vm856_vm1, %v845_v11  ;;  %v686_v21 = vadd.f32 %v1915_v58, %v666_v15  ;;  %v574_v59 = vmul.f32 %v1905_v52, %v540_v57 }
  0xf0   : > { %1530 = vmatmul.msk.f32.gmra.mxu0 %vm718_vm2, %v701_v16  ;;  %v702_v26 = vmax.f32 %v686_v21, 0.0 }
  0xf2   : > { %v525_v28 = vpop.permute.xlu1 %524 }
  0xf3   : > { %v571_v30 = vmul.f32 %v1905_v52, %v525_v28  ;;  %v2055_v28 = vld [vmem:[%s2295_s7] ss:$0 sm:$0xff] }
  0xf4   : > { %v1990_v24 = vpop.f32.mrf.mxu1 }
  0xf5   : > { %1095 = vperm.xlu2 %1623, %v1990_v24   ;;  %v668_v34 = vadd.f32 %v652_v29, %v571_v30 }
  0xf6   : > { %1555 = vmatmul.msk.f32.gmra.mxu3 %vm856_vm1, %v846_v23 }
  0xf7   : > { %v688_v39 = vadd.f32 %v1915_v58, %v668_v34 }
  0xf8   : > { %1531 = vmatmul.msk.f32.gmra.mxu0 %vm718_vm2, %v702_v26 }
  0xf9   : > { %v704_v42 = vmax.f32 %v688_v39, 0.0 }
  0xfa   : > { %v530_v38 = vpop.permute.xlu1 %529 }
  0xfb   : > { %v572_v41 = vmul.f32 %v1905_v52, %v530_v38 }
  0xfc   : > { %v1999_v33 = vpop.f32.mrf.mxu1 }
  0xfd   : > { %1099 = vperm.xlu1 %1620, %v1999_v33   ;;  %v669_v43 = vadd.f32 %v653_v40, %v572_v41 }
  0xfe   : > { %1556 = vmatmul.msk.f32.gmra.mxu3 %vm856_vm1, %v847_v32 }
  0xff   : > { %v689_v44 = vadd.f32 %v1915_v58, %v669_v43 }
 0x100   : > { %1532 = vmatmul.msk.f32.gmra.mxu0 %vm718_vm2, %v703_v36 }
 0x101   : > { %v705_v50 = vmax.f32 %v689_v44, 0.0 }
 0x103   : > { %v621_v46 = vpop.permute.xlu1 %620 }
 0x104   : > { %v654_v48 = vmul.f32 %v1907_v53, %v621_v46  ;;  %v949_v54 = vpop.f32.mrf.mxu1 }
 0x105   : > { %1103 = vperm.xlu0 %1622, %v949_v54  }
 0x106   : > { %v670_v51 = vadd.f32 %v654_v48, %v573_v49 }
 0x108   : > { %1533 = vmatmul.msk.f32.gmra.mxu0 %vm718_vm2, %v704_v42  ;;  %v690_v55 = vadd.f32 %v1915_v58, %v670_v51 }
 0x10a   : > { %v706_v60 = vmax.f32 %v690_v55, 0.0 }
 0x10b   : > { %v625_v61 = vpop.permute.xlu1 %624 }
 0x10c   : > { %v655_v62 = vmul.f32 %v1907_v53, %v625_v61 }
 0x10d   : > { %1626 = vset.pattern.permute.xlu0 %v1668_v12 }
 0x10e   : > { %v671_v63 = vadd.f32 %v655_v62, %v574_v59 }
 0x110   : > { %1534 = vmatmul.msk.f32.gmra.mxu0 %vm718_vm2, %v705_v50  ;;  %v691_v0 = vadd.f32 %v1915_v58, %v671_v63 }
 0x112   : > { %v707_v1 = vmax.f32 %v691_v0, 0.0 }
 0x118   : > { %1535 = vmatmul.msk.f32.gmra.mxu0 %vm718_vm2, %v706_v60 }
 0x11f   : > { %v2058_v30 = vpop.permute.xlu2 %1071 }
 0x120   : > { %1536 = vmatmul.msk.f32.gmra.mxu0 %vm718_vm2, %v707_v1 }
 0x12f   : > { %v2046_v21 = vpop.permute.xlu0 %1067 }
 0x137   : > { %v2070_v37 = vpop.permute.xlu2 %1083 }
 0x139   : > { %v2019_v2 = vpop.f32.mrf.mxu3 }
 0x13a   : > { %v821_v51 = vadd.f32 %v2055_v28, %v2019_v2 }
 0x13f   : > { %v2043_v18 = vpop.permute.xlu1 %1075 }
 0x141   : > { %v2021_v4 = vpop.f32.mrf.mxu3 }
 0x145   : > { %v2023_v5 = vpop.f32.mrf.mxu0 }
 0x147   : > { %v2050_v27 = vpop.permute.xlu0 %1079 }
 0x149   : > { %v2025_v52 = vpop.f32.mrf.mxu3 }
 0x14a   : > { %v827_v57 = vadd.f32 %v2055_v28, %v2025_v52  ;;  %v824_v52 = vadd.f32 %v2055_v28, %v2021_v4 }
 0x14d   : > { %v2027_v6 = vpop.f32.mrf.mxu0 }
 0x14f   : > { %v1096_v39 = vpop.permute.xlu2 %1095 }
 0x151   : > { %v2029_v53 = vpop.f32.mrf.mxu3 }
 0x155   : > { %v2031_v7 = vpop.f32.mrf.mxu0 }
 0x156   : > { %v2119_v4 = vadd.f32 %v2055_v28, %v2031_v7 }
 0x157   : > { %v1088_v25 = vpop.permute.xlu1 %1087 }
 0x159   : > { %v952_v8 = vpop.f32.mrf.mxu3 }
 0x15a   : > { %1107 = vperm.xlu2 %1623, %v952_v8  }
 0x15d   : > { %v2033_v58 = vpop.f32.mrf.mxu0 }
 0x161   : > { %v955_v10 = vpop.f32.mrf.mxu3 }
 0x162   : > { %1624 = vset.pattern.permute.xlu2 %v1668_v12  ;;  %1111 = vperm.xlu1 %1620, %v955_v10  }
 0x163   : > { %1027 = vperm.xlu2 %1624, %v955_v10   ;;  %v830_v10 = vadd.f32 %v2055_v28, %v2029_v53  ;;  %v2123_v53 = vadd.f32 %v2055_v28, %v2033_v58 }
 0x165   : > { %v2036_v11 = vpop.f32.mrf.mxu0 }
 0x169   : > { %v958_v13 = vpop.f32.mrf.mxu3 }
 0x16a   : > { %1032 = vperm.xlu0 %1626, %v958_v13  }
 0x16b   : > { %1625 = vset.pattern.permute.xlu2 %v1669_v19 }
 0x16c   : > { %1115 = vperm.xlu2 %1625, %v958_v13  }
 0x16d   : > { %v2039_v15 = vpop.f32.mrf.mxu0 }
 0x16e   : > { %v2104_v63 = vadd.f32 %v2055_v28, %v2039_v15 }
 0x16f   : > { %v1100_v32 = vpop.permute.xlu1 %1099 }
 0x170   : > { %v1135_v1 = vmul.f32 %v1088_v25, %v2104_v63  ;;  %v1133_v25 = vmul.f32 %v2050_v27, %v2123_v53 }
 0x171   : > { %v961_v16 = vpop.f32.mrf.mxu3 }
 0x172   : > { %1119 = vperm.xlu1 %1620, %v961_v16   ;;  %1628 = vset.pattern.permute.xlu0 %v1669_v19 }
 0x174   : > { %1629 = vset.pattern.permute.xlu2 %v1668_v12 }
 0x175   : > { %v802_v17 = vpop.f32.mrf.mxu0 }
 0x176   : > { %v2066_v36 = vadd.f32 %v2055_v28, %v802_v17 }
 0x179   : > { %v964_v20 = vpop.f32.mrf.mxu3 }
 0x17a   : > { %1042 = vperm.xlu2 %1629, %v964_v20   ;;  %1627 = vset.pattern.permute.xlu1 %v1668_v12 }
 0x17b   : > { %1123 = vperm.xlu0 %1628, %v964_v20   ;;  %1037 = vperm.xlu1 %1627, %v961_v16  }
 0x17d   : > { %v805_v23 = vpop.f32.mrf.mxu0 }
 0x181   : > { %v967_v26 = vpop.f32.mrf.mxu3 }
 0x182   : > { %1630 = vset.pattern.permute.xlu2 %v1669_v19 }
 0x183   : > { %1632 = vset.pattern.permute.xlu0 %v1668_v12  ;;  %1127 = vperm.xlu2 %1630, %v967_v26  }
 0x184   : > { %1017 = vperm.xlu1 %1627, %v949_v54   ;;  %1012 = vperm.xlu0 %1632, %v1999_v33   ;;  %v1092_v33 = vpop.permute.xlu0 %1091 }
 0x185   : > { %v808_v29 = vpop.f32.mrf.mxu0  ;;  %v1136_v38 = vmul.f32 %v1092_v33, %v2066_v36 }
 0x186   : > { %v2061_v31 = vadd.f32 %v2055_v28, %v808_v29 }
 0x188   : > { %v1138_v34 = vmul.f32 %v1100_v32, %v2061_v31 }
 0x18b   : > { %1631 = vset.pattern.permute.xlu2 %v1668_v12  ;;  %v2076_v12 = vadd.f32 %v2055_v28, %v805_v23  ;;  %v1132_v23 = vmul.f32 %v2043_v18, %v2119_v4 }
 0x18c   : > { %1002 = vperm.xlu1 %1627, %v1981_v14   ;;  %1178 = vrot.lane.b32.xlu0 %v1138_v34, %s1670_s21  ;;  %v1104_v42 = vpop.permute.xlu0 %1103 }
 0x18d   : > { %1022 = vperm.xlu2 %1631, %v952_v8   ;;  %v1137_v14 = vmul.f32 %v1096_v39, %v2076_v12  ;;  %v811_v40 = vpop.f32.mrf.mxu0 }
 0x18e   : > { %v2081_v41 = vadd.f32 %v2055_v28, %v811_v40 }
 0x194   : > { %997 = vperm.xlu0 %1632, %v1972_v3   ;;  %1174 = vrot.lane.b32.xlu1 %v1136_v38, %s1670_s21  ;;  %v1139_v3 = vmul.f32 %v1104_v42, %v2081_v41 }
 0x195   : > { %1007 = vperm.xlu2 %1631, %v1990_v24   ;;  %v814_v43 = vpop.f32.mrf.mxu0 }
 0x196   : > { %v2087_v44 = vadd.f32 %v2055_v28, %v814_v43 }
 0x19c   : > { %1047 = vperm.xlu1 %1627, %v967_v26  }
 0x19d   : > { %1176 = vrot.lane.b32.xlu2 %v1137_v14, %s1670_s21  ;;  %v817_v47 = vpop.f32.mrf.mxu0 }
 0x19e   : > { %v818_v48 = vadd.f32 %v2055_v28, %v817_v47 }
 0x1a4   : > { %1180 = vrot.lane.b32.xlu1 %v1139_v3, %s1670_s21 }
 0x1b4   : > { %v1108_v24 = vpop.permute.xlu2 %1107 }
 0x1b5   : > { %v1140_v46 = vmul.f32 %v1108_v24, %v2087_v44 }
 0x1b7   : > { %1182 = vrot.lane.b32.xlu2 %v1140_v46, %s1670_s21 }
 0x1bd   : > { %v1028_v49 = vpop.permute.xlu2 %1027 }
 0x1be   : > { %v2092_v50 = vmul.f32 %v1028_v49, %v818_v48 }
 0x1c6   : > { %v1116_v54 = vpop.permute.xlu2 %1115 }
 0x1c7   : > { %v1142_v55 = vmul.f32 %v1116_v54, %v821_v51 }
 0x1c9   : > { %1186 = vrot.lane.b32.xlu1 %v1142_v55, %s1670_s21 }
 0x1d4   : > { %v1043_v59 = vpop.permute.xlu2 %1042  ;;  %v1112_v60 = vpop.permute.xlu1 %1111 }
 0x1d5   : > { %v2099_v61 = vmul.f32 %v1043_v59, %v827_v57  ;;  %v1141_v62 = vmul.f32 %v1112_v60, %v818_v48 }
 0x1d7   : > { %1184 = vrot.lane.b32.xlu0 %v1141_v62, %s1670_s21 }
 0x1dc   : > { %v1033_v0 = vpop.permute.xlu0 %1032 }
 0x1dd   : > { %v1062_v2 = vmul.f32 %v1033_v0, %v821_v51  ;;  %v1128_v8 = vpop.permute.xlu2 %1127 }
 0x1de   : > { %v1145_v16 = vmul.f32 %v1128_v8, %v830_v10 }
 0x1df   : > { %1172 = vrot.lane.b32.xlu0 %v1135_v1, %s1670_s21 }
 0x1e4   : > { %v1120_v13 = vpop.permute.xlu1 %1119 }
 0x1e5   : > { %v1143_v17 = vmul.f32 %v1120_v13, %v824_v52 }
 0x1e7   : > { %1192 = vrot.lane.b32.xlu0 %v1145_v16, %s1670_s21  ;;  %1188 = vrot.lane.b32.xlu1 %v1143_v17, %s1670_s21  ;;  %v1023_v18 = vpop.permute.xlu2 %1022 }
 0x1e8   : > { %v1060_v51 = vmul.f32 %v1023_v18, %v2087_v44  ;;  %v1226_v18 = vld [vmem:[#allocation2] sm:$0xff] }
 0x1ed   : > { %v1124_v15 = vpop.permute.xlu0 %1123 }
 0x1ee   : > { %v1144_v20 = vmul.f32 %v1124_v15, %v827_v57 }
 0x1ef   : > { %982 = vperm.xlu0 %1632, %v1944_v35   ;;  %987 = vperm.xlu1 %1627, %v1954_v45   ;;  %v2135_v35 = vadd.f32 %v2055_v28, %v2023_v5  ;;  %v2139_v45 = vadd.f32 %v2055_v28, %v2036_v11  ;;  %v1038_v5 = vpop.permute.xlu1 %1037  ;;  %v1008_v27 = vpop.permute.xlu2 %1007 }
 0x1f0   : > { %1190 = vrot.lane.b32.xlu2 %v1144_v20, %s1670_s21  ;;  %v1063_v43 = vmul.f32 %v1038_v5, %v824_v52  ;;  %v1057_v62 = vmul.f32 %v1008_v27, %v2076_v12  ;;  %v1240_v5 = vld [vmem:[%s1778_s15 + $0x30] sm:$0xff]  ;;  %v1227_v27 = vld [vmem:[#allocation2 + $0x8] sm:$0xff] }
 0x1f1   : > { %v1130_v7 = vmul.f32 %v2046_v21, %v2135_v35  ;;  %v1134_v58 = vmul.f32 %v2070_v37, %v2139_v45 }
 0x1f6   : > { %v1013_v26 = vpop.permute.xlu0 %1012 }
 0x1f7   : > { %1166 = vrot.lane.b32.xlu0 %v1132_v23, %s1670_s21  ;;  %1168 = vrot.lane.b32.xlu1 %v1133_v25, %s1670_s21  ;;  %v1018_v11 = vpop.permute.xlu1 %1017  ;;  %v1177_v32 = vpop.permute.xlu2 %1176  ;;  %v1058_v60 = vmul.f32 %v1013_v26, %v2061_v31 }
 0x1f8   : > { %992 = vperm.xlu2 %1631, %v1963_v56   ;;  %1633 = vset.pattern.permute.xlu0 %v1669_v19  ;;  %v2151_v19 = vadd.f32 %v2055_v28, %v2027_v6  ;;  %v1059_v57 = vmul.f32 %v1018_v11, %v2081_v41  ;;  %v1217_v8 = vadd.f32 %v1177_v32, %v1057_v62  ;;  %v1241_v11 = vld [vmem:[%s1778_s15 + $0x38] sm:$0xff]  ;;  %v1228_v32 = vld [vmem:[#allocation2 + $0x10] sm:$0xff] }
 0x1fa   : > { %v1131_v56 = vmul.f32 %v2058_v30, %v2151_v19 }
 0x1fe   : > { %v1179_v29 = vpop.permute.xlu0 %1178 }
 0x1ff   : > { %1162 = vrot.lane.b32.xlu0 %v1130_v7, %s1670_s21  ;;  %972 = vperm.xlu1 %1627, %v1924_v9   ;;  %v1003_v21 = vpop.permute.xlu1 %1002  ;;  %v1218_v0 = vadd.f32 %v1179_v29, %v1058_v60  ;;  %v1235_v7 = vld [vmem:[%s1778_s15 + $0x8] sm:$0xff] }
 0x200   : > { %1170 = vrot.lane.b32.xlu2 %v1134_v58, %s1670_s21  ;;  %v1056_v44 = vmul.f32 %v1003_v21, %v2066_v36  ;;  %v1236_v58 = vld [vmem:[%s1778_s15 + $0x10] sm:$0xff] }
 0x207   : > { %v1175_v9 = vpop.permute.xlu1 %1174 }
 0x208   : > { %977 = vperm.xlu2 %1631, %v1933_v22   ;;  %v998_v22 = vpop.permute.xlu0 %997 }
 0x209   : > { %v1055_v52 = vmul.f32 %v998_v22, %v2104_v63 }
 0x20f   : > { %v1048_v34 = vpop.permute.xlu1 %1047 }
 0x210   : > { %1164 = vrot.lane.b32.xlu2 %v1131_v56, %s1670_s21  ;;  %v1065_v14 = vmul.f32 %v1048_v34, %v830_v10  ;;  %v1239_v56 = vld [vmem:[%s1778_s15 + $0x28] sm:$0xff] }
 0x211   : > { %v1183_v33 = vpop.permute.xlu2 %1182 }
 0x212   : > { %v1220_v59 = vadd.f32 %v1183_v33, %v1060_v51  ;;  %v1229_v33 = vld [vmem:[#allocation2 + $0x18] sm:$0xff] }
 0x217   : > { %v1181_v37 = vpop.permute.xlu1 %1180 }
 0x23b   : > { %v1187_v38 = vpop.permute.xlu1 %1186 }
 0x23c   : > { %v1222_v48 = vadd.f32 %v1187_v38, %v1062_v2 }
 0x249   : > { %v1185_v6 = vpop.permute.xlu0 %1184 }
 0x24a   : > { %v1191_v28 = vpop.permute.xlu2 %1190  ;;  %v1221_v54 = vadd.f32 %v1185_v6, %v2092_v50  ;;  %v1216_v50 = vadd.f32 %v1175_v9, %v1056_v44 }
 0x24b   : > { %v1224_v24 = vadd.f32 %v1191_v28, %v2099_v61  ;;  %v1219_v61 = vadd.f32 %v1181_v37, %v1059_v57  ;;  %v1230_v28 = vld [vmem:[#allocation2 + $0x20] sm:$0xff] }
 0x251   : > { %v1173_v39 = vpop.permute.xlu0 %1172 }
 0x252   : > { %v993_v30 = vpop.permute.xlu2 %992  ;;  %v1215_v31 = vadd.f32 %v1173_v39, %v1055_v52 }
 0x253   : > { %v1054_v10 = vmul.f32 %v993_v30, %v2139_v45  ;;  %v1231_v30 = vld [vmem:[#allocation2 + $0x28] sm:$0xff] }
 0x259   : > { %v1189_v40 = vpop.permute.xlu1 %1188  ;;  %v1193_v42 = vpop.permute.xlu0 %1192 }
 0x25a   : > { %v1225_v3 = vadd.f32 %v1193_v42, %v1065_v14  ;;  %v1223_v46 = vadd.f32 %v1189_v40, %v1063_v43  ;;  %v1171_v47 = vpop.permute.xlu2 %1170  ;;  %v1232_v42 = vld [vmem:[#allocation2 + $0x30] sm:$0xff] }
 0x25b   : > { %v1214_v13 = vadd.f32 %v1171_v47, %v1054_v10 }
 0x25c   : > { %1242 = vmatpush.msra.mxu2 %v1225_v3 }
 0x25e   : > { %1243 = vmatpush.msra.mxu2 %v1224_v24  ;;  %v1233_v24 = vld [vmem:[#allocation2 + $0x38] sm:$0xff] }
 0x260   : > { %1244 = vmatpush.msra.mxu2 %v1223_v46 }
 0x261   : > { %v988_v49 = vpop.permute.xlu1 %987  ;;  %v983_v55 = vpop.permute.xlu0 %982 }
 0x262   : > { %1245 = vmatpush.msra.mxu2 %v1222_v48  ;;  %v978_v1 = vpop.permute.xlu2 %977  ;;  %v1053_v12 = vmul.f32 %v988_v49, %v2123_v53  ;;  %v1052_v17 = vmul.f32 %v983_v55, %v2119_v4  ;;  %v1234_v4 = vld [vmem:[%s1778_s15] sm:$0xff] }
 0x263   : > { %v1051_v63 = vmul.f32 %v978_v1, %v2151_v19  ;;  %v1237_v19 = vld [vmem:[%s1778_s15 + $0x18] sm:$0xff] }
 0x264   : > { %1246 = vmatpush.msra.mxu2 %v1221_v54 }
 0x266   : > { %1247 = vmatpush.msra.mxu2 %v1220_v59 }
 0x268   : > { %1248 = vmatpush.msra.mxu2 %v1219_v61 }
 0x269   : > { %v1169_v2 = vpop.permute.xlu1 %1168  ;;  %v1167_v41 = vpop.permute.xlu0 %1166 }
 0x26a   : > { %1249 = vmatpush.msra.mxu2 %v1218_v0  ;;  %v1213_v36 = vadd.f32 %v1169_v2, %v1053_v12  ;;  %v1165_v15 = vpop.permute.xlu2 %1164  ;;  %v1212_v20 = vadd.f32 %v1167_v41, %v1052_v17 }
 0x26b   : > { %v1211_v25 = vadd.f32 %v1165_v15, %v1051_v63 }
 0x26c   : > { %1250 = vmatpush.msra.mxu2 %v1217_v8 }
 0x26e   : > { %1251 = vmatpush.msra.mxu2 %v1216_v50 }
 0x270   : > { %1252 = vmatpush.msra.mxu2 %v1215_v31 }
 0x271   : > { %v973_v16 = vpop.permute.xlu1 %972  ;;  %v1163_v53 = vpop.permute.xlu0 %1162 }
 0x272   : > { %1253 = vmatpush.msra.mxu2 %v1214_v13  ;;  %v1050_v23 = vmul.f32 %v973_v16, %v2135_v35  ;;  %v1238_v35 = vld [vmem:[%s1778_s15 + $0x20] sm:$0xff] }
 0x274   : > { %1254 = vmatpush.msra.mxu2 %v1213_v36  ;;  %v1210_v45 = vadd.f32 %v1163_v53, %v1050_v23 }
 0x276   : > { %1255 = vmatpush.msra.mxu2 %v1212_v20 }
 0x278   : > { %1256 = vmatpush.msra.mxu2 %v1211_v25 }
 0x27a   : > { %1257 = vmatpush.msra.mxu2 %v1210_v45 }
 0x27b   : > { %1258 = vmatmul.f32.vlgmr.msra.gmra.mxu2 %v1234_v4 }
 0x283   : > { %1261 = vmatmul.f32.gmra.mxu2 %v1235_v7 }
 0x28b   : > { %1264 = vmatmul.f32.gmra.mxu2 %v1236_v58 }
 0x293   : > { %1267 = vmatmul.f32.gmra.mxu2 %v1237_v19 }
 0x29b   : > { %1270 = vmatmul.f32.gmra.mxu2 %v1238_v35 }
 0x2a3   : > { %1273 = vmatmul.f32.gmra.mxu2 %v1239_v56 }
 0x2ab   : > { %1276 = vmatmul.f32.gmra.mxu2 %v1240_v5 }
 0x2b3   : > { %1279 = vmatmul.f32.gmra.mxu2 %v1241_v11 }
 0x2fe   : > { %v1259_v21 = vpop.f32.mrf.mxu2 }
 0x2ff   : > { %v1283_v26 = vadd.f32 %v1259_v21, %v1226_v18 }
 0x301   : > { %1292 = vst.msk [vmem:[#allocation2] sm:$0xff] %vm1291_vm3, %v1283_v26 }
 0x306   : > { %v1262_v9 = vpop.f32.mrf.mxu2 }
 0x307   : > { %v1284_v29 = vadd.f32 %v1262_v9, %v1227_v27 }
 0x309   : > { %1293 = vst.msk [vmem:[#allocation2 + $0x8] sm:$0xff] %vm1291_vm3, %v1284_v29 }
 0x30e   : > { %v1265_v34 = vpop.f32.mrf.mxu2 }
 0x30f   : > { %v1285_v22 = vadd.f32 %v1265_v34, %v1228_v32 }
 0x311   : > { %1294 = vst.msk [vmem:[#allocation2 + $0x10] sm:$0xff] %vm1291_vm3, %v1285_v22 }
 0x316   : > { %v1268_v37 = vpop.f32.mrf.mxu2 }
 0x317   : > { %v1286_v6 = vadd.f32 %v1268_v37, %v1229_v33 }
 0x319   : > { %1295 = vst.msk [vmem:[#allocation2 + $0x18] sm:$0xff] %vm1291_vm3, %v1286_v6 }
 0x31e   : > { %v1271_v38 = vpop.f32.mrf.mxu2 }
 0x31f   : > { %v1287_v39 = vadd.f32 %v1271_v38, %v1230_v28 }
 0x321   : > { %1296 = vst.msk [vmem:[#allocation2 + $0x20] sm:$0xff] %vm1291_vm3, %v1287_v39 }
 0x326   : > { %v1274_v14 = vpop.f32.mrf.mxu2 }
 0x327   : > { %v1288_v40 = vadd.f32 %v1274_v14, %v1231_v30 }
 0x329   : > { %1297 = vst.msk [vmem:[#allocation2 + $0x28] sm:$0xff] %vm1291_vm3, %v1288_v40 }
 0x32e   : > { %v1277_v3 = vpop.f32.mrf.mxu2 }
 0x32f   : > { %v1289_v43 = vadd.f32 %v1277_v3, %v1232_v42 }
 0x331   : > { %1298 = vst.msk [vmem:[#allocation2 + $0x30] sm:$0xff] %vm1291_vm3, %v1289_v43 }
 0x335   : > { %1303 = sbr.rel (%p1557_p10) target bundleno = 996 (0x3e4), region = 106 }
 0x336   : > { %v1280_v46 = vpop.f32.mrf.mxu2 }
 0x337   : > { %v1290_v47 = vadd.f32 %v1280_v46, %v1233_v24 }
 0x339   : > { %1299 = vst.msk [vmem:[#allocation2 + $0x38] sm:$0xff] %vm1291_vm3, %v1290_v47 }
 0x33a   : > { %v1308_v48 = vld [vmem:[%s2291_s3 + $0x20] sm:$0xff]  ;;  %v1306_v49 = vld [vmem:[%s2291_s3 + $0x10] sm:$0xff]  ;;  %v1671_v54 = vmov 0   ;;  %v1309_v55 = vld [vmem:[%s2291_s3 + $0x28] sm:$0xff]  ;;  %v1672_v62 = vmov 1  }
 0x33b   : > { %v1304_v51 = vld [vmem:[%s2291_s3] sm:$0xff]  ;;  %1638 = vset.pattern.permute.xlu2 %v1671_v54  ;;  %1637 = vset.pattern.permute.xlu1 %v1671_v54  ;;  %v1307_v57 = vld [vmem:[%s2291_s3 + $0x18] sm:$0xff]  ;;  %v1305_v59 = vld [vmem:[%s2291_s3 + $0x8] sm:$0xff] }
 0x33c   : > { %1636 = vset.pattern.permute.xlu0 %v1671_v54  ;;  %1335 = vperm.xlu2 %1638, %v1308_v48   ;;  %v1311_v60 = vld [vmem:[%s2291_s3 + $0x38] sm:$0xff]  ;;  %v1310_v61 = vld [vmem:[%s2291_s3 + $0x30] sm:$0xff]  ;;  %v1312_v8 = vld [vmem:[%s2296_s8] sm:$0x3] }
 0x33d   : > { %1325 = vperm.xlu1 %1637, %v1306_v49   ;;  %1315 = vperm.xlu0 %1636, %v1304_v51   ;;  %v2213_v44 = vperm.slane %v1312_v8, 1  ;;  %v2215_v50 = vperm.slane %v1312_v8, 0  ;;  %v1411_v12 = vld [vmem:[#allocation2] sm:$0xff]  ;;  %v1414_v7 = vld [vmem:[#allocation2 + $0x18] sm:$0xff]  ;;  %v1416_v35 = vld [vmem:[#allocation2 + $0x28] sm:$0xff] }
 0x33e   : > { %v2222_v16 = vld [vmem:[%s2297_s9] ss:$0 sm:$0xff]  ;;  %v1413_v6 = vld [vmem:[#allocation2 + $0x10] sm:$0xff]  ;;  %v1412_v39 = vld [vmem:[#allocation2 + $0x8] sm:$0xff] }
 0x33f   : > { %v1415_v54 = vld [vmem:[#allocation2 + $0x20] sm:$0xff] }
 0x344   : > { %1340 = vperm.xlu2 %1638, %v1309_v55  }
 0x345   : > { %1330 = vperm.xlu1 %1637, %v1307_v57   ;;  %1320 = vperm.xlu0 %1636, %v1305_v59  }
 0x34c   : > { %1639 = vset.pattern.permute.xlu2 %v1672_v62 }
 0x34d   : > { %1350 = vperm.xlu1 %1637, %v1311_v60   ;;  %1345 = vperm.xlu0 %1636, %v1310_v61  }
 0x34e   : > { %1363 = vperm.xlu2 %1639, %v1304_v51  }
 0x355   : > { %1641 = vset.pattern.permute.xlu1 %v1672_v62  ;;  %1640 = vset.pattern.permute.xlu0 %v1672_v62 }
 0x356   : > { %1371 = vperm.xlu1 %1641, %v1306_v49   ;;  %1375 = vperm.xlu2 %1639, %v1307_v57  }
 0x357   : > { %1367 = vperm.xlu0 %1640, %v1305_v59   ;;  %v1417_v59 = vld [vmem:[#allocation2 + $0x30] sm:$0xff] }
 0x35e   : > { %1379 = vperm.xlu1 %1641, %v1308_v48   ;;  %1383 = vperm.xlu2 %1639, %v1309_v55  }
 0x35f   : > { %1387 = vperm.xlu0 %1640, %v1310_v61  }
 0x366   : > { %1391 = vperm.xlu1 %1641, %v1311_v60  }
 0x396   : > { %v1336_v0 = vpop.permute.xlu2 %1335 }
 0x397   : > { %v1358_v24 = vmul.f32 %v2215_v50, %v1336_v0 }
 0x39e   : > { %v1341_v1 = vpop.permute.xlu2 %1340 }
 0x39f   : > { %v1359_v20 = vmul.f32 %v2215_v50, %v1341_v1 }
 0x3a8   : > { %v1364_v2 = vpop.permute.xlu2 %1363 }
 0x3a9   : > { %v1395_v52 = vmul.f32 %v2213_v44, %v1364_v2 }
 0x3af   : > { %v1326_v41 = vpop.permute.xlu1 %1325  ;;  %v1316_v10 = vpop.permute.xlu0 %1315 }
 0x3b0   : > { %v1354_v31 = vmul.f32 %v2215_v50, %v1316_v10  ;;  %v1376_v13 = vpop.permute.xlu2 %1375  ;;  %v1356_v34 = vmul.f32 %v2215_v50, %v1326_v41 }
 0x3b1   : > { %v1398_v63 = vmul.f32 %v2213_v44, %v1376_v13 }
 0x3b2   : > { %v1403_v17 = vadd.f32 %v1395_v52, %v1354_v31  ;;  %v1418_v31 = vld [vmem:[#allocation2 + $0x38] sm:$0xff] }
 0x3b4   : > { %v1419_v36 = vadd.f32 %v1411_v12, %v1403_v17 }
 0x3b6   : > { %v1431_v15 = vadd.f32 %v2222_v16, %v1419_v36 }
 0x3b7   : > { %v1331_v23 = vpop.permute.xlu1 %1330  ;;  %v1321_v25 = vpop.permute.xlu0 %1320 }
 0x3b8   : > { %v1439_v53 = vmax.f32 %v1431_v15, 0.0  ;;  %v1357_v45 = vmul.f32 %v2215_v50, %v1331_v23  ;;  %v1384_v4 = vpop.permute.xlu2 %1383  ;;  %v1355_v37 = vmul.f32 %v2215_v50, %v1321_v25 }
 0x3b9   : > { %v1400_v58 = vmul.f32 %v2213_v44, %v1384_v4 }
 0x3ba   : > { %1447 = vst.msk [vmem:[%s2298_s10] sm:$0xff] %vm1291_vm3, %v1439_v53  ;;  %v1406_v19 = vadd.f32 %v1398_v63, %v1357_v45 }
 0x3bb   : > { %v1408_v56 = vadd.f32 %v1400_v58, %v1359_v20 }
 0x3bc   : > { %v1422_v5 = vadd.f32 %v1414_v7, %v1406_v19 }
 0x3bd   : > { %v1424_v11 = vadd.f32 %v1416_v35, %v1408_v56 }
 0x3be   : > { %v1434_v18 = vadd.f32 %v2222_v16, %v1422_v5 }
 0x3bf   : > { %v1436_v21 = vadd.f32 %v2222_v16, %v1424_v11  ;;  %v1351_v26 = vpop.permute.xlu1 %1350  ;;  %v1346_v27 = vpop.permute.xlu0 %1345 }
 0x3c0   : > { %v1442_v9 = vmax.f32 %v1434_v18, 0.0  ;;  %v1360_v49 = vmul.f32 %v2215_v50, %v1346_v27  ;;  %v1361_v8 = vmul.f32 %v2215_v50, %v1351_v26 }
 0x3c1   : > { %v1444_v29 = vmax.f32 %v1436_v21, 0.0 }
 0x3c2   : > { %1450 = vst.msk [vmem:[%s2298_s10 + $0x18] sm:$0xff] %vm1291_vm3, %v1442_v9 }
 0x3c3   : > { %1452 = vst.msk [vmem:[%s2298_s10 + $0x28] sm:$0xff] %vm1291_vm3, %v1444_v29 }
 0x3c8   : > { %v1372_v32 = vpop.permute.xlu1 %1371 }
 0x3c9   : > { %v1397_v22 = vmul.f32 %v2213_v44, %v1372_v32  ;;  %v1368_v33 = vpop.permute.xlu0 %1367 }
 0x3ca   : > { %v1396_v28 = vmul.f32 %v2213_v44, %v1368_v33 }
 0x3cb   : > { %v1405_v38 = vadd.f32 %v1397_v22, %v1356_v34 }
 0x3cc   : > { %v1404_v30 = vadd.f32 %v1396_v28, %v1355_v37 }
 0x3cd   : > { %v1421_v14 = vadd.f32 %v1413_v6, %v1405_v38 }
 0x3ce   : > { %v1420_v40 = vadd.f32 %v1412_v39, %v1404_v30 }
 0x3cf   : > { %v1433_v42 = vadd.f32 %v2222_v16, %v1421_v14 }
 0x3d0   : > { %v1432_v3 = vadd.f32 %v2222_v16, %v1420_v40  ;;  %v1380_v43 = vpop.permute.xlu1 %1379 }
 0x3d1   : > { %v1441_v46 = vmax.f32 %v1433_v42, 0.0  ;;  %v1399_v47 = vmul.f32 %v2213_v44, %v1380_v43  ;;  %v1388_v48 = vpop.permute.xlu0 %1387 }
 0x3d2   : > { %v1440_v51 = vmax.f32 %v1432_v3, 0.0  ;;  %v1401_v55 = vmul.f32 %v2213_v44, %v1388_v48 }
 0x3d3   : > { %1449 = vst.msk [vmem:[%s2298_s10 + $0x10] sm:$0xff] %vm1291_vm3, %v1441_v46  ;;  %v1407_v57 = vadd.f32 %v1399_v47, %v1358_v24 }
 0x3d4   : > { %1448 = vst.msk [vmem:[%s2298_s10 + $0x8] sm:$0xff] %vm1291_vm3, %v1440_v51  ;;  %v1409_v60 = vadd.f32 %v1401_v55, %v1360_v49 }
 0x3d5   : > { %v1423_v61 = vadd.f32 %v1415_v54, %v1407_v57 }
 0x3d6   : > { %v1425_v62 = vadd.f32 %v1417_v59, %v1409_v60 }
 0x3d7   : > { %v1435_v0 = vadd.f32 %v2222_v16, %v1423_v61 }
 0x3d8   : > { %v1437_v1 = vadd.f32 %v2222_v16, %v1425_v62  ;;  %v1392_v2 = vpop.permute.xlu1 %1391 }
 0x3d9   : > { %v1443_v52 = vmax.f32 %v1435_v0, 0.0  ;;  %v1402_v41 = vmul.f32 %v2213_v44, %v1392_v2 }
 0x3da   : > { %v1445_v10 = vmax.f32 %v1437_v1, 0.0 }
 0x3db   : > { %1451 = vst.msk [vmem:[%s2298_s10 + $0x20] sm:$0xff] %vm1291_vm3, %v1443_v52  ;;  %v1410_v13 = vadd.f32 %v1402_v41, %v1361_v8 }
 0x3dc   : > { %1453 = vst.msk [vmem:[%s2298_s10 + $0x30] sm:$0xff] %vm1291_vm3, %v1445_v10 }
 0x3dd   : > { %v1426_v12 = vadd.f32 %v1418_v31, %v1410_v13 }
 0x3df   : > { %v1438_v17 = vadd.f32 %v2222_v16, %v1426_v12 }
 0x3e1   : > { %v1446_v50 = vmax.f32 %v1438_v17, 0.0 }
 0x3e3   : > { %1454 = vst.msk [vmem:[%s2298_s10 + $0x38] sm:$0xff] %vm1291_vm3, %v1446_v50 }
 0x3e4 PF: > { %p17_p11 = scmp.ge.s32.totalorder %s1747_s17, 4   ;;  %s2299_s13 = smov %s1661_s14 }
 0x3e5   : > { %s2300_s14 = smov %s1756_s20  ;;  %s2301_s15 = smov %s1747_s17 }
 0x3e6   :  { %19 = sbr.rel (!%p17_p11) target bundleno = 2 (0x2), region = 143 }

// kernel: net_mp_forward.3
= control target key start
LH: loop header
LB: loop body
LE: loop exit
PB: predicated region body
PF: predicated region fallthrough
CT: control target
= control target key end

     0   :  { %s6347_s0 = inlined_call_operand.vmem [shape: f32[256,2], index: 0, kind: input, shape index: {}]   ;;  %s6348_s1 = inlined_call_operand.vmem [shape: f32[256,64], index: 1, kind: input, shape index: {}]   ;;  %s6349_s2 = inlined_call_operand.vmem [shape: f32[64,256], index: 2, kind: input, shape index: {}]   ;;  %s6350_s3 = inlined_call_operand.vmem [shape: f32[64,32], index: 3, kind: input, shape index: {}]   ;;  %s6351_s4 = inlined_call_operand.vmem [shape: f32[2,16], index: 4, kind: input, shape index: {}]   ;;  %s6352_s5 = inlined_call_operand.vmem [shape: f32[1,16], index: 5, kind: input, shape index: {}]   ;;  %s6353_s6 = inlined_call_operand.vmem [shape: f32[16,1024], index: 6, kind: input, shape index: {}]   ;;  %s6354_s7 = inlined_call_operand.vmem [shape: f32[1,1024], index: 7, kind: input, shape index: {}]   ;;  %s6355_s8 = inlined_call_operand.vmem [shape: f32[32,1024], index: 8, kind: input, shape index: {}]   ;;  %s6356_s9 = inlined_call_operand.vmem [shape: f32[1024,32], index: 9, kind: input, shape index: {}]   ;;  %s6357_s10 = inlined_call_operand.vmem [shape: f32[32,32], index: 10, kind: input, shape index: {}]   ;;  %s6358_s11 = inlined_call_operand.vmem [shape: f32[1,32], index: 11, kind: input, shape index: {}]   ;;  %s6359_s12 = inlined_call_operand.vmem [shape: f32[32,32], index: 12, kind: input, shape index: {}]   ;;  %s6360_s13 = inlined_call_operand.vmem [shape: f32[1,32], index: 13, kind: input, shape index: {}]   ;;  %s6361_s14 = inlined_call_operand.vmem [shape: f32[32,2], index: 14, kind: input, shape index: {}]   ;;  %s6362_s15 = inlined_call_operand.vmem [shape: f32[1,2], index: 15, kind: input, shape index: {}]   ;;  %s6363_s16 = inlined_call_operand.vmem [shape: f32[64,2], index: 16, kind: output, shape index: {}]  }
   0x1   :  { %6366 = sst [smem:[#allocation136_spill]] %s6347_s0 }
   0x2   :  { %6367 = sst [smem:[#allocation137_spill]] %s6349_s2 }
   0x3   :  { %s3893_s21 = smov 0   ;;  %s3895_s22 = smov 0  }
   0x4   :  { %s3897_s23 = smov 0  }
   0x5 LB: > { %s3909_s24 = sadd.s32 4294967295, %s3803_s23   ;;  %s3912_s25 = sadd.s32 1, %s3803_s23   ;;  %s3803_s23 = sphi %s3897_s23, %s6676_s23   ;;  %s3799_s22 = sphi %s3895_s22, %s6675_s22   ;;  %s3795_s21 = sphi %s3893_s21, %s6674_s21  }
   0x6   : > { %s82_s26 = ssub.s32 %s3803_s23, %s3912_s25  ;;  %s85_s27 = sadd.s32 1, %s3799_s22 }
   0x7   : > { %p83_p0 = scmp.eq.s32.totalorder %s82_s26, 0  ;;  %p92_p1 = scmp.ne.s32.totalorder %s3799_s22, %s3795_s21 }
   0x8   : > { %p93_p2 = scmp.eq.s32.totalorder %s3803_s23, 0  ;;  %p3405_p4 = scmp.ge.s32.totalorder %s3803_s23, 2 }
   0x9   : > { %s3921_s28 = scalar_select %p83_p0, %s3799_s22, %s85_s27  }
   0xa   : > { %p94_p3 = por %p93_p2, %p92_p1  ;;  %451 = sbr.rel (%p3405_p4) target bundleno = 33 (0x21), region = 68 }
   0xb   : > { %6368 = sst [smem:[#allocation4_spill]] %s3921_s28 }
   0xf   : > { %472 = sbr.rel (!%p94_p3) target bundleno = 33 (0x21), region = 80  ;;  %s474_s29 = sand.u32 (%p94_p3), 1, %s3799_s22  }
  0x10   : > { %s3407_s30 = sshll.u32 (%p94_p3), %s3803_s23, 3  ;;  %s3406_s0 = sshll.u32 (%p94_p3), %s474_s29, 6 }
  0x11   : > { %s6369_s2 = sld [smem:[#allocation137_spill]] (%p94_p3)  ;;  %s476_s20 = scalar_lea.vmem (%p94_p3), [#allocation3], %s3406_s0 }
  0x17   : > { %s478_s19 = scalar_lea.vmem %s6369_s2, %s3407_s30 }
  0x18   : > { %v521_v0 = vld [vmem:[%s478_s19] sm:$0xff]  ;;  %v523_v1 = vld [vmem:[%s478_s19 + $0x10] sm:$0xff] }
  0x19   : > { %v525_v2 = vld [vmem:[%s478_s19 + $0x20] sm:$0xff]  ;;  %522 = vst [vmem:[%s476_s20] sm:$0xff] %v521_v0  ;;  %v527_v3 = vld [vmem:[%s478_s19 + $0x30] sm:$0xff] }
  0x1a   : > { %524 = vst [vmem:[%s476_s20 + $0x8] sm:$0xff] %v523_v1  ;;  %v529_v4 = vld [vmem:[%s478_s19 + $0x40] sm:$0xff]  ;;  %v531_v5 = vld [vmem:[%s478_s19 + $0x50] sm:$0xff] }
  0x1b   : > { %526 = vst [vmem:[%s476_s20 + $0x10] sm:$0xff] %v525_v2  ;;  %v533_v6 = vld [vmem:[%s478_s19 + $0x60] sm:$0xff]  ;;  %v535_v7 = vld [vmem:[%s478_s19 + $0x70] sm:$0xff] }
  0x1c   : > { %528 = vst [vmem:[%s476_s20 + $0x18] sm:$0xff] %v527_v3 }
  0x1d   : > { %530 = vst [vmem:[%s476_s20 + $0x20] sm:$0xff] %v529_v4 }
  0x1e   : > { %532 = vst [vmem:[%s476_s20 + $0x28] sm:$0xff] %v531_v5 }
  0x1f   : > { %534 = vst [vmem:[%s476_s20 + $0x30] sm:$0xff] %v533_v6 }
  0x20   : > { %536 = vst [vmem:[%s476_s20 + $0x38] sm:$0xff] %v535_v7 }
  0x21 PF: > { %p3408_p5 = scmp.ge.s32.totalorder %s3803_s23, 1  ;;  %p541_p6 = scmp.lt.s32.totalorder %s3803_s23, 3 }
  0x23   : > { %p542_p7 = pnand %p3408_p5, %p541_p6 }
  0x25   : > { %545 = sbr.rel (%p542_p7) target bundleno = 1852 (0x73c), region = 118 }
  0x2a   : > { %s548_s26 = sand.u32 1, %s3795_s21   ;;  %s3410_s27 = sshll.u32 %s3909_s24, 4 }
  0x2b   : > { %s3409_s29 = sshll.u32 %s548_s26, 6  ;;  %p603_p8 = scmp.lt.s32.totalorder %s3410_s27, 31 }
  0x2c   : > { %s6370_s18 = sld [smem:[#allocation136_spill]]  ;;  %s3943_s23 = scalar_lea.vmem [#allocation3], %s3409_s29 }
  0x2d   : > { %s6678_s27 = smov (!%p603_p8, %s3410_s27), 31  ;;  %p3414_p9 = scmp.ne.s32.totalorder %s3909_s24, 0 }
  0x2e   : > { %s3411_s30 = sshll.u32 %s6678_s27, 3 }
  0x2f   : > { %s3941_s28 = scalar_lea.vmem %s6348_s1, %s3411_s30  ;;  %617 = sbr.rel (%p3414_p9) target bundleno = 61 (0x3d), region = 126 }
  0x32   : > { %s3936_s19 = scalar_lea.vmem %s6370_s18, %s3411_s30 }
  0x34   : > { %vm618_vm0 = vcmask 261120   ;;  %v3805_v8 = vmov 0.0  }
  0x35   : > { %619 = vst.msk [vmem:[#allocation2] sm:$0xff] %vm618_vm0, %v3805_v8 }
  0x36   : > { %620 = vst.msk [vmem:[#allocation2 + $0x8] sm:$0xff] %vm618_vm0, %v3805_v8 }
  0x37   : > { %621 = vst.msk [vmem:[#allocation2 + $0x10] sm:$0xff] %vm618_vm0, %v3805_v8 }
  0x38   : > { %622 = vst.msk [vmem:[#allocation2 + $0x18] sm:$0xff] %vm618_vm0, %v3805_v8 }
  0x39   : > { %623 = vst.msk [vmem:[#allocation2 + $0x20] sm:$0xff] %vm618_vm0, %v3805_v8 }
  0x3a   : > { %624 = vst.msk [vmem:[#allocation2 + $0x28] sm:$0xff] %vm618_vm0, %v3805_v8 }
  0x3b   : > { %625 = vst.msk [vmem:[#allocation2 + $0x30] sm:$0xff] %vm618_vm0, %v3805_v8 }
  0x3c   : > { %626 = vst.msk [vmem:[#allocation2 + $0x38] sm:$0xff] %vm618_vm0, %v3805_v8 }
  0x3d PF: > { %v633_v9 = vld [vmem:[%s3936_s19 + $0x30] sm:$0xff]  ;;  %v627_v10 = vld [vmem:[%s3936_s19] sm:$0xff]  ;;  %v3806_v11 = vmov 1   ;;  %v3807_v12 = vmov 0   ;;  %v634_v14 = vld [vmem:[%s3936_s19 + $0x38] sm:$0xff]  ;;  %vm908_vm1 = vcmask 130048  }
  0x3e   : > { %3759 = vset.pattern.permute.xlu0 %v3806_v11  ;;  %3761 = vset.pattern.permute.xlu1 %v3807_v12  ;;  %v639_v13 = vld [vmem:[%s3936_s19 + $0x60] sm:$0xff]  ;;  %v628_v15 = vld [vmem:[%s3936_s19 + $0x8] sm:$0xff]  ;;  %v629_v19 = vld [vmem:[%s3936_s19 + $0x10] sm:$0xff]  ;;  %vm1501_vm2 = vcmask 523264   ;;  %vm1647_vm3 = vcmask 261120   ;;  %p3687_p10 = scmp.ne.s32.totalorder %s3909_s24, 1 }
  0x3f   : > { %766 = vperm.xlu0 %3759, %v633_v9   ;;  %646 = vperm.xlu1 %3761, %v627_v10   ;;  %v640_v16 = vld [vmem:[%s3936_s19 + $0x68] sm:$0xff]  ;;  %v635_v18 = vld [vmem:[%s3936_s19 + $0x40] sm:$0xff]  ;;  %v642_v20 = vld [vmem:[%s3936_s19 + $0x78] sm:$0xff] }
  0x40   : > { %3762 = vset.pattern.permute.xlu2 %v3806_v11  ;;  %v636_v17 = vld [vmem:[%s3936_s19 + $0x48] sm:$0xff]  ;;  %v641_v21 = vld [vmem:[%s3936_s19 + $0x70] sm:$0xff]  ;;  %v630_v22 = vld [vmem:[%s3936_s19 + $0x18] sm:$0xff] }
  0x41   : > { %742 = vperm.xlu2 %3762, %v627_v10   ;;  %v638_v23 = vld [vmem:[%s3936_s19 + $0x58] sm:$0xff]  ;;  %v637_v24 = vld [vmem:[%s3936_s19 + $0x50] sm:$0xff]  ;;  %v631_v25 = vld [vmem:[%s3936_s19 + $0x20] sm:$0xff] }
  0x42   : > { %v882_v26 = vld [vmem:[%s6353_s6 + $0x40] sm:$0xff]  ;;  %v883_v27 = vld [vmem:[%s6353_s6 + $0x48] sm:$0xff] }
  0x43   : > { %971 = vmatpush.msra.mxu0 %v882_v26  ;;  %1036 = vmatpush.msra.mxu1 %v883_v27  ;;  %v874_v28 = vld [vmem:[%s6353_s6] sm:$0xff]  ;;  %v875_v29 = vld [vmem:[%s6353_s6 + $0x8] sm:$0xff] }
  0x44   : > { %3715 = vmatpush.msra.mxu3 %v882_v26  ;;  %3714 = vmatpush.msra.mxu2 %v882_v26  ;;  %v632_v31 = vld [vmem:[%s3936_s19 + $0x28] sm:$0xff]  ;;  %v643_v33 = vld [vmem:[%s6351_s4] sm:$0x3] }
  0x45   : > { %972 = vmatpush.msra.mxu0 %v874_v28  ;;  %1037 = vmatpush.msra.mxu1 %v875_v29  ;;  %v3994_v35 = vperm.slane %v643_v33, 1  ;;  %v3996_v36 = vperm.slane %v643_v33, 0  ;;  %v4002_v40 = vld [vmem:[%s6352_s5] ss:$0 sm:$0xff] }
  0x46   : > { %3717 = vmatpush.msra.mxu3 %v874_v28  ;;  %3716 = vmatpush.msra.mxu2 %v874_v28 }
  0x47   : > { %3760 = vset.pattern.permute.xlu0 %v3807_v12  ;;  %706 = vperm.xlu1 %3761, %v639_v13  }
  0x48   : > { %676 = vperm.xlu0 %3760, %v633_v9   ;;  %3718 = vmatpush.msrb.mxu3 %v883_v27 }
  0x49   : > { %790 = vperm.xlu2 %3762, %v639_v13  }
  0x4a   : > { %3719 = vmatpush.msrb.mxu3 %v875_v29 }
  0x4f   : > { %681 = vperm.xlu1 %3761, %v634_v14  }
  0x50   : > { %651 = vperm.xlu0 %3760, %v628_v15  }
  0x51   : > { %770 = vperm.xlu2 %3762, %v634_v14  }
  0x57   : > { %711 = vperm.xlu1 %3761, %v640_v16  }
  0x58   : > { %691 = vperm.xlu0 %3760, %v636_v17  }
  0x59   : > { %746 = vperm.xlu2 %3762, %v628_v15  }
  0x5f   : > { %3763 = vset.pattern.permute.xlu1 %v3806_v11 }
  0x60   : > { %794 = vperm.xlu1 %3763, %v640_v16   ;;  %3768 = vset.pattern.permute.xlu0 %v3806_v11 }
  0x61   : > { %774 = vperm.xlu0 %3768, %v635_v18   ;;  %3764 = vset.pattern.permute.xlu2 %v3807_v12 }
  0x62   : > { %686 = vperm.xlu2 %3764, %v635_v18  }
  0x68   : > { %3765 = vset.pattern.permute.xlu1 %v3807_v12 }
  0x69   : > { %656 = vperm.xlu1 %3765, %v629_v19   ;;  %802 = vperm.xlu0 %3768, %v642_v20  }
  0x6a   : > { %716 = vperm.xlu2 %3764, %v641_v21  }
  0x71   : > { %3766 = vset.pattern.permute.xlu1 %v3806_v11  ;;  %3772 = vset.pattern.permute.xlu0 %v3807_v12 }
  0x72   : > { %750 = vperm.xlu1 %3766, %v629_v19   ;;  %3767 = vset.pattern.permute.xlu2 %v3806_v11 }
  0x73   : > { %798 = vperm.xlu2 %3767, %v641_v21   ;;  %701 = vperm.xlu0 %3772, %v638_v23  }
  0x7a   : > { %778 = vperm.xlu1 %3766, %v636_v17  }
  0x7b   : > { %3769 = vset.pattern.permute.xlu2 %v3807_v12  ;;  %3775 = vset.pattern.permute.xlu0 %v3806_v11 }
  0x7c   : > { %661 = vperm.xlu2 %3769, %v630_v22  }
  0x82   : > { %3770 = vset.pattern.permute.xlu1 %v3807_v12 }
  0x83   : > { %721 = vperm.xlu1 %3770, %v642_v20  }
  0x84   : > { %3771 = vset.pattern.permute.xlu2 %v3806_v11 }
  0x85   : > { %754 = vperm.xlu2 %3771, %v630_v22  }
  0x8b   : > { %696 = vperm.xlu1 %3770, %v637_v24  }
  0x8d   : > { %782 = vperm.xlu2 %3771, %v637_v24  }
  0x93   : > { %666 = vperm.xlu1 %3770, %v631_v25  }
  0x95   : > { %758 = vperm.xlu2 %3771, %v631_v25  }
  0x9b   : > { %3773 = vset.pattern.permute.xlu1 %v3806_v11  ;;  %v743_v30 = vpop.permute.xlu2 %742 }
  0x9c   : > { %786 = vperm.xlu1 %3773, %v638_v23   ;;  %v806_v37 = vmul.f32 %v3994_v35, %v743_v30 }
  0x9d   : > { %3774 = vset.pattern.permute.xlu2 %v3807_v12 }
  0x9e   : > { %671 = vperm.xlu2 %3774, %v632_v31  }
  0xa3   : > { %v791_v32 = vpop.permute.xlu2 %790 }
  0xa4   : > { %762 = vperm.xlu1 %3773, %v632_v31   ;;  %v818_v45 = vmul.f32 %v3994_v35, %v791_v32 }
  0xab   : > { %v771_v34 = vpop.permute.xlu2 %770 }
  0xac   : > { %v813_v60 = vmul.f32 %v3994_v35, %v771_v34 }
  0xb1   : > { %v647_v38 = vpop.permute.xlu1 %646  ;;  %v767_v39 = vpop.permute.xlu0 %766 }
  0xb2   : > { %v725_v41 = vmul.f32 %v3996_v36, %v647_v38  ;;  %v812_v47 = vmul.f32 %v3994_v35, %v767_v39 }
  0xb3   : > { %v747_v43 = vpop.permute.xlu2 %746 }
  0xb4   : > { %v822_v42 = vadd.f32 %v806_v37, %v725_v41  ;;  %v807_v63 = vmul.f32 %v3994_v35, %v747_v43 }
  0xb6   : > { %v842_v44 = vadd.f32 %v4002_v40, %v822_v42 }
  0xb8   : > { %v4007_v46 = vmax.f32 %v842_v44, 0.0 }
  0xb9   : > { %v707_v48 = vpop.permute.xlu1 %706 }
  0xba   : > { %v737_v49 = vmul.f32 %v3996_v36, %v707_v48  ;;  %v677_v50 = vpop.permute.xlu0 %676  ;;  %3415 = vmatmul.msk.f32.vlgmr.msra.gmra.mxu0 %vm908_vm1, %v4007_v46  ;;  %3431 = vmatmul.msk.f32.vlgmr.msra.gmra.mxu1 %vm908_vm1, %v4007_v46 }
  0xbb   : > { %v731_v51 = vmul.f32 %v3996_v36, %v677_v50 }
  0xbc   : > { %v834_v52 = vadd.f32 %v818_v45, %v737_v49  ;;  %v687_v53 = vpop.permute.xlu2 %686 }
  0xbd   : > { %v828_v54 = vadd.f32 %v812_v47, %v731_v51  ;;  %v733_v11 = vmul.f32 %v3996_v36, %v687_v53  ;;  %v885_v53 = vld [vmem:[%s6353_s6 + $0x58] sm:$0xff] }
  0xbe   : > { %v854_v55 = vadd.f32 %v4002_v40, %v834_v52 }
  0xbf   : > { %v848_v56 = vadd.f32 %v4002_v40, %v828_v54 }
  0xc0   : > { %v4018_v57 = vmax.f32 %v854_v55, 0.0 }
  0xc1   : > { %v4020_v58 = vmax.f32 %v848_v56, 0.0  ;;  %v682_v59 = vpop.permute.xlu1 %681  ;;  %v877_v56 = vld [vmem:[%s6353_s6 + $0x18] sm:$0xff] }
  0xc2   : > { %v732_v61 = vmul.f32 %v3996_v36, %v682_v59  ;;  %v652_v62 = vpop.permute.xlu0 %651  ;;  %3427 = vmatmul.msk.f32.vlgmr.msra.gmra.mxu3 %vm908_vm1, %v4018_v57 }
  0xc3   : > { %v726_v0 = vmul.f32 %v3996_v36, %v652_v62  ;;  %3421 = vmatmul.msk.f32.vlgmr.msra.gmra.mxu2 %vm908_vm1, %v4020_v58  ;;  %1166 = vmatpush.msra.mxu3 %v885_v53 }
  0xc4   : > { %v829_v1 = vadd.f32 %v813_v60, %v732_v61  ;;  %v717_v4 = vpop.permute.xlu2 %716 }
  0xc5   : > { %v823_v2 = vadd.f32 %v807_v63, %v726_v0  ;;  %v739_v14 = vmul.f32 %v3996_v36, %v717_v4  ;;  %1167 = vmatpush.msra.mxu3 %v877_v56  ;;  %v1497_v56 = vld [vmem:[%s6350_s3 + $0x20] sm:$0xff] }
  0xc6   : > { %v849_v3 = vadd.f32 %v4002_v40, %v829_v1  ;;  %v884_v1 = vld [vmem:[%s6353_s6 + $0x50] sm:$0xff] }
  0xc7   : > { %v843_v5 = vadd.f32 %v4002_v40, %v823_v2  ;;  %1101 = vmatpush.msrb.mxu2 %v884_v1 }
  0xc8   : > { %v4032_v6 = vmax.f32 %v849_v3, 0.0  ;;  %v876_v3 = vld [vmem:[%s6353_s6 + $0x10] sm:$0xff] }
  0xc9   : > { %v4034_v7 = vmax.f32 %v843_v5, 0.0  ;;  %v712_v8 = vpop.permute.xlu1 %711  ;;  %1102 = vmatpush.msrb.mxu2 %v876_v3  ;;  %v1493_v3 = vld [vmem:[%s6350_s3] sm:$0xff] }
  0xca   : > { %v692_v9 = vpop.permute.xlu0 %691  ;;  %v738_v13 = vmul.f32 %v3996_v36, %v712_v8  ;;  %v886_v8 = vld [vmem:[%s6353_s6 + $0x60] sm:$0xff] }
  0xcb   : > { %3416 = vmatmul.msk.f32.gmra.mxu0 %vm908_vm1, %v4034_v7  ;;  %3422 = vmatmul.msk.f32.gmra.mxu2 %vm908_vm1, %v4032_v6  ;;  %v734_v44 = vmul.f32 %v3996_v36, %v692_v9 }
  0xcc   : > { %3432 = vmatmul.msk.f32.gmra.mxu1 %vm908_vm1, %v4034_v7  ;;  %1231 = vmatpush.msrb.mxu0 %v886_v8 }
  0xcd   : > { %v799_v10 = vpop.permute.xlu2 %798 }
  0xce   : > { %v820_v17 = vmul.f32 %v3994_v35, %v799_v10 }
  0xd0   : > { %v836_v22 = vadd.f32 %v820_v17, %v739_v14 }
  0xd2   : > { %v795_v12 = vpop.permute.xlu1 %794  ;;  %v856_v27 = vadd.f32 %v4002_v40, %v836_v22 }
  0xd3   : > { %v819_v15 = vmul.f32 %v3994_v35, %v795_v12  ;;  %v775_v16 = vpop.permute.xlu0 %774 }
  0xd4   : > { %v814_v18 = vmul.f32 %v3994_v35, %v775_v16  ;;  %v4059_v29 = vmax.f32 %v856_v27, 0.0 }
  0xd5   : > { %v835_v19 = vadd.f32 %v819_v15, %v738_v13  ;;  %v878_v15 = vld [vmem:[%s6353_s6 + $0x20] sm:$0xff] }
  0xd6   : > { %v830_v20 = vadd.f32 %v814_v18, %v733_v11  ;;  %v662_v26 = vpop.permute.xlu2 %661  ;;  %1232 = vmatpush.msrb.mxu0 %v878_v15 }
  0xd7   : > { %v855_v21 = vadd.f32 %v4002_v40, %v835_v19  ;;  %v728_v34 = vmul.f32 %v3996_v36, %v662_v26 }
  0xd8   : > { %v850_v23 = vadd.f32 %v4002_v40, %v830_v20 }
  0xd9   : > { %v4050_v24 = vmax.f32 %v855_v21, 0.0 }
  0xda   : > { %v4052_v25 = vmax.f32 %v850_v23, 0.0 }
  0xdb   : > { %3428 = vmatmul.msk.f32.gmra.mxu3 %vm908_vm1, %v4050_v24  ;;  %v657_v28 = vpop.permute.xlu1 %656  ;;  %v803_v51 = vpop.permute.xlu0 %802 }
  0xdc   : > { %3423 = vmatmul.msk.f32.gmra.mxu2 %vm908_vm1, %v4052_v25  ;;  %v727_v32 = vmul.f32 %v3996_v36, %v657_v28  ;;  %v821_v54 = vmul.f32 %v3994_v35, %v803_v51 }
  0xdf   : > { %v755_v31 = vpop.permute.xlu2 %754 }
  0xe0   : > { %v809_v37 = vmul.f32 %v3994_v35, %v755_v31 }
  0xe2   : > { %v825_v41 = vadd.f32 %v809_v37, %v728_v34 }
  0xe3   : > { %3429 = vmatmul.msk.f32.gmra.mxu3 %vm908_vm1, %v4059_v29 }
  0xe4   : > { %v751_v30 = vpop.permute.xlu1 %750  ;;  %v845_v47 = vadd.f32 %v4002_v40, %v825_v41  ;;  %v1500_v41 = vld [vmem:[%s6350_s3 + $0x38] sm:$0xff] }
  0xe5   : > { %v808_v33 = vmul.f32 %v3994_v35, %v751_v30  ;;  %v702_v18 = vpop.permute.xlu0 %701  ;;  %1558 = vmatpush.msra.mxu0 %v1500_v41  ;;  %v1480_v41 = vld [vmem:[%s3941_s28 + $0x18] sm:$0xff] }
  0xe6   : > { %v4078_v50 = vmax.f32 %v845_v47, 0.0  ;;  %v736_v20 = vmul.f32 %v3996_v36, %v702_v18 }
  0xe7   : > { %v824_v38 = vadd.f32 %v808_v33, %v727_v32  ;;  %v783_v61 = vpop.permute.xlu2 %782 }
  0xe8   : > { %v816_v63 = vmul.f32 %v3994_v35, %v783_v61 }
  0xe9   : > { %v844_v39 = vadd.f32 %v4002_v40, %v824_v38  ;;  %v888_v38 = vld [vmem:[%s6353_s6 + $0x70] sm:$0xff] }
  0xea   : > { %1361 = vmatpush.msra.mxu2 %v888_v38 }
  0xeb   : > { %v4068_v42 = vmax.f32 %v844_v39, 0.0  ;;  %v889_v39 = vld [vmem:[%s6353_s6 + $0x78] sm:$0xff] }
  0xec   : > { %v779_v43 = vpop.permute.xlu1 %778 }
  0xed   : > { %v815_v45 = vmul.f32 %v3994_v35, %v779_v43  ;;  %3417 = vmatmul.msk.f32.gmra.mxu0 %vm908_vm1, %v4068_v42  ;;  %3433 = vmatmul.msk.f32.gmra.mxu1 %vm908_vm1, %v4068_v42 }
  0xef   : > { %v831_v48 = vadd.f32 %v815_v45, %v734_v44  ;;  %v759_v10 = vpop.permute.xlu2 %758  ;;  %v881_v45 = vld [vmem:[%s6353_s6 + $0x38] sm:$0xff] }
  0xf0   : > { %v810_v13 = vmul.f32 %v3994_v35, %v759_v10 }
  0xf1   : > { %v851_v49 = vadd.f32 %v4002_v40, %v831_v48  ;;  %v1499_v48 = vld [vmem:[%s6350_s3 + $0x30] sm:$0xff] }
  0xf2   : > { %1559 = vmatpush.msra.mxu0 %v1499_v48 }
  0xf3   : > { %v4080_v52 = vmax.f32 %v851_v49, 0.0 }
  0xf5   : > { %3424 = vmatmul.msk.f32.gmra.mxu2 %vm908_vm1, %v4080_v52  ;;  %v722_v55 = vpop.permute.xlu1 %721  ;;  %3418 = vmatmul.msk.f32.gmra.mxu0 %vm908_vm1, %v4078_v50 }
  0xf6   : > { %v740_v59 = vmul.f32 %v3996_v36, %v722_v55  ;;  %3434 = vmatmul.msk.f32.gmra.mxu1 %vm908_vm1, %v4078_v50  ;;  %v880_v55 = vld [vmem:[%s6353_s6 + $0x30] sm:$0xff] }
  0xf7   : > { %1362 = vmatpush.msra.mxu2 %v880_v55  ;;  %v1481_v55 = vld [vmem:[%s3941_s28 + $0x20] sm:$0xff] }
  0xf8   : > { %v837_v60 = vadd.f32 %v821_v54, %v740_v59  ;;  %v672_v26 = vpop.permute.xlu2 %671  ;;  %v1498_v54 = vld [vmem:[%s6350_s3 + $0x28] sm:$0xff]  ;;  %v1496_v59 = vld [vmem:[%s6350_s3 + $0x18] sm:$0xff] }
  0xf9   : > { %v730_v30 = vmul.f32 %v3996_v36, %v672_v26  ;;  %1560 = vmatpush.msra.mxu0 %v1498_v54  ;;  %v1477_v26 = vld [vmem:[%s3941_s28] sm:$0xff] }
  0xfa   : > { %v857_v62 = vadd.f32 %v4002_v40, %v837_v60 }
  0xfb   : > { %1561 = vmatpush.msra.mxu0 %v1497_v56 }
  0xfc   : > { %v4098_v0 = vmax.f32 %v857_v62, 0.0 }
  0xfd   : > { %v697_v2 = vpop.permute.xlu1 %696  ;;  %1562 = vmatpush.msra.mxu0 %v1496_v59 }
  0xfe   : > { %v735_v4 = vmul.f32 %v3996_v36, %v697_v2  ;;  %3430 = vmatmul.msk.f32.gmra.mxu3 %vm908_vm1, %v4098_v0  ;;  %v1494_v2 = vld [vmem:[%s6350_s3 + $0x8] sm:$0xff] }
 0x100   : > { %v832_v5 = vadd.f32 %v816_v63, %v735_v4  ;;  %v1495_v63 = vld [vmem:[%s6350_s3 + $0x10] sm:$0xff] }
 0x101   : > { %1563 = vmatpush.msra.mxu0 %v1495_v63 }
 0x102   : > { %v852_v9 = vadd.f32 %v4002_v40, %v832_v5 }
 0x103   : > { %1564 = vmatpush.msra.mxu0 %v1494_v2  ;;  %v1482_v2 = vld [vmem:[%s3941_s28 + $0x28] sm:$0xff] }
 0x104   : > { %v4113_v11 = vmax.f32 %v852_v9, 0.0 }
 0x105   : > { %v667_v12 = vpop.permute.xlu1 %666  ;;  %1565 = vmatpush.msra.mxu0 %v1493_v3 }
 0x106   : > { %v729_v14 = vmul.f32 %v3996_v36, %v667_v12  ;;  %3425 = vmatmul.msk.f32.gmra.mxu2 %vm908_vm1, %v4113_v11  ;;  %3445 = vmatmul.msk.f32.vlgmr.msrb.gmra.mxu3 %vm908_vm1, %v4059_v29  ;;  %v879_v36 = vld [vmem:[%s6353_s6 + $0x28] sm:$0xff] }
 0x107   : > { %1426 = vmatpush.msrb.mxu3 %v889_v39 }
 0x108   : > { %v826_v16 = vadd.f32 %v810_v13, %v729_v14 }
 0x109   : > { %1427 = vmatpush.msrb.mxu3 %v881_v45 }
 0x10a   : > { %v846_v17 = vadd.f32 %v4002_v40, %v826_v16 }
 0x10c   : > { %v4125_v19 = vmax.f32 %v846_v17, 0.0 }
 0x10e   : > { %3419 = vmatmul.msk.f32.gmra.mxu0 %vm908_vm1, %v4125_v19  ;;  %3435 = vmatmul.msk.f32.gmra.mxu1 %vm908_vm1, %v4125_v19  ;;  %v787_v21 = vpop.permute.xlu1 %786 }
 0x10f   : > { %3446 = vmatmul.msk.f32.gmra.mxu3 %vm908_vm1, %v4098_v0  ;;  %v817_v22 = vmul.f32 %v3994_v35, %v787_v21 }
 0x111   : > { %v833_v23 = vadd.f32 %v817_v22, %v736_v20 }
 0x113   : > { %v853_v27 = vadd.f32 %v4002_v40, %v833_v23 }
 0x115   : > { %v4136_v28 = vmax.f32 %v853_v27, 0.0 }
 0x116   : > { %v763_v31 = vpop.permute.xlu1 %762 }
 0x117   : > { %3463 = vmatmul.msk.f32.vlgmr.msra.gmra.mxu3 %vm908_vm1, %v4007_v46  ;;  %v811_v32 = vmul.f32 %v3994_v35, %v763_v31  ;;  %3426 = vmatmul.msk.f32.gmra.mxu2 %vm908_vm1, %v4136_v28  ;;  %v887_v35 = vld [vmem:[%s6353_s6 + $0x68] sm:$0xff] }
 0x118   : > { %1296 = vmatpush.msrb.mxu1 %v887_v35 }
 0x119   : > { %v827_v33 = vadd.f32 %v811_v32, %v730_v30  ;;  %v1478_v32 = vld [vmem:[%s3941_s28 + $0x8] sm:$0xff] }
 0x11a   : > { %1297 = vmatpush.msrb.mxu1 %v879_v36  ;;  %v1479_v36 = vld [vmem:[%s3941_s28 + $0x10] sm:$0xff] }
 0x11b   : > { %v847_v34 = vadd.f32 %v4002_v40, %v827_v33 }
 0x11d   : > { %v4145_v37 = vmax.f32 %v847_v34, 0.0 }
 0x11f   : > { %3464 = vmatmul.msk.f32.gmra.mxu3 %vm908_vm1, %v4034_v7  ;;  %3420 = vmatmul.msk.f32.gmra.mxu0 %vm908_vm1, %v4145_v37 }
 0x120   : > { %3436 = vmatmul.msk.f32.gmra.mxu1 %vm908_vm1, %v4145_v37  ;;  %3447 = vmatmul.msk.f32.vlgmr.msrb.gmra.mxu2 %vm908_vm1, %v4007_v46 }
 0x127   : > { %3465 = vmatmul.msk.f32.gmra.mxu3 %vm908_vm1, %v4068_v42  ;;  %3479 = vmatmul.msk.f32.vlgmr.msrb.gmra.mxu0 %vm908_vm1, %v4007_v46 }
 0x128   : > { %3437 = vmatmul.msk.f32.gmra.mxu1 %vm908_vm1, %v4020_v58  ;;  %3448 = vmatmul.msk.f32.gmra.mxu2 %vm908_vm1, %v4034_v7 }
 0x12f   : > { %3466 = vmatmul.msk.f32.gmra.mxu3 %vm908_vm1, %v4078_v50  ;;  %3480 = vmatmul.msk.f32.gmra.mxu0 %vm908_vm1, %v4034_v7 }
 0x130   : > { %3438 = vmatmul.msk.f32.gmra.mxu1 %vm908_vm1, %v4032_v6  ;;  %3449 = vmatmul.msk.f32.gmra.mxu2 %vm908_vm1, %v4068_v42 }
 0x137   : > { %3467 = vmatmul.msk.f32.gmra.mxu3 %vm908_vm1, %v4125_v19  ;;  %3481 = vmatmul.msk.f32.gmra.mxu0 %vm908_vm1, %v4068_v42  ;;  %v4259_v47 = vpop.f32.mrf.mxu0  ;;  %v4298_v60 = vpop.f32.mrf.mxu1 }
 0x138   : > { %3439 = vmatmul.msk.f32.gmra.mxu1 %vm908_vm1, %v4052_v25  ;;  %3450 = vmatmul.msk.f32.gmra.mxu2 %vm908_vm1, %v4078_v50 }
 0x13f   : > { %3468 = vmatmul.msk.f32.gmra.mxu3 %vm908_vm1, %v4145_v37  ;;  %3482 = vmatmul.msk.f32.gmra.mxu0 %vm908_vm1, %v4078_v50 }
 0x140   : > { %3440 = vmatmul.msk.f32.gmra.mxu1 %vm908_vm1, %v4080_v52  ;;  %3451 = vmatmul.msk.f32.gmra.mxu2 %vm908_vm1, %v4125_v19 }
 0x145   : > { %v4225_v40 = vpop.f32.mrf.mxu3 }
 0x146   : > { %6371 = vst [vmem:[#allocation5_spill] sm:$0xff] %v4225_v40  ;;  %v4250_v44 = vpop.f32.mrf.mxu2 }
 0x147   : > { %3469 = vmatmul.msk.f32.gmra.mxu3 %vm908_vm1, %v4020_v58  ;;  %3483 = vmatmul.msk.f32.gmra.mxu0 %vm908_vm1, %v4125_v19  ;;  %6373 = vst [vmem:[#allocation7_spill] sm:$0xff] %v4250_v44 }
 0x148   : > { %3441 = vmatmul.msk.f32.gmra.mxu1 %vm908_vm1, %v4113_v11  ;;  %3452 = vmatmul.msk.f32.gmra.mxu2 %vm908_vm1, %v4145_v37  ;;  %v4276_v53 = vpop.f32.mrf.mxu0 }
 0x149   : > { %v4323_v4 = vpop.f32.mrf.mxu1 }
 0x14e   : > { %v4274_v51 = vpop.f32.mrf.mxu2 }
 0x14f   : > { %3470 = vmatmul.msk.f32.gmra.mxu3 %vm908_vm1, %v4032_v6  ;;  %3484 = vmatmul.msk.f32.gmra.mxu0 %vm908_vm1, %v4145_v37  ;;  %6375 = vst [vmem:[#allocation9_spill] sm:$0xff] %v4274_v51 }
 0x150   : > { %3442 = vmatmul.msk.f32.gmra.mxu1 %vm908_vm1, %v4136_v28  ;;  %3453 = vmatmul.msk.f32.gmra.mxu2 %vm908_vm1, %v4020_v58 }
 0x157   : > { %3471 = vmatmul.msk.f32.gmra.mxu3 %vm908_vm1, %v4052_v25  ;;  %3485 = vmatmul.msk.f32.gmra.mxu0 %vm908_vm1, %v4020_v58 }
 0x158   : > { %3443 = vmatmul.msk.f32.gmra.mxu1 %vm908_vm1, %v4018_v57  ;;  %3454 = vmatmul.msk.f32.gmra.mxu2 %vm908_vm1, %v4032_v6 }
 0x15e   : > { %v4244_v43 = vpop.f32.mrf.mxu3 }
 0x15f   : > { %3472 = vmatmul.msk.f32.gmra.mxu3 %vm908_vm1, %v4080_v52  ;;  %3486 = vmatmul.msk.f32.gmra.mxu0 %vm908_vm1, %v4032_v6  ;;  %6372 = vst [vmem:[#allocation6_spill] sm:$0xff] %v4244_v43  ;;  %v4302_v62 = vpop.f32.mrf.mxu2  ;;  %v1625_v43 = vld [vmem:[%s6355_s8 + $0x50] sm:$0xff] }
 0x160   : > { %3444 = vmatmul.msk.f32.gmra.mxu1 %vm908_vm1, %v4050_v24  ;;  %3455 = vmatmul.msk.f32.gmra.mxu2 %vm908_vm1, %v4052_v25  ;;  %6377 = vst [vmem:[#allocation11_spill] sm:$0xff] %v4302_v62 }
 0x166   : > { %v4272_v49 = vpop.f32.mrf.mxu3 }
 0x167   : > { %3473 = vmatmul.msk.f32.gmra.mxu3 %vm908_vm1, %v4113_v11  ;;  %3487 = vmatmul.msk.f32.gmra.mxu0 %vm908_vm1, %v4052_v25  ;;  %6374 = vst [vmem:[#allocation8_spill] sm:$0xff] %v4272_v49  ;;  %v1488_v49 = vld [vmem:[%s3941_s28 + $0x58] sm:$0xff] }
 0x168   : > { %3456 = vmatmul.msk.f32.gmra.mxu2 %vm908_vm1, %v4080_v52  ;;  %3495 = vmatmul.msk.f32.vlgmr.msrb.gmra.mxu1 %vm908_vm1, %v4007_v46 }
 0x16a   : > { %v4307_v1 = vpop.f32.mrf.mxu0  ;;  %v4339_v10 = vpop.f32.mrf.mxu1 }
 0x16f   : > { %3474 = vmatmul.msk.f32.gmra.mxu3 %vm908_vm1, %v4136_v28  ;;  %3488 = vmatmul.msk.f32.gmra.mxu0 %vm908_vm1, %v4080_v52 }
 0x170   : > { %3457 = vmatmul.msk.f32.gmra.mxu2 %vm908_vm1, %v4113_v11  ;;  %3496 = vmatmul.msk.f32.gmra.mxu1 %vm908_vm1, %v4034_v7 }
 0x172   : > { %v4329_v9 = vpop.f32.mrf.mxu0 }
 0x173   : > { %v4355_v15 = vpop.f32.mrf.mxu1 }
 0x177   : > { %3475 = vmatmul.msk.f32.gmra.mxu3 %vm908_vm1, %v4018_v57  ;;  %3489 = vmatmul.msk.f32.gmra.mxu0 %vm908_vm1, %v4113_v11 }
 0x178   : > { %3458 = vmatmul.msk.f32.gmra.mxu2 %vm908_vm1, %v4136_v28  ;;  %3497 = vmatmul.msk.f32.gmra.mxu1 %vm908_vm1, %v4068_v42  ;;  %v4327_v8 = vpop.f32.mrf.mxu2 }
 0x179   : > { %6378 = vst [vmem:[#allocation12_spill] sm:$0xff] %v4327_v8 }
 0x17f   : > { %3476 = vmatmul.msk.f32.gmra.mxu3 %vm908_vm1, %v4050_v24  ;;  %3490 = vmatmul.msk.f32.gmra.mxu0 %vm908_vm1, %v4136_v28 }
 0x180   : > { %3459 = vmatmul.msk.f32.gmra.mxu2 %vm908_vm1, %v4018_v57  ;;  %3498 = vmatmul.msk.f32.gmra.mxu1 %vm908_vm1, %v4078_v50 }
 0x181   : > { %v4300_v61 = vpop.f32.mrf.mxu3 }
 0x182   : > { %6376 = vst [vmem:[#allocation10_spill] sm:$0xff] %v4300_v61 }
 0x187   : > { %3477 = vmatmul.msk.f32.gmra.mxu3 %vm908_vm1, %v4059_v29  ;;  %3491 = vmatmul.msk.f32.gmra.mxu0 %vm908_vm1, %v4018_v57 }
 0x188   : > { %3460 = vmatmul.msk.f32.gmra.mxu2 %vm908_vm1, %v4050_v24  ;;  %3499 = vmatmul.msk.f32.gmra.mxu1 %vm908_vm1, %v4125_v19 }
 0x189   : > { %v4325_v5 = vpop.f32.mrf.mxu3  ;;  %v4341_v12 = vpop.f32.mrf.mxu2 }
 0x18a   : > { %6379 = vst [vmem:[#allocation13_spill] sm:$0xff] %v4341_v12 }
 0x18b   : > { %v4345_v14 = vpop.f32.mrf.mxu0  ;;  %v4371_v20 = vpop.f32.mrf.mxu1 }
 0x18f   : > { %3478 = vmatmul.msk.f32.gmra.mxu3 %vm908_vm1, %v4098_v0  ;;  %3492 = vmatmul.msk.f32.gmra.mxu0 %vm908_vm1, %v4050_v24 }
 0x190   : > { %3461 = vmatmul.msk.f32.gmra.mxu2 %vm908_vm1, %v4059_v29  ;;  %3500 = vmatmul.msk.f32.gmra.mxu1 %vm908_vm1, %v4145_v37 }
 0x192   : > { %v4343_v13 = vpop.f32.mrf.mxu3 }
 0x197   : > { %3527 = vmatmul.msk.f32.vlgmr.msrb.gmra.mxu3 %vm908_vm1, %v4007_v46  ;;  %3493 = vmatmul.msk.f32.gmra.mxu0 %vm908_vm1, %v4059_v29 }
 0x198   : > { %3462 = vmatmul.msk.f32.gmra.mxu2 %vm908_vm1, %v4098_v0  ;;  %3501 = vmatmul.msk.f32.gmra.mxu1 %vm908_vm1, %v4020_v58 }
 0x19a   : > { %v4357_v16 = vpop.f32.mrf.mxu3  ;;  %v4359_v17 = vpop.f32.mrf.mxu2 }
 0x19b   : > { %6380 = vst [vmem:[#allocation14_spill] sm:$0xff] %v4359_v17  ;;  %v1629_v17 = vld [vmem:[%s6355_s8 + $0x70] sm:$0xff] }
 0x19c   : > { %v4361_v18 = vpop.f32.mrf.mxu0 }
 0x19f   : > { %3528 = vmatmul.msk.f32.gmra.mxu3 %vm908_vm1, %v4034_v7  ;;  %3494 = vmatmul.msk.f32.gmra.mxu0 %vm908_vm1, %v4098_v0 }
 0x1a0   : > { %3502 = vmatmul.msk.f32.gmra.mxu1 %vm908_vm1, %v4032_v6  ;;  %3511 = vmatmul.msk.f32.vlgmr.msra.gmra.mxu2 %vm908_vm1, %v4007_v46  ;;  %v4387_v46 = vpop.f32.mrf.mxu1 }
 0x1a2   : > { %v4373_v21 = vpop.f32.mrf.mxu3 }
 0x1a3   : > { %v4375_v22 = vpop.f32.mrf.mxu2 }
 0x1a4   : > { %v4377_v23 = vpop.f32.mrf.mxu0 }
 0x1a5   : > { %6381 = vst [vmem:[#allocation15_spill] sm:$0xff] %v4377_v23  ;;  %v1487_v23 = vld [vmem:[%s3941_s28 + $0x50] sm:$0xff] }
 0x1a7   : > { %3529 = vmatmul.msk.f32.gmra.mxu3 %vm908_vm1, %v4068_v42  ;;  %3543 = vmatmul.msk.f32.vlgmr.msra.gmra.mxu0 %vm1501_vm2, %v1477_v26 }
 0x1a8   : > { %3503 = vmatmul.msk.f32.gmra.mxu1 %vm908_vm1, %v4052_v25  ;;  %3512 = vmatmul.msk.f32.gmra.mxu2 %vm908_vm1, %v4034_v7  ;;  %v4407_v34 = vpop.f32.mrf.mxu1 }
 0x1a9   : > { %6383 = vst [vmem:[#allocation17_spill] sm:$0xff] %v4407_v34 }
 0x1aa   : > { %v4389_v27 = vpop.f32.mrf.mxu3 }
 0x1ab   : > { %v4391_v30 = vpop.f32.mrf.mxu2 }
 0x1ac   : > { %v4393_v31 = vpop.f32.mrf.mxu0 }
 0x1ad   : > { %6382 = vst [vmem:[#allocation16_spill] sm:$0xff] %v4393_v31  ;;  %v1639_v31 = vld [vmem:[%s6355_s8 + $0xc0] sm:$0xff] }
 0x1ae   : > { %1708 = vmatpush.msra.mxu1 %v1639_v31 }
 0x1af   : > { %3530 = vmatmul.msk.f32.gmra.mxu3 %vm908_vm1, %v4078_v50  ;;  %3544 = vmatmul.msk.f32.gmra.mxu0 %vm1501_vm2, %v1478_v32 }
 0x1b0   : > { %3504 = vmatmul.msk.f32.gmra.mxu1 %vm908_vm1, %v4080_v52  ;;  %3513 = vmatmul.msk.f32.gmra.mxu2 %vm908_vm1, %v4068_v42  ;;  %v4426_v45 = vpop.f32.mrf.mxu1 }
 0x1b1   : > { %6386 = vst [vmem:[#allocation20_spill] sm:$0xff] %v4426_v45 }
 0x1b2   : > { %v4403_v7 = vpop.f32.mrf.mxu3 }
 0x1b3   : > { %v4405_v33 = vpop.f32.mrf.mxu2 }
 0x1b4   : > { %v4409_v35 = vpop.f32.mrf.mxu0 }
 0x1b5   : > { %6384 = vst [vmem:[#allocation18_spill] sm:$0xff] %v4409_v35 }
 0x1b7   : > { %3531 = vmatmul.msk.f32.gmra.mxu3 %vm908_vm1, %v4125_v19  ;;  %3545 = vmatmul.msk.f32.gmra.mxu0 %vm1501_vm2, %v1479_v36  ;;  %v1483_v36 = vld [vmem:[%s3941_s28 + $0x30] sm:$0xff] }
 0x1b8   : > { %3505 = vmatmul.msk.f32.gmra.mxu1 %vm908_vm1, %v4113_v11  ;;  %3514 = vmatmul.msk.f32.gmra.mxu2 %vm908_vm1, %v4078_v50  ;;  %v4445_v56 = vpop.f32.mrf.mxu1 }
 0x1b9   : > { %6388 = vst [vmem:[#allocation22_spill] sm:$0xff] %v4445_v56 }
 0x1ba   : > { %v4419_v42 = vpop.f32.mrf.mxu3 }
 0x1bb   : > { %v4421_v38 = vpop.f32.mrf.mxu2 }
 0x1bc   : > { %v4423_v39 = vpop.f32.mrf.mxu0 }
 0x1bd   : > { %6385 = vst [vmem:[#allocation19_spill] sm:$0xff] %v4423_v39 }
 0x1bf   : > { %3532 = vmatmul.msk.f32.gmra.mxu3 %vm908_vm1, %v4145_v37  ;;  %3546 = vmatmul.msk.f32.gmra.mxu0 %vm1501_vm2, %v1480_v41 }
 0x1c0   : > { %3506 = vmatmul.msk.f32.gmra.mxu1 %vm908_vm1, %v4136_v28  ;;  %3515 = vmatmul.msk.f32.gmra.mxu2 %vm908_vm1, %v4125_v19 }
 0x1c2   : > { %v4435_v50 = vpop.f32.mrf.mxu3 }
 0x1c3   : > { %v4437_v48 = vpop.f32.mrf.mxu2 }
 0x1c4   : > { %v4439_v54 = vpop.f32.mrf.mxu0 }
 0x1c5   : > { %6387 = vst [vmem:[#allocation21_spill] sm:$0xff] %v4439_v54 }
 0x1c7   : > { %3533 = vmatmul.msk.f32.gmra.mxu3 %vm908_vm1, %v4020_v58  ;;  %3547 = vmatmul.msk.f32.gmra.mxu0 %vm1501_vm2, %v1481_v55 }
 0x1c8   : > { %3507 = vmatmul.msk.f32.gmra.mxu1 %vm908_vm1, %v4018_v57  ;;  %3516 = vmatmul.msk.f32.gmra.mxu2 %vm908_vm1, %v4145_v37  ;;  %v4465_v37 = vpop.f32.mrf.mxu1 }
 0x1c9   : > { %6391 = vst [vmem:[#allocation25_spill] sm:$0xff] %v4465_v37 }
 0x1ca   : > { %v4451_v19 = vpop.f32.mrf.mxu3 }
 0x1cb   : > { %6389 = vst [vmem:[#allocation23_spill] sm:$0xff] %v4451_v19  ;;  %v4453_v59 = vpop.f32.mrf.mxu2 }
 0x1cc   : > { %v4455_v63 = vpop.f32.mrf.mxu0 }
 0x1cd   : > { %6390 = vst [vmem:[#allocation24_spill] sm:$0xff] %v4455_v63 }
 0x1cf   : > { %3534 = vmatmul.msk.f32.gmra.mxu3 %vm908_vm1, %v4032_v6  ;;  %3548 = vmatmul.msk.f32.gmra.mxu0 %vm1501_vm2, %v1482_v2 }
 0x1d0   : > { %3508 = vmatmul.msk.f32.gmra.mxu1 %vm908_vm1, %v4050_v24  ;;  %3517 = vmatmul.msk.f32.gmra.mxu2 %vm908_vm1, %v4020_v58  ;;  %v4485_v55 = vpop.f32.mrf.mxu1 }
 0x1d1   : > { %6395 = vst [vmem:[#allocation29_spill] sm:$0xff] %v4485_v55 }
 0x1d2   : > { %v4467_v3 = vpop.f32.mrf.mxu3 }
 0x1d3   : > { %6392 = vst [vmem:[#allocation26_spill] sm:$0xff] %v4467_v3  ;;  %v4469_v26 = vpop.f32.mrf.mxu2 }
 0x1d4   : > { %v4471_v32 = vpop.f32.mrf.mxu0 }
 0x1d5   : > { %6393 = vst [vmem:[#allocation27_spill] sm:$0xff] %v4471_v32  ;;  %v1484_v32 = vld [vmem:[%s3941_s28 + $0x38] sm:$0xff] }
 0x1d7   : > { %3535 = vmatmul.msk.f32.gmra.mxu3 %vm908_vm1, %v4052_v25  ;;  %3549 = vmatmul.msk.f32.gmra.mxu0 %vm1501_vm2, %v1483_v36 }
 0x1d8   : > { %3509 = vmatmul.msk.f32.gmra.mxu1 %vm908_vm1, %v4059_v29  ;;  %3518 = vmatmul.msk.f32.gmra.mxu2 %vm908_vm1, %v4032_v6  ;;  %v4504_v54 = vpop.f32.mrf.mxu1 }
 0x1d9   : > { %6400 = vst [vmem:[#allocation34_spill] sm:$0xff] %v4504_v54  ;;  %v1628_v54 = vld [vmem:[%s6355_s8 + $0x68] sm:$0xff] }
 0x1da   : > { %v4481_v58 = vpop.f32.mrf.mxu3 }
 0x1db   : > { %6394 = vst [vmem:[#allocation28_spill] sm:$0xff] %v4481_v58  ;;  %v4483_v41 = vpop.f32.mrf.mxu2 }
 0x1dc   : > { %v4487_v2 = vpop.f32.mrf.mxu0 }
 0x1dd   : > { %6396 = vst [vmem:[#allocation30_spill] sm:$0xff] %v4487_v2  ;;  %v1485_v2 = vld [vmem:[%s3941_s28 + $0x40] sm:$0xff] }
 0x1df   : > { %3536 = vmatmul.msk.f32.gmra.mxu3 %vm908_vm1, %v4080_v52  ;;  %3550 = vmatmul.msk.f32.gmra.mxu0 %vm1501_vm2, %v1484_v32  ;;  %v1640_v32 = vld [vmem:[%s6355_s8 + $0xc8] sm:$0xff] }
 0x1e0   : > { %3510 = vmatmul.msk.f32.gmra.mxu1 %vm908_vm1, %v4098_v0  ;;  %3519 = vmatmul.msk.f32.gmra.mxu2 %vm908_vm1, %v4052_v25  ;;  %v1641_v25 = vld [vmem:[%s6355_s8 + $0xd0] sm:$0xff] }
 0x1e1   : > { %1773 = vmatpush.msrb.mxu2 %v1640_v32  ;;  %1838 = vmatpush.msra.mxu3 %v1641_v25  ;;  %v1642_v32 = vld [vmem:[%s6355_s8 + $0xd8] sm:$0xff] }
 0x1e2   : > { %v4497_v6 = vpop.f32.mrf.mxu3  ;;  %1903 = vmatpush.msrb.mxu0 %v1642_v32 }
 0x1e3   : > { %6397 = vst [vmem:[#allocation31_spill] sm:$0xff] %v4497_v6  ;;  %v4499_v36 = vpop.f32.mrf.mxu2 }
 0x1e4   : > { %6398 = vst [vmem:[#allocation32_spill] sm:$0xff] %v4499_v36  ;;  %v4501_v63 = vpop.f32.mrf.mxu0 }
 0x1e5   : > { %6399 = vst [vmem:[#allocation33_spill] sm:$0xff] %v4501_v63 }
 0x1e7   : > { %3537 = vmatmul.msk.f32.gmra.mxu3 %vm908_vm1, %v4113_v11  ;;  %3551 = vmatmul.msk.f32.gmra.mxu0 %vm1501_vm2, %v1485_v2  ;;  %v1486_v2 = vld [vmem:[%s3941_s28 + $0x48] sm:$0xff] }
 0x1e8   : > { %3520 = vmatmul.msk.f32.gmra.mxu2 %vm908_vm1, %v4080_v52  ;;  %v4530_v52 = vpop.f32.mrf.mxu1 }
 0x1e9   : > { %6404 = vst [vmem:[#allocation38_spill] sm:$0xff] %v4530_v52 }
 0x1ea   : > { %v4517_v63 = vpop.f32.mrf.mxu3 }
 0x1eb   : > { %6401 = vst [vmem:[#allocation35_spill] sm:$0xff] %v4517_v63  ;;  %v4519_v39 = vpop.f32.mrf.mxu2 }
 0x1ec   : > { %6402 = vst [vmem:[#allocation36_spill] sm:$0xff] %v4519_v39  ;;  %v4521_v35 = vpop.f32.mrf.mxu0 }
 0x1ed   : > { %6403 = vst [vmem:[#allocation37_spill] sm:$0xff] %v4521_v35 }
 0x1ef   : > { %3538 = vmatmul.msk.f32.gmra.mxu3 %vm908_vm1, %v4136_v28  ;;  %3552 = vmatmul.msk.f32.gmra.mxu0 %vm1501_vm2, %v1486_v2 }
 0x1f0   : > { %3521 = vmatmul.msk.f32.gmra.mxu2 %vm908_vm1, %v4113_v11  ;;  %v4549_v11 = vpop.f32.mrf.mxu1 }
 0x1f1   : > { %6408 = vst [vmem:[#allocation42_spill] sm:$0xff] %v4549_v11  ;;  %v1624_v11 = vld [vmem:[%s6355_s8 + $0x48] sm:$0xff] }
 0x1f2   : > { %v4537_v25 = vpop.f32.mrf.mxu3 }
 0x1f3   : > { %6405 = vst [vmem:[#allocation39_spill] sm:$0xff] %v4537_v25  ;;  %v4539_v35 = vpop.f32.mrf.mxu2  ;;  %v1643_v25 = vld [vmem:[%s6355_s8 + $0xe0] sm:$0xff] }
 0x1f4   : > { %6406 = vst [vmem:[#allocation40_spill] sm:$0xff] %v4539_v35  ;;  %v4541_v31 = vpop.f32.mrf.mxu0 }
 0x1f5   : > { %6407 = vst [vmem:[#allocation41_spill] sm:$0xff] %v4541_v31  ;;  %v1633_v31 = vld [vmem:[%s6355_s8 + $0x90] sm:$0xff] }
 0x1f6   : > { %1839 = vmatpush.msra.mxu3 %v1633_v31  ;;  %v1634_v31 = vld [vmem:[%s6355_s8 + $0x98] sm:$0xff] }
 0x1f7   : > { %3539 = vmatmul.msk.f32.gmra.mxu3 %vm908_vm1, %v4018_v57  ;;  %3553 = vmatmul.msk.f32.gmra.mxu0 %vm1501_vm2, %v1487_v23  ;;  %v1631_v23 = vld [vmem:[%s6355_s8 + $0x80] sm:$0xff] }
 0x1f8   : > { %3522 = vmatmul.msk.f32.gmra.mxu2 %vm908_vm1, %v4136_v28  ;;  %v1632_v28 = vld [vmem:[%s6355_s8 + $0x88] sm:$0xff]  ;;  %1709 = vmatpush.msra.mxu1 %v1631_v23  ;;  %v4589_v23 = vpop.f32.mrf.mxu1 }
 0x1f9   : > { %1774 = vmatpush.msrb.mxu2 %v1632_v28  ;;  %6414 = vst [vmem:[#allocation48_spill] sm:$0xff] %v4589_v23  ;;  %1840 = vmatpush.msra.mxu3 %v1625_v43  ;;  %v1626_v43 = vld [vmem:[%s6355_s8 + $0x58] sm:$0xff]  ;;  %v1491_v23 = vld [vmem:[%s3941_s28 + $0x70] sm:$0xff] }
 0x1fa   : > { %v4551_v2 = vpop.f32.mrf.mxu3  ;;  %1904 = vmatpush.msrb.mxu0 %v1634_v31  ;;  %v1618_v31 = vld [vmem:[%s6355_s8 + $0x18] sm:$0xff] }
 0x1fb   : > { %6409 = vst [vmem:[#allocation43_spill] sm:$0xff] %v4551_v2  ;;  %v4553_v32 = vpop.f32.mrf.mxu2  ;;  %1775 = vmatpush.msrb.mxu2 %v1624_v11  ;;  %v1617_v11 = vld [vmem:[%s6355_s8 + $0x10] sm:$0xff] }
 0x1fc   : > { %6410 = vst [vmem:[#allocation44_spill] sm:$0xff] %v4553_v32  ;;  %v4555_v61 = vpop.f32.mrf.mxu0  ;;  %1841 = vmatpush.msra.mxu3 %v1617_v11  ;;  %1905 = vmatpush.msrb.mxu0 %v1626_v43  ;;  %v1490_v43 = vld [vmem:[%s3941_s28 + $0x68] sm:$0xff] }
 0x1fd   : > { %6411 = vst [vmem:[#allocation45_spill] sm:$0xff] %v4555_v61 }
 0x1fe   : > { %1906 = vmatpush.msrb.mxu0 %v1618_v31 }
 0x1ff   : > { %3540 = vmatmul.msk.f32.gmra.mxu3 %vm908_vm1, %v4050_v24  ;;  %3554 = vmatmul.msk.f32.gmra.mxu0 %vm1501_vm2, %v1488_v49  ;;  %v1623_v49 = vld [vmem:[%s6355_s8 + $0x40] sm:$0xff] }
 0x200   : > { %3523 = vmatmul.msk.f32.gmra.mxu2 %vm908_vm1, %v4018_v57  ;;  %v1489_v57 = vld [vmem:[%s3941_s28 + $0x60] sm:$0xff]  ;;  %1710 = vmatpush.msra.mxu1 %v1623_v49  ;;  %v1616_v49 = vld [vmem:[%s6355_s8 + $0x8] sm:$0xff] }
 0x201   : > { %1776 = vmatpush.msrb.mxu2 %v1616_v49 }
 0x202   : > { %v4572_v61 = vpop.f32.mrf.mxu3 }
 0x203   : > { %6412 = vst [vmem:[#allocation46_spill] sm:$0xff] %v4572_v61  ;;  %v4583_v2 = vpop.f32.mrf.mxu2  ;;  %v1615_v61 = vld [vmem:[%s6355_s8] sm:$0xff] }
 0x204   : > { %6413 = vst [vmem:[#allocation47_spill] sm:$0xff] %v4583_v2  ;;  %v4591_v28 = vpop.f32.mrf.mxu0  ;;  %1711 = vmatpush.msra.mxu1 %v1615_v61 }
 0x205   : > { %6415 = vst [vmem:[#allocation49_spill] sm:$0xff] %v4591_v28  ;;  %v4620_v28 = vpop.f32.mrf.mxu1 }
 0x206   : > { %6419 = vst [vmem:[#allocation53_spill] sm:$0xff] %v4620_v28  ;;  %1968 = vmatpush.msrb.mxu1 %v1643_v25 }
 0x207   : > { %3541 = vmatmul.msk.f32.gmra.mxu3 %vm908_vm1, %v4059_v29  ;;  %3555 = vmatmul.msk.f32.gmra.mxu0 %vm1501_vm2, %v1489_v57 }
 0x208   : > { %3524 = vmatmul.msk.f32.gmra.mxu2 %vm908_vm1, %v4050_v24 }
 0x20a   : > { %v4613_v61 = vpop.f32.mrf.mxu3 }
 0x20b   : > { %6416 = vst [vmem:[#allocation50_spill] sm:$0xff] %v4613_v61  ;;  %v4615_v49 = vpop.f32.mrf.mxu2 }
 0x20c   : > { %6417 = vst [vmem:[#allocation51_spill] sm:$0xff] %v4615_v49  ;;  %v4617_v11 = vpop.f32.mrf.mxu0 }
 0x20d   : > { %6418 = vst [vmem:[#allocation52_spill] sm:$0xff] %v4617_v11  ;;  %v4635_v11 = vpop.f32.mrf.mxu1 }
 0x20e   : > { %6423 = vst [vmem:[#allocation57_spill] sm:$0xff] %v4635_v11 }
 0x20f   : > { %3542 = vmatmul.msk.f32.gmra.mxu3 %vm908_vm1, %v4098_v0  ;;  %3556 = vmatmul.msk.f32.gmra.mxu0 %vm1501_vm2, %v1490_v43 }
 0x210   : > { %3525 = vmatmul.msk.f32.gmra.mxu2 %vm908_vm1, %v4059_v29  ;;  %v1492_v29 = vld [vmem:[%s3941_s28 + $0x78] sm:$0xff] }
 0x212   : > { %v4627_v24 = vpop.f32.mrf.mxu3 }
 0x213   : > { %6420 = vst [vmem:[#allocation54_spill] sm:$0xff] %v4627_v24  ;;  %v4629_v57 = vpop.f32.mrf.mxu2 }
 0x214   : > { %6421 = vst [vmem:[#allocation55_spill] sm:$0xff] %v4629_v57  ;;  %v4631_v31 = vpop.f32.mrf.mxu0 }
 0x215   : > { %6422 = vst [vmem:[#allocation56_spill] sm:$0xff] %v4631_v31  ;;  %v4647_v24 = vpop.f32.mrf.mxu1 }
 0x216   : > { %6427 = vst [vmem:[#allocation61_spill] sm:$0xff] %v4647_v24 }
 0x217   : > { %3557 = vmatmul.msk.f32.gmra.mxu0 %vm1501_vm2, %v1491_v23 }
 0x218   : > { %3526 = vmatmul.msk.f32.gmra.mxu2 %vm908_vm1, %v4098_v0 }
 0x21a   : > { %v4639_v28 = vpop.f32.mrf.mxu3 }
 0x21b   : > { %6424 = vst [vmem:[#allocation58_spill] sm:$0xff] %v4639_v28  ;;  %v4641_v43 = vpop.f32.mrf.mxu2 }
 0x21c   : > { %6425 = vst [vmem:[#allocation59_spill] sm:$0xff] %v4641_v43  ;;  %v4643_v61 = vpop.f32.mrf.mxu0 }
 0x21d   : > { %6426 = vst [vmem:[#allocation60_spill] sm:$0xff] %v4643_v61  ;;  %v4667_v61 = vpop.f32.mrf.mxu1 }
 0x21e   : > { %6432 = vst [vmem:[#allocation66_spill] sm:$0xff] %v4667_v61 }
 0x21f   : > { %3558 = vmatmul.msk.f32.gmra.mxu0 %vm1501_vm2, %v1492_v29 }
 0x222   : > { %v4649_v31 = vpop.f32.mrf.mxu3 }
 0x223   : > { %6428 = vst [vmem:[#allocation62_spill] sm:$0xff] %v4649_v31  ;;  %v4651_v23 = vpop.f32.mrf.mxu2 }
 0x224   : > { %6429 = vst [vmem:[#allocation63_spill] sm:$0xff] %v4651_v23  ;;  %v4653_v11 = vpop.f32.mrf.mxu0 }
 0x225   : > { %3559 = vmatmul.msk.f32.vlgmr.msra.gmra.mxu1 %vm1647_vm3, %v4653_v11  ;;  %3575 = vmatmul.msk.f32.vlgmr.msrb.gmra.mxu2 %vm1647_vm3, %v4653_v11  ;;  %v4689_v61 = vpop.f32.mrf.mxu1 }
 0x226   : > { %3591 = vmatmul.msk.f32.vlgmr.msra.gmra.mxu3 %vm1647_vm3, %v4653_v11  ;;  %6435 = vst [vmem:[#allocation69_spill] sm:$0xff] %v4689_v61 }
 0x227   : > { %3607 = vmatmul.msk.f32.vlgmr.msrb.gmra.mxu0 %vm1647_vm3, %v4653_v11 }
 0x22a   : > { %v4663_v0 = vpop.f32.mrf.mxu3 }
 0x22b   : > { %6430 = vst [vmem:[#allocation64_spill] sm:$0xff] %v4663_v0  ;;  %v4665_v29 = vpop.f32.mrf.mxu2 }
 0x22c   : > { %6431 = vst [vmem:[#allocation65_spill] sm:$0xff] %v4665_v29  ;;  %v4669_v24 = vpop.f32.mrf.mxu0 }
 0x22d   : > { %3560 = vmatmul.msk.f32.gmra.mxu1 %vm1647_vm3, %v4669_v24  ;;  %3576 = vmatmul.msk.f32.gmra.mxu2 %vm1647_vm3, %v4669_v24  ;;  %v4709_v61 = vpop.f32.mrf.mxu1 }
 0x22e   : > { %3592 = vmatmul.msk.f32.gmra.mxu3 %vm1647_vm3, %v4669_v24  ;;  %6438 = vst [vmem:[#allocation72_spill] sm:$0xff] %v4709_v61 }
 0x22f   : > { %3608 = vmatmul.msk.f32.gmra.mxu0 %vm1647_vm3, %v4669_v24 }
 0x232   : > { %v4679_v31 = vpop.f32.mrf.mxu3 }
 0x233   : > { %6433 = vst [vmem:[#allocation67_spill] sm:$0xff] %v4679_v31  ;;  %v4681_v0 = vpop.f32.mrf.mxu2 }
 0x234   : > { %6434 = vst [vmem:[#allocation68_spill] sm:$0xff] %v4681_v0  ;;  %v4683_v29 = vpop.f32.mrf.mxu0 }
 0x235   : > { %3561 = vmatmul.msk.f32.gmra.mxu1 %vm1647_vm3, %v4683_v29  ;;  %3577 = vmatmul.msk.f32.gmra.mxu2 %vm1647_vm3, %v4683_v29  ;;  %v4725_v43 = vpop.f32.mrf.mxu1 }
 0x236   : > { %3593 = vmatmul.msk.f32.gmra.mxu3 %vm1647_vm3, %v4683_v29  ;;  %6441 = vst [vmem:[#allocation75_spill] sm:$0xff] %v4725_v43 }
 0x237   : > { %3609 = vmatmul.msk.f32.gmra.mxu0 %vm1647_vm3, %v4683_v29 }
 0x23a   : > { %v4695_v28 = vpop.f32.mrf.mxu3 }
 0x23b   : > { %6436 = vst [vmem:[#allocation70_spill] sm:$0xff] %v4695_v28  ;;  %v4697_v31 = vpop.f32.mrf.mxu2 }
 0x23c   : > { %6437 = vst [vmem:[#allocation71_spill] sm:$0xff] %v4697_v31  ;;  %v4699_v0 = vpop.f32.mrf.mxu0 }
 0x23d   : > { %3562 = vmatmul.msk.f32.gmra.mxu1 %vm1647_vm3, %v4699_v0  ;;  %3578 = vmatmul.msk.f32.gmra.mxu2 %vm1647_vm3, %v4699_v0 }
 0x23e   : > { %3594 = vmatmul.msk.f32.gmra.mxu3 %vm1647_vm3, %v4699_v0 }
 0x23f   : > { %3610 = vmatmul.msk.f32.gmra.mxu0 %vm1647_vm3, %v4699_v0 }
 0x242   : > { %v4711_v23 = vpop.f32.mrf.mxu3 }
 0x243   : > { %6439 = vst [vmem:[#allocation73_spill] sm:$0xff] %v4711_v23  ;;  %v4713_v28 = vpop.f32.mrf.mxu2 }
 0x244   : > { %6440 = vst [vmem:[#allocation74_spill] sm:$0xff] %v4713_v28  ;;  %v4715_v31 = vpop.f32.mrf.mxu0 }
 0x245   : > { %3563 = vmatmul.msk.f32.gmra.mxu1 %vm1647_vm3, %v4715_v31  ;;  %3579 = vmatmul.msk.f32.gmra.mxu2 %vm1647_vm3, %v4715_v31 }
 0x246   : > { %3595 = vmatmul.msk.f32.gmra.mxu3 %vm1647_vm3, %v4715_v31 }
 0x247   : > { %3611 = vmatmul.msk.f32.gmra.mxu0 %vm1647_vm3, %v4715_v31 }
 0x24a   : > { %v4727_v61 = vpop.f32.mrf.mxu3 }
 0x24b   : > { %6442 = vst [vmem:[#allocation76_spill] sm:$0xff] %v4727_v61  ;;  %v4729_v23 = vpop.f32.mrf.mxu2  ;;  %v4745_v61 = vpop.f32.mrf.mxu1 }
 0x24c   : > { %6443 = vst [vmem:[#allocation77_spill] sm:$0xff] %v4729_v23  ;;  %v4731_v28 = vpop.f32.mrf.mxu0 }
 0x24d   : > { %3564 = vmatmul.msk.f32.gmra.mxu1 %vm1647_vm3, %v4731_v28  ;;  %3580 = vmatmul.msk.f32.gmra.mxu2 %vm1647_vm3, %v4731_v28  ;;  %6446 = vst [vmem:[#allocation80_spill] sm:$0xff] %v4745_v61 }
 0x24e   : > { %3596 = vmatmul.msk.f32.gmra.mxu3 %vm1647_vm3, %v4731_v28 }
 0x24f   : > { %3612 = vmatmul.msk.f32.gmra.mxu0 %vm1647_vm3, %v4731_v28 }
 0x252   : > { %v4741_v57 = vpop.f32.mrf.mxu3 }
 0x253   : > { %6444 = vst [vmem:[#allocation78_spill] sm:$0xff] %v4741_v57  ;;  %v4743_v43 = vpop.f32.mrf.mxu2  ;;  %v4767_v61 = vpop.f32.mrf.mxu1 }
 0x254   : > { %6445 = vst [vmem:[#allocation79_spill] sm:$0xff] %v4743_v43  ;;  %v4747_v23 = vpop.f32.mrf.mxu0 }
 0x255   : > { %3565 = vmatmul.msk.f32.gmra.mxu1 %vm1647_vm3, %v4747_v23  ;;  %3581 = vmatmul.msk.f32.gmra.mxu2 %vm1647_vm3, %v4747_v23  ;;  %6449 = vst [vmem:[#allocation83_spill] sm:$0xff] %v4767_v61  ;;  %v1644_v61 = vld [vmem:[%s6355_s8 + $0xe8] sm:$0xff] }
 0x256   : > { %3597 = vmatmul.msk.f32.gmra.mxu3 %vm1647_vm3, %v4747_v23  ;;  %2033 = vmatpush.msra.mxu2 %v1644_v61 }
 0x257   : > { %3613 = vmatmul.msk.f32.gmra.mxu0 %vm1647_vm3, %v4747_v23 }
 0x25a   : > { %v4757_v49 = vpop.f32.mrf.mxu3 }
 0x25b   : > { %6447 = vst [vmem:[#allocation81_spill] sm:$0xff] %v4757_v49  ;;  %v4759_v57 = vpop.f32.mrf.mxu2 }
 0x25c   : > { %6448 = vst [vmem:[#allocation82_spill] sm:$0xff] %v4759_v57  ;;  %v4761_v43 = vpop.f32.mrf.mxu0 }
 0x25d   : > { %3566 = vmatmul.msk.f32.gmra.mxu1 %vm1647_vm3, %v4761_v43  ;;  %3582 = vmatmul.msk.f32.gmra.mxu2 %vm1647_vm3, %v4761_v43 }
 0x25e   : > { %3598 = vmatmul.msk.f32.gmra.mxu3 %vm1647_vm3, %v4761_v43 }
 0x25f   : > { %3614 = vmatmul.msk.f32.gmra.mxu0 %vm1647_vm3, %v4761_v43 }
 0x262   : > { %v4777_v57 = vpop.f32.mrf.mxu3 }
 0x263   : > { %v4773_v2 = vpop.f32.mrf.mxu2  ;;  %6451 = vst [vmem:[#allocation85_spill] sm:$0xff] %v4777_v57  ;;  %v1645_v57 = vld [vmem:[%s6355_s8 + $0xf0] sm:$0xff] }
 0x264   : > { %6450 = vst [vmem:[#allocation84_spill] sm:$0xff] %v4773_v2  ;;  %v4775_v49 = vpop.f32.mrf.mxu0  ;;  %v4793_v2 = vpop.f32.mrf.mxu1  ;;  %2098 = vmatpush.msrb.mxu3 %v1645_v57  ;;  %v1646_v57 = vld [vmem:[%s6355_s8 + $0xf8] sm:$0xff] }
 0x265   : > { %3567 = vmatmul.msk.f32.gmra.mxu1 %vm1647_vm3, %v4775_v49  ;;  %3583 = vmatmul.msk.f32.gmra.mxu2 %vm1647_vm3, %v4775_v49  ;;  %6452 = vst [vmem:[#allocation86_spill] sm:$0xff] %v4793_v2 }
 0x266   : > { %3599 = vmatmul.msk.f32.gmra.mxu3 %vm1647_vm3, %v4775_v49  ;;  %2163 = vmatpush.msra.mxu0 %v1646_v57 }
 0x267   : > { %3615 = vmatmul.msk.f32.gmra.mxu0 %vm1647_vm3, %v4775_v49 }
 0x26a   : > { %v4808_v61 = vpop.f32.mrf.mxu3 }
 0x26b   : > { %v4795_v52 = vpop.f32.mrf.mxu2  ;;  %6454 = vst [vmem:[#allocation88_spill] sm:$0xff] %v4808_v61 }
 0x26c   : > { %6453 = vst [vmem:[#allocation87_spill] sm:$0xff] %v4795_v52  ;;  %v4797_v40 = vpop.f32.mrf.mxu0  ;;  %v4815_v2 = vpop.f32.mrf.mxu1 }
 0x26d   : > { %3568 = vmatmul.msk.f32.gmra.mxu1 %vm1647_vm3, %v4797_v40  ;;  %3584 = vmatmul.msk.f32.gmra.mxu2 %vm1647_vm3, %v4797_v40  ;;  %6455 = vst [vmem:[#allocation89_spill] sm:$0xff] %v4815_v2 }
 0x26e   : > { %3600 = vmatmul.msk.f32.gmra.mxu3 %vm1647_vm3, %v4797_v40 }
 0x26f   : > { %3616 = vmatmul.msk.f32.gmra.mxu0 %vm1647_vm3, %v4797_v40 }
 0x272   : > { %v4829_v25 = vpop.f32.mrf.mxu3 }
 0x273   : > { %v4817_v52 = vpop.f32.mrf.mxu2  ;;  %6457 = vst [vmem:[#allocation91_spill] sm:$0xff] %v4829_v25  ;;  %v1635_v25 = vld [vmem:[%s6355_s8 + $0xa0] sm:$0xff] }
 0x274   : > { %6456 = vst [vmem:[#allocation90_spill] sm:$0xff] %v4817_v52  ;;  %v4819_v32 = vpop.f32.mrf.mxu0  ;;  %v4833_v2 = vpop.f32.mrf.mxu1  ;;  %1969 = vmatpush.msrb.mxu1 %v1635_v25  ;;  %v1627_v52 = vld [vmem:[%s6355_s8 + $0x60] sm:$0xff] }
 0x275   : > { %3569 = vmatmul.msk.f32.gmra.mxu1 %vm1647_vm3, %v4819_v32  ;;  %3585 = vmatmul.msk.f32.gmra.mxu2 %vm1647_vm3, %v4819_v32  ;;  %6459 = vst [vmem:[#allocation93_spill] sm:$0xff] %v4833_v2  ;;  %v1636_v2 = vld [vmem:[%s6355_s8 + $0xa8] sm:$0xff] }
 0x276   : > { %3601 = vmatmul.msk.f32.gmra.mxu3 %vm1647_vm3, %v4819_v32  ;;  %2034 = vmatpush.msra.mxu2 %v1636_v2  ;;  %v1638_v2 = vld [vmem:[%s6355_s8 + $0xb8] sm:$0xff] }
 0x277   : > { %3617 = vmatmul.msk.f32.gmra.mxu0 %vm1647_vm3, %v4819_v32  ;;  %1970 = vmatpush.msrb.mxu1 %v1627_v52 }
 0x278   : > { %2035 = vmatpush.msra.mxu2 %v1628_v54  ;;  %2164 = vmatpush.msra.mxu0 %v1638_v2  ;;  %v1621_v54 = vld [vmem:[%s6355_s8 + $0x30] sm:$0xff]  ;;  %v1622_v2 = vld [vmem:[%s6355_s8 + $0x38] sm:$0xff] }
 0x27a   : > { %v4863_v63 = vpop.f32.mrf.mxu3 }
 0x27b   : > { %v4831_v57 = vpop.f32.mrf.mxu2  ;;  %6460 = vst [vmem:[#allocation94_spill] sm:$0xff] %v4863_v63  ;;  %v1620_v63 = vld [vmem:[%s6355_s8 + $0x28] sm:$0xff] }
 0x27c   : > { %6458 = vst [vmem:[#allocation92_spill] sm:$0xff] %v4831_v57  ;;  %v4835_v61 = vpop.f32.mrf.mxu0  ;;  %v1637_v57 = vld [vmem:[%s6355_s8 + $0xb0] sm:$0xff]  ;;  %v4888_v52 = vpop.f32.mrf.mxu1  ;;  %2036 = vmatpush.msra.mxu2 %v1620_v63 }
 0x27d   : > { %3570 = vmatmul.msk.f32.gmra.mxu1 %vm1647_vm3, %v4835_v61  ;;  %3586 = vmatmul.msk.f32.gmra.mxu2 %vm1647_vm3, %v4835_v61  ;;  %6462 = vst [vmem:[#allocation96_spill] sm:$0xff] %v4888_v52 }
 0x27e   : > { %3602 = vmatmul.msk.f32.gmra.mxu3 %vm1647_vm3, %v4835_v61 }
 0x27f   : > { %3618 = vmatmul.msk.f32.gmra.mxu0 %vm1647_vm3, %v4835_v61  ;;  %2099 = vmatpush.msrb.mxu3 %v1637_v57  ;;  %v1619_v57 = vld [vmem:[%s6355_s8 + $0x20] sm:$0xff] }
 0x280   : > { %1971 = vmatpush.msrb.mxu1 %v1619_v57 }
 0x281   : > { %2100 = vmatpush.msrb.mxu3 %v1629_v17  ;;  %v1630_v17 = vld [vmem:[%s6355_s8 + $0x78] sm:$0xff] }
 0x282   : > { %2165 = vmatpush.msra.mxu0 %v1630_v17  ;;  %v4901_v52 = vpop.f32.mrf.mxu3 }
 0x283   : > { %v4865_v35 = vpop.f32.mrf.mxu2  ;;  %2101 = vmatpush.msrb.mxu3 %v1621_v54  ;;  %6464 = vst [vmem:[#allocation98_spill] sm:$0xff] %v4901_v52 }
 0x284   : > { %6461 = vst [vmem:[#allocation95_spill] sm:$0xff] %v4865_v35  ;;  %v4870_v25 = vpop.f32.mrf.mxu0  ;;  %2166 = vmatpush.msra.mxu0 %v1622_v2  ;;  %v4911_v63 = vpop.f32.mrf.mxu1 }
 0x285   : > { %3571 = vmatmul.msk.f32.gmra.mxu1 %vm1647_vm3, %v4870_v25  ;;  %3587 = vmatmul.msk.f32.gmra.mxu2 %vm1647_vm3, %v4870_v25  ;;  %6465 = vst [vmem:[#allocation99_spill] sm:$0xff] %v4911_v63 }
 0x286   : > { %3603 = vmatmul.msk.f32.gmra.mxu3 %vm1647_vm3, %v4870_v25 }
 0x287   : > { %3619 = vmatmul.msk.f32.gmra.mxu0 %vm1647_vm3, %v4870_v25 }
 0x28a   : > { %v4923_v17 = vpop.f32.mrf.mxu3 }
 0x28b   : > { %v4897_v35 = vpop.f32.mrf.mxu2  ;;  %6467 = vst [vmem:[#allocation101_spill] sm:$0xff] %v4923_v17 }
 0x28c   : > { %6463 = vst [vmem:[#allocation97_spill] sm:$0xff] %v4897_v35  ;;  %v4899_v55 = vpop.f32.mrf.mxu0  ;;  %v4927_v2 = vpop.f32.mrf.mxu1 }
 0x28d   : > { %3572 = vmatmul.msk.f32.gmra.mxu1 %vm1647_vm3, %v4899_v55  ;;  %3588 = vmatmul.msk.f32.gmra.mxu2 %vm1647_vm3, %v4899_v55  ;;  %6468 = vst [vmem:[#allocation102_spill] sm:$0xff] %v4927_v2  ;;  %v4948_v2 = vld [vmem:[%s6354_s7] sm:$0xff] }
 0x28e   : > { %3604 = vmatmul.msk.f32.gmra.mxu3 %vm1647_vm3, %v4899_v55  ;;  %v4951_v35 = vperm.slane %v4948_v2, 2 }
 0x28f   : > { %3620 = vmatmul.msk.f32.gmra.mxu0 %vm1647_vm3, %v4899_v55 }
 0x290   : > { %6471 = vst [vmem:[#allocation105_spill] sm:$0xff] %v4951_v35 }
 0x293   : > { %v4919_v54 = vpop.f32.mrf.mxu2 }
 0x294   : > { %v4913_v57 = vpop.f32.mrf.mxu0  ;;  %6466 = vst [vmem:[#allocation100_spill] sm:$0xff] %v4919_v54  ;;  %v4941_v54 = vpop.f32.mrf.mxu3 }
 0x295   : > { %3573 = vmatmul.msk.f32.gmra.mxu1 %vm1647_vm3, %v4913_v57  ;;  %3589 = vmatmul.msk.f32.gmra.mxu2 %vm1647_vm3, %v4913_v57  ;;  %6470 = vst [vmem:[#allocation104_spill] sm:$0xff] %v4941_v54  ;;  %v1105_v54 = vadd.f32 %v4375_v22, %v4951_v35  ;;  %v1108_v22 = vadd.f32 %v4391_v30, %v4951_v35 }
 0x296   : > { %3605 = vmatmul.msk.f32.gmra.mxu3 %vm1647_vm3, %v4913_v57  ;;  %v1111_v30 = vadd.f32 %v4405_v33, %v4951_v35  ;;  %v1114_v33 = vadd.f32 %v4421_v38, %v4951_v35  ;;  %v1117_v38 = vadd.f32 %v4437_v48, %v4951_v35  ;;  %v1120_v48 = vadd.f32 %v4453_v59, %v4951_v35 }
 0x297   : > { %3621 = vmatmul.msk.f32.gmra.mxu0 %vm1647_vm3, %v4913_v57  ;;  %v1123_v59 = vadd.f32 %v4469_v26, %v4951_v35  ;;  %v1126_v26 = vadd.f32 %v4483_v41, %v4951_v35  ;;  %v2359_v41 = vld [vmem:[%s6356_s9 + $0x78] sm:$0xff]  ;;  %v2390_v35 = vld [vmem:[%s6356_s9 + $0x170] sm:$0xff] }
 0x298   : > { %2472 = vmatpush.msra.mxu1 %v2359_v41 }
 0x29b   : > { %v4939_v17 = vpop.f32.mrf.mxu2 }
 0x29c   : > { %v4929_v63 = vpop.f32.mrf.mxu0  ;;  %6469 = vst [vmem:[#allocation103_spill] sm:$0xff] %v4939_v17 }
 0x29d   : > { %3574 = vmatmul.msk.f32.gmra.mxu1 %vm1647_vm3, %v4929_v63  ;;  %3590 = vmatmul.msk.f32.gmra.mxu2 %vm1647_vm3, %v4929_v63 }
 0x29e   : > { %3606 = vmatmul.msk.f32.gmra.mxu3 %vm1647_vm3, %v4929_v63 }
 0x29f   : > { %3622 = vmatmul.msk.f32.gmra.mxu0 %vm1647_vm3, %v4929_v63 }
 0x2a2   : > { %v4943_v52 = vpop.f32.mrf.mxu1 }
 0x2a4   : > { %v4953_v12 = vpop.f32.mrf.mxu0 }
 0x2a5   : > { %3623 = vmatmul.msk.f32.vlgmr.msrb.gmra.mxu1 %vm1647_vm3, %v4653_v11  ;;  %3639 = vmatmul.msk.f32.vlgmr.msra.gmra.mxu2 %vm1647_vm3, %v4653_v11 }
 0x2a6   : > { %3655 = vmatmul.msk.f32.vlgmr.msrb.gmra.mxu3 %vm1647_vm3, %v4653_v11 }
 0x2a7   : > { %3671 = vmatmul.msk.f32.vlgmr.msra.gmra.mxu0 %vm1647_vm3, %v4653_v11 }
 0x2a8   : > { %v4965_v17 = vpop.f32.mrf.mxu2 }
 0x2a9   : > { %v1843_v6 = vpop.f32.mrf.mxu3 }
 0x2aa   : > { %v4967_v39 = vmul.f32 %v1843_v6, %v1105_v54  ;;  %v4969_v37 = vpop.f32.mrf.mxu1 }
 0x2ac   : > { %v4971_v8 = vpop.f32.mrf.mxu0 }
 0x2ad   : > { %3624 = vmatmul.msk.f32.gmra.mxu1 %vm1647_vm3, %v4669_v24  ;;  %3640 = vmatmul.msk.f32.gmra.mxu2 %vm1647_vm3, %v4669_v24 }
 0x2ae   : > { %3656 = vmatmul.msk.f32.gmra.mxu3 %vm1647_vm3, %v4669_v24 }
 0x2af   : > { %3672 = vmatmul.msk.f32.gmra.mxu0 %vm1647_vm3, %v4669_v24 }
 0x2b0   : > { %v4983_v6 = vpop.f32.mrf.mxu2 }
 0x2b1   : > { %v1846_v11 = vpop.f32.mrf.mxu3 }
 0x2b2   : > { %v4985_v54 = vmul.f32 %v1846_v11, %v1108_v22  ;;  %v4987_v58 = vpop.f32.mrf.mxu1 }
 0x2b4   : > { %v4989_v36 = vpop.f32.mrf.mxu0 }
 0x2b5   : > { %3625 = vmatmul.msk.f32.gmra.mxu1 %vm1647_vm3, %v4683_v29  ;;  %3641 = vmatmul.msk.f32.gmra.mxu2 %vm1647_vm3, %v4683_v29 }
 0x2b6   : > { %3657 = vmatmul.msk.f32.gmra.mxu3 %vm1647_vm3, %v4683_v29 }
 0x2b7   : > { %3673 = vmatmul.msk.f32.gmra.mxu0 %vm1647_vm3, %v4683_v29 }
 0x2b8   : > { %v5001_v24 = vpop.f32.mrf.mxu2 }
 0x2b9   : > { %v1849_v22 = vpop.f32.mrf.mxu3 }
 0x2ba   : > { %v5003_v11 = vmul.f32 %v1849_v22, %v1111_v30  ;;  %v5005_v56 = vpop.f32.mrf.mxu1 }
 0x2bc   : > { %v5007_v62 = vpop.f32.mrf.mxu0 }
 0x2bd   : > { %3626 = vmatmul.msk.f32.gmra.mxu1 %vm1647_vm3, %v4699_v0  ;;  %3642 = vmatmul.msk.f32.gmra.mxu2 %vm1647_vm3, %v4699_v0 }
 0x2be   : > { %3658 = vmatmul.msk.f32.gmra.mxu3 %vm1647_vm3, %v4699_v0 }
 0x2bf   : > { %3674 = vmatmul.msk.f32.gmra.mxu0 %vm1647_vm3, %v4699_v0 }
 0x2c0   : > { %v5019_v29 = vpop.f32.mrf.mxu2 }
 0x2c1   : > { %v1852_v30 = vpop.f32.mrf.mxu3 }
 0x2c2   : > { %v5021_v22 = vmul.f32 %v1852_v30, %v1114_v33  ;;  %v5023_v3 = vpop.f32.mrf.mxu1 }
 0x2c4   : > { %v5025_v45 = vpop.f32.mrf.mxu0 }
 0x2c5   : > { %3627 = vmatmul.msk.f32.gmra.mxu1 %vm1647_vm3, %v4715_v31  ;;  %3643 = vmatmul.msk.f32.gmra.mxu2 %vm1647_vm3, %v4715_v31 }
 0x2c6   : > { %3659 = vmatmul.msk.f32.gmra.mxu3 %vm1647_vm3, %v4715_v31 }
 0x2c7   : > { %3675 = vmatmul.msk.f32.gmra.mxu0 %vm1647_vm3, %v4715_v31 }
 0x2c8   : > { %v5037_v0 = vpop.f32.mrf.mxu2 }
 0x2c9   : > { %v1855_v33 = vpop.f32.mrf.mxu3 }
 0x2ca   : > { %v5039_v30 = vmul.f32 %v1855_v33, %v1117_v38  ;;  %v5041_v51 = vpop.f32.mrf.mxu1 }
 0x2cc   : > { %v5043_v19 = vpop.f32.mrf.mxu0 }
 0x2cd   : > { %3628 = vmatmul.msk.f32.gmra.mxu1 %vm1647_vm3, %v4731_v28  ;;  %3644 = vmatmul.msk.f32.gmra.mxu2 %vm1647_vm3, %v4731_v28 }
 0x2ce   : > { %3660 = vmatmul.msk.f32.gmra.mxu3 %vm1647_vm3, %v4731_v28 }
 0x2cf   : > { %3676 = vmatmul.msk.f32.gmra.mxu0 %vm1647_vm3, %v4731_v28 }
 0x2d0   : > { %v5055_v31 = vpop.f32.mrf.mxu2 }
 0x2d1   : > { %v1858_v38 = vpop.f32.mrf.mxu3 }
 0x2d2   : > { %v5057_v33 = vmul.f32 %v1858_v38, %v1120_v48  ;;  %v5059_v34 = vpop.f32.mrf.mxu1 }
 0x2d3   : > { %6472 = vst [vmem:[#allocation106_spill] sm:$0xff] %v5059_v34 }
 0x2d4   : > { %v5061_v44 = vpop.f32.mrf.mxu0 }
 0x2d5   : > { %6473 = vst [vmem:[#allocation107_spill] sm:$0xff] %v5061_v44  ;;  %3629 = vmatmul.msk.f32.gmra.mxu1 %vm1647_vm3, %v4747_v23  ;;  %3645 = vmatmul.msk.f32.gmra.mxu2 %vm1647_vm3, %v4747_v23 }
 0x2d6   : > { %3661 = vmatmul.msk.f32.gmra.mxu3 %vm1647_vm3, %v4747_v23 }
 0x2d7   : > { %3677 = vmatmul.msk.f32.gmra.mxu0 %vm1647_vm3, %v4747_v23 }
 0x2d8   : > { %v5073_v28 = vpop.f32.mrf.mxu2 }
 0x2d9   : > { %v1861_v48 = vpop.f32.mrf.mxu3 }
 0x2da   : > { %v5075_v38 = vmul.f32 %v1861_v48, %v1123_v59  ;;  %v5077_v44 = vpop.f32.mrf.mxu1 }
 0x2db   : > { %6474 = vst [vmem:[#allocation108_spill] sm:$0xff] %v5077_v44 }
 0x2dc   : > { %v5079_v34 = vpop.f32.mrf.mxu0 }
 0x2dd   : > { %6475 = vst [vmem:[#allocation109_spill] sm:$0xff] %v5079_v34  ;;  %3630 = vmatmul.msk.f32.gmra.mxu1 %vm1647_vm3, %v4761_v43  ;;  %3646 = vmatmul.msk.f32.gmra.mxu2 %vm1647_vm3, %v4761_v43 }
 0x2de   : > { %3662 = vmatmul.msk.f32.gmra.mxu3 %vm1647_vm3, %v4761_v43 }
 0x2df   : > { %3678 = vmatmul.msk.f32.gmra.mxu0 %vm1647_vm3, %v4761_v43  ;;  %v2375_v43 = vld [vmem:[%s6356_s9 + $0xf8] sm:$0xff] }
 0x2e0   : > { %v5091_v23 = vpop.f32.mrf.mxu2  ;;  %2537 = vmatpush.msrb.mxu2 %v2375_v43  ;;  %v2357_v43 = vld [vmem:[%s6356_s9 + $0x68] sm:$0xff] }
 0x2e1   : > { %6476 = vst [vmem:[#allocation110_spill] sm:$0xff] %v5091_v23  ;;  %v1864_v59 = vpop.f32.mrf.mxu3  ;;  %v2370_v23 = vld [vmem:[%s6356_s9 + $0xd0] sm:$0xff] }
 0x2e2   : > { %v5093_v48 = vmul.f32 %v1864_v59, %v1126_v26  ;;  %v5095_v34 = vpop.f32.mrf.mxu1  ;;  %v2391_v26 = vld [vmem:[%s6356_s9 + $0x178] sm:$0xff] }
 0x2e3   : > { %6478 = vst [vmem:[#allocation112_spill] sm:$0xff] %v5095_v34  ;;  %2602 = vmatpush.msra.mxu3 %v2391_v26  ;;  %v2374_v34 = vld [vmem:[%s6356_s9 + $0xf0] sm:$0xff]  ;;  %v2373_v26 = vld [vmem:[%s6356_s9 + $0xe8] sm:$0xff] }
 0x2e4   : > { %6477 = vst [vmem:[#allocation111_spill] sm:$0xff] %v5093_v48  ;;  %v5097_v44 = vpop.f32.mrf.mxu0  ;;  %2538 = vmatpush.msrb.mxu2 %v2374_v34 }
 0x2e5   : > { %6479 = vst [vmem:[#allocation113_spill] sm:$0xff] %v5097_v44  ;;  %3631 = vmatmul.msk.f32.gmra.mxu1 %vm1647_vm3, %v4775_v49  ;;  %3647 = vmatmul.msk.f32.gmra.mxu2 %vm1647_vm3, %v4775_v49  ;;  %v2358_v44 = vld [vmem:[%s6356_s9 + $0x70] sm:$0xff] }
 0x2e6   : > { %3663 = vmatmul.msk.f32.gmra.mxu3 %vm1647_vm3, %v4775_v49  ;;  %2473 = vmatpush.msra.mxu1 %v2358_v44  ;;  %v2389_v44 = vld [vmem:[%s6356_s9 + $0x168] sm:$0xff] }
 0x2e7   : > { %3679 = vmatmul.msk.f32.gmra.mxu0 %vm1647_vm3, %v4775_v49  ;;  %v2407_v49 = vld [vmem:[%s6356_s9 + $0x1f8] sm:$0xff]  ;;  %2603 = vmatpush.msra.mxu3 %v2390_v35  ;;  %v2356_v35 = vld [vmem:[%s6356_s9 + $0x60] sm:$0xff] }
 0x2e8   : > { %v5116_v59 = vpop.f32.mrf.mxu2  ;;  %2667 = vmatpush.msrb.mxu0 %v2407_v49  ;;  %2474 = vmatpush.msra.mxu1 %v2357_v43  ;;  %v2372_v49 = vld [vmem:[%s6356_s9 + $0xe0] sm:$0xff] }
 0x2e9   : > { %6480 = vst [vmem:[#allocation114_spill] sm:$0xff] %v5116_v59  ;;  %v5127_v48 = vpop.f32.mrf.mxu3  ;;  %2539 = vmatpush.msrb.mxu2 %v2373_v26  ;;  %2604 = vmatpush.msra.mxu3 %v2389_v44  ;;  %v2388_v43 = vld [vmem:[%s6356_s9 + $0x160] sm:$0xff]  ;;  %v2405_v26 = vld [vmem:[%s6356_s9 + $0x1e8] sm:$0xff]  ;;  %v2355_v44 = vld [vmem:[%s6356_s9 + $0x58] sm:$0xff] }
 0x2ea   : > { %6481 = vst [vmem:[#allocation115_spill] sm:$0xff] %v5127_v48  ;;  %v5132_v41 = vpop.f32.mrf.mxu1  ;;  %2475 = vmatpush.msra.mxu1 %v2356_v35  ;;  %v2404_v59 = vld [vmem:[%s6356_s9 + $0x1e0] sm:$0xff] }
 0x2eb   : > { %6482 = vst [vmem:[#allocation116_spill] sm:$0xff] %v5132_v41  ;;  %v2406_v41 = vld [vmem:[%s6356_s9 + $0x1f0] sm:$0xff]  ;;  %2540 = vmatpush.msrb.mxu2 %v2372_v49  ;;  %2605 = vmatpush.msra.mxu3 %v2388_v43 }
 0x2ec   : > { %v5146_v34 = vpop.f32.mrf.mxu0  ;;  %2668 = vmatpush.msrb.mxu0 %v2406_v41  ;;  %v2387_v41 = vld [vmem:[%s6356_s9 + $0x158] sm:$0xff]  ;;  %2476 = vmatpush.msra.mxu1 %v2355_v44  ;;  %v2386_v49 = vld [vmem:[%s6356_s9 + $0x150] sm:$0xff]  ;;  %v2353_v44 = vld [vmem:[%s6356_s9 + $0x48] sm:$0xff] }
 0x2ed   : > { %6483 = vst [vmem:[#allocation117_spill] sm:$0xff] %v5146_v34  ;;  %3632 = vmatmul.msk.f32.gmra.mxu1 %vm1647_vm3, %v4797_v40  ;;  %3648 = vmatmul.msk.f32.gmra.mxu2 %vm1647_vm3, %v4797_v40  ;;  %v2371_v34 = vld [vmem:[%s6356_s9 + $0xd8] sm:$0xff] }
 0x2ee   : > { %3664 = vmatmul.msk.f32.gmra.mxu3 %vm1647_vm3, %v4797_v40  ;;  %2669 = vmatpush.msrb.mxu0 %v2405_v26 }
 0x2ef   : > { %3680 = vmatmul.msk.f32.gmra.mxu0 %vm1647_vm3, %v4797_v40  ;;  %v2354_v40 = vld [vmem:[%s6356_s9 + $0x50] sm:$0xff]  ;;  %2541 = vmatpush.msrb.mxu2 %v2371_v34  ;;  %v2385_v34 = vld [vmem:[%s6356_s9 + $0x148] sm:$0xff] }
 0x2f0   : > { %v5177_v48 = vpop.f32.mrf.mxu2  ;;  %2606 = vmatpush.msra.mxu3 %v2387_v41  ;;  %2670 = vmatpush.msrb.mxu0 %v2404_v59  ;;  %v2369_v59 = vld [vmem:[%s6356_s9 + $0xc8] sm:$0xff]  ;;  %v2352_v41 = vld [vmem:[%s6356_s9 + $0x40] sm:$0xff] }
 0x2f1   : > { %v5185_v35 = vpop.f32.mrf.mxu3  ;;  %2477 = vmatpush.msra.mxu1 %v2354_v40  ;;  %2542 = vmatpush.msrb.mxu2 %v2370_v23  ;;  %v2402_v23 = vld [vmem:[%s6356_s9 + $0x1d0] sm:$0xff]  ;;  %v2368_v40 = vld [vmem:[%s6356_s9 + $0xc0] sm:$0xff] }
 0x2f2   : > { %6484 = vst [vmem:[#allocation118_spill] sm:$0xff] %v5185_v35  ;;  %v5193_v43 = vpop.f32.mrf.mxu1  ;;  %v2403_v35 = vld [vmem:[%s6356_s9 + $0x1d8] sm:$0xff]  ;;  %2607 = vmatpush.msra.mxu3 %v2386_v49 }
 0x2f3   : > { %6485 = vst [vmem:[#allocation119_spill] sm:$0xff] %v5193_v43  ;;  %2671 = vmatpush.msrb.mxu0 %v2403_v35  ;;  %2478 = vmatpush.msra.mxu1 %v2353_v44  ;;  %v2384_v35 = vld [vmem:[%s6356_s9 + $0x140] sm:$0xff]  ;;  %v2367_v43 = vld [vmem:[%s6356_s9 + $0xb8] sm:$0xff] }
 0x2f4   : > { %v5198_v26 = vpop.f32.mrf.mxu0  ;;  %2543 = vmatpush.msrb.mxu2 %v2369_v59  ;;  %2608 = vmatpush.msra.mxu3 %v2385_v34  ;;  %v2383_v59 = vld [vmem:[%s6356_s9 + $0x138] sm:$0xff] }
 0x2f5   : > { %6486 = vst [vmem:[#allocation120_spill] sm:$0xff] %v5198_v26  ;;  %3633 = vmatmul.msk.f32.gmra.mxu1 %vm1647_vm3, %v4819_v32  ;;  %3649 = vmatmul.msk.f32.gmra.mxu2 %vm1647_vm3, %v4819_v32  ;;  %v2401_v26 = vld [vmem:[%s6356_s9 + $0x1c8] sm:$0xff] }
 0x2f6   : > { %3665 = vmatmul.msk.f32.gmra.mxu3 %vm1647_vm3, %v4819_v32  ;;  %2672 = vmatpush.msrb.mxu0 %v2402_v23 }
 0x2f7   : > { %3681 = vmatmul.msk.f32.gmra.mxu0 %vm1647_vm3, %v4819_v32  ;;  %v2351_v32 = vld [vmem:[%s6356_s9 + $0x38] sm:$0xff]  ;;  %2479 = vmatpush.msra.mxu1 %v2352_v41  ;;  %v2350_v41 = vld [vmem:[%s6356_s9 + $0x30] sm:$0xff] }
 0x2f8   : > { %v5229_v49 = vpop.f32.mrf.mxu2  ;;  %2544 = vmatpush.msrb.mxu2 %v2368_v40  ;;  %2609 = vmatpush.msra.mxu3 %v2384_v35  ;;  %v2382_v40 = vld [vmem:[%s6356_s9 + $0x130] sm:$0xff]  ;;  %v2349_v35 = vld [vmem:[%s6356_s9 + $0x28] sm:$0xff] }
 0x2f9   : > { %v5237_v44 = vpop.f32.mrf.mxu3  ;;  %2673 = vmatpush.msrb.mxu0 %v2401_v26  ;;  %2480 = vmatpush.msra.mxu1 %v2351_v32  ;;  %v2366_v26 = vld [vmem:[%s6356_s9 + $0xb0] sm:$0xff]  ;;  %v2365_v32 = vld [vmem:[%s6356_s9 + $0xa8] sm:$0xff] }
 0x2fa   : > { %6487 = vst [vmem:[#allocation121_spill] sm:$0xff] %v5237_v44  ;;  %v5245_v34 = vpop.f32.mrf.mxu1  ;;  %v2400_v44 = vld [vmem:[%s6356_s9 + $0x1c0] sm:$0xff]  ;;  %2545 = vmatpush.msrb.mxu2 %v2367_v43  ;;  %2610 = vmatpush.msra.mxu3 %v2383_v59  ;;  %v2399_v43 = vld [vmem:[%s6356_s9 + $0x1b8] sm:$0xff] }
 0x2fb   : > { %6488 = vst [vmem:[#allocation122_spill] sm:$0xff] %v5245_v34  ;;  %2674 = vmatpush.msrb.mxu0 %v2400_v44  ;;  %2481 = vmatpush.msra.mxu1 %v2350_v41  ;;  %v2381_v44 = vld [vmem:[%s6356_s9 + $0x128] sm:$0xff]  ;;  %v2364_v34 = vld [vmem:[%s6356_s9 + $0xa0] sm:$0xff] }
 0x2fc   : > { %v5250_v23 = vpop.f32.mrf.mxu0  ;;  %2546 = vmatpush.msrb.mxu2 %v2366_v26  ;;  %2611 = vmatpush.msra.mxu3 %v2382_v40  ;;  %v2380_v26 = vld [vmem:[%s6356_s9 + $0x120] sm:$0xff] }
 0x2fd   : > { %6489 = vst [vmem:[#allocation123_spill] sm:$0xff] %v5250_v23  ;;  %3634 = vmatmul.msk.f32.gmra.mxu1 %vm1647_vm3, %v4835_v61  ;;  %3650 = vmatmul.msk.f32.gmra.mxu2 %vm1647_vm3, %v4835_v61  ;;  %v2398_v23 = vld [vmem:[%s6356_s9 + $0x1b0] sm:$0xff] }
 0x2fe   : > { %3666 = vmatmul.msk.f32.gmra.mxu3 %vm1647_vm3, %v4835_v61  ;;  %2675 = vmatpush.msrb.mxu0 %v2399_v43 }
 0x2ff   : > { %3682 = vmatmul.msk.f32.gmra.mxu0 %vm1647_vm3, %v4835_v61  ;;  %v2348_v61 = vld [vmem:[%s6356_s9 + $0x20] sm:$0xff]  ;;  %2482 = vmatpush.msra.mxu1 %v2349_v35  ;;  %v2347_v35 = vld [vmem:[%s6356_s9 + $0x18] sm:$0xff] }
 0x300   : > { %v5281_v59 = vpop.f32.mrf.mxu2  ;;  %2547 = vmatpush.msrb.mxu2 %v2365_v32  ;;  %2612 = vmatpush.msra.mxu3 %v2381_v44  ;;  %v2379_v32 = vld [vmem:[%s6356_s9 + $0x118] sm:$0xff]  ;;  %v2346_v44 = vld [vmem:[%s6356_s9 + $0x10] sm:$0xff] }
 0x301   : > { %v5289_v41 = vpop.f32.mrf.mxu3  ;;  %2676 = vmatpush.msrb.mxu0 %v2398_v23  ;;  %2483 = vmatpush.msra.mxu1 %v2348_v61  ;;  %v2363_v23 = vld [vmem:[%s6356_s9 + $0x98] sm:$0xff]  ;;  %v2362_v61 = vld [vmem:[%s6356_s9 + $0x90] sm:$0xff] }
 0x302   : > { %6490 = vst [vmem:[#allocation124_spill] sm:$0xff] %v5289_v41  ;;  %v5297_v40 = vpop.f32.mrf.mxu1  ;;  %v2397_v41 = vld [vmem:[%s6356_s9 + $0x1a8] sm:$0xff]  ;;  %2548 = vmatpush.msrb.mxu2 %v2364_v34  ;;  %2613 = vmatpush.msra.mxu3 %v2380_v26  ;;  %v2396_v34 = vld [vmem:[%s6356_s9 + $0x1a0] sm:$0xff] }
 0x303   : > { %6491 = vst [vmem:[#allocation125_spill] sm:$0xff] %v5297_v40  ;;  %2677 = vmatpush.msrb.mxu0 %v2397_v41  ;;  %2484 = vmatpush.msra.mxu1 %v2347_v35  ;;  %v2378_v41 = vld [vmem:[%s6356_s9 + $0x110] sm:$0xff]  ;;  %v2361_v40 = vld [vmem:[%s6356_s9 + $0x88] sm:$0xff] }
 0x304   : > { %v5302_v43 = vpop.f32.mrf.mxu0  ;;  %2549 = vmatpush.msrb.mxu2 %v2363_v23  ;;  %2614 = vmatpush.msra.mxu3 %v2379_v32  ;;  %v2377_v23 = vld [vmem:[%s6356_s9 + $0x108] sm:$0xff] }
 0x305   : > { %6492 = vst [vmem:[#allocation126_spill] sm:$0xff] %v5302_v43  ;;  %3635 = vmatmul.msk.f32.gmra.mxu1 %vm1647_vm3, %v4870_v25  ;;  %3651 = vmatmul.msk.f32.gmra.mxu2 %vm1647_vm3, %v4870_v25  ;;  %v2395_v43 = vld [vmem:[%s6356_s9 + $0x198] sm:$0xff] }
 0x306   : > { %3667 = vmatmul.msk.f32.gmra.mxu3 %vm1647_vm3, %v4870_v25  ;;  %2678 = vmatpush.msrb.mxu0 %v2396_v34 }
 0x307   : > { %3683 = vmatmul.msk.f32.gmra.mxu0 %vm1647_vm3, %v4870_v25  ;;  %v2345_v25 = vld [vmem:[%s6356_s9 + $0x8] sm:$0xff]  ;;  %2485 = vmatpush.msra.mxu1 %v2346_v44  ;;  %v2344_v44 = vld [vmem:[%s6356_s9] sm:$0xff] }
 0x308   : > { %v5333_v26 = vpop.f32.mrf.mxu2  ;;  %2550 = vmatpush.msrb.mxu2 %v2362_v61  ;;  %2615 = vmatpush.msra.mxu3 %v2378_v41  ;;  %v2376_v61 = vld [vmem:[%s6356_s9 + $0x100] sm:$0xff] }
 0x309   : > { %v5341_v35 = vpop.f32.mrf.mxu3  ;;  %2679 = vmatpush.msrb.mxu0 %v2395_v43  ;;  %2486 = vmatpush.msra.mxu1 %v2345_v25  ;;  %v2360_v43 = vld [vmem:[%s6356_s9 + $0x80] sm:$0xff] }
 0x30a   : > { %6493 = vst [vmem:[#allocation127_spill] sm:$0xff] %v5341_v35  ;;  %v5349_v32 = vpop.f32.mrf.mxu1  ;;  %v2394_v35 = vld [vmem:[%s6356_s9 + $0x190] sm:$0xff]  ;;  %2551 = vmatpush.msrb.mxu2 %v2361_v40  ;;  %2616 = vmatpush.msra.mxu3 %v2377_v23  ;;  %v2393_v40 = vld [vmem:[%s6356_s9 + $0x188] sm:$0xff]  ;;  %v2392_v25 = vld [vmem:[%s6356_s9 + $0x180] sm:$0xff] }
 0x30b   : > { %6494 = vst [vmem:[#allocation128_spill] sm:$0xff] %v5349_v32  ;;  %2680 = vmatpush.msrb.mxu0 %v2394_v35  ;;  %2487 = vmatpush.msra.mxu1 %v2344_v44  ;;  %v5388_v32 = vperm.slane %v4948_v2, 1 }
 0x30c   : > { %v5354_v34 = vpop.f32.mrf.mxu0  ;;  %2552 = vmatpush.msrb.mxu2 %v2360_v43  ;;  %2617 = vmatpush.msra.mxu3 %v2376_v61 }
 0x30d   : > { %6495 = vst [vmem:[#allocation129_spill] sm:$0xff] %v5354_v34  ;;  %3636 = vmatmul.msk.f32.gmra.mxu1 %vm1647_vm3, %v4899_v55  ;;  %3652 = vmatmul.msk.f32.gmra.mxu2 %vm1647_vm3, %v4899_v55 }
 0x30e   : > { %3668 = vmatmul.msk.f32.gmra.mxu3 %vm1647_vm3, %v4899_v55  ;;  %2681 = vmatpush.msrb.mxu0 %v2393_v40 }
 0x30f   : > { %3684 = vmatmul.msk.f32.gmra.mxu0 %vm1647_vm3, %v4899_v55  ;;  %v1082_v55 = vadd.f32 %v4325_v5, %v5388_v32  ;;  %v1085_v5 = vadd.f32 %v4343_v13, %v5388_v32 }
 0x310   : > { %v5376_v41 = vpop.f32.mrf.mxu2  ;;  %2682 = vmatpush.msrb.mxu0 %v2392_v25 }
 0x311   : > { %v5381_v23 = vpop.f32.mrf.mxu3 }
 0x312   : > { %v5383_v35 = vpop.f32.mrf.mxu1 }
 0x313   : > { %6496 = vst [vmem:[#allocation130_spill] sm:$0xff] %v5383_v35 }
 0x314   : > { %v5385_v34 = vpop.f32.mrf.mxu0 }
 0x315   : > { %6497 = vst [vmem:[#allocation131_spill] sm:$0xff] %v5385_v34  ;;  %3637 = vmatmul.msk.f32.gmra.mxu1 %vm1647_vm3, %v4913_v57  ;;  %3653 = vmatmul.msk.f32.gmra.mxu2 %vm1647_vm3, %v4913_v57  ;;  %v5409_v34 = vperm.slane %v4948_v2, 0 }
 0x316   : > { %3669 = vmatmul.msk.f32.gmra.mxu3 %vm1647_vm3, %v4913_v57 }
 0x317   : > { %3685 = vmatmul.msk.f32.gmra.mxu0 %vm1647_vm3, %v4913_v57  ;;  %v5420_v57 = vperm.slane %v4948_v2, 3 }
 0x318   : > { %v1820_v44 = vpop.f32.mrf.mxu2 }
 0x319   : > { %v5400_v43 = vmul.f32 %v1820_v44, %v1082_v55  ;;  %v5402_v61 = vpop.f32.mrf.mxu3  ;;  %v975_v44 = vadd.f32 %v4259_v47, %v5409_v34  ;;  %v1170_v13 = vadd.f32 %v4357_v16, %v5420_v57  ;;  %v1043_v16 = vadd.f32 %v4323_v4, %v5388_v32 }
 0x31a   : > { %6499 = vst [vmem:[#allocation133_spill] sm:$0xff] %v5402_v61  ;;  %v5404_v40 = vpop.f32.mrf.mxu1  ;;  %v981_v4 = vadd.f32 %v4307_v1, %v5409_v34 }
 0x31b   : > { %6498 = vst [vmem:[#allocation132_spill] sm:$0xff] %v5400_v43  ;;  %v2216_v2 = vmul.f32 %v4943_v52, %v975_v44  ;;  %v2219_v47 = vmul.f32 %v4953_v12, %v1170_v13  ;;  %v1173_v12 = vadd.f32 %v4373_v21, %v5420_v57  ;;  %v1046_v21 = vadd.f32 %v4339_v10, %v5388_v32 }
 0x31c   : > { %6500 = vst [vmem:[#allocation134_spill] sm:$0xff] %v5404_v40  ;;  %v5406_v25 = vpop.f32.mrf.mxu0  ;;  %v2232_v13 = vmul.f32 %v4987_v58, %v981_v4  ;;  %v984_v10 = vadd.f32 %v4329_v9, %v5409_v34 }
 0x31d   : > { %6501 = vst [vmem:[#allocation135_spill] sm:$0xff] %v5406_v25  ;;  %3638 = vmatmul.msk.f32.gmra.mxu1 %vm1647_vm3, %v4929_v63  ;;  %3654 = vmatmul.msk.f32.gmra.mxu2 %vm1647_vm3, %v4929_v63  ;;  %v1040_v25 = vadd.f32 %v4298_v60, %v5388_v32  ;;  %v2227_v44 = vmul.f32 %v4971_v8, %v1173_v12 }
 0x31e   : > { %3670 = vmatmul.msk.f32.gmra.mxu3 %vm1647_vm3, %v4929_v63  ;;  %v1176_v8 = vadd.f32 %v4389_v27, %v5420_v57  ;;  %v1049_v27 = vadd.f32 %v4355_v15, %v5388_v32  ;;  %v987_v15 = vadd.f32 %v4345_v14, %v5409_v34 }
 0x31f   : > { %3686 = vmatmul.msk.f32.gmra.mxu0 %vm1647_vm3, %v4929_v63  ;;  %v2217_v63 = vmul.f32 %v4965_v17, %v1040_v25 }
 0x320   : > { %v1823_v55 = vpop.f32.mrf.mxu2  ;;  %v2248_v12 = vmul.f32 %v5023_v3, %v987_v15 }
 0x321   : > { %v5428_v40 = vmul.f32 %v1823_v55, %v1085_v5  ;;  %v5430_v43 = vpop.f32.mrf.mxu3  ;;  %v978_v5 = vadd.f32 %v4276_v53, %v5409_v34 }
 0x322   : > { %v5432_v61 = vpop.f32.mrf.mxu1 }
 0x323   : > { %v2224_v25 = vmul.f32 %v4969_v37, %v978_v5 }
 0x324   : > { %v5438_v35 = vpop.f32.mrf.mxu0 }
 0x325   : > { %2488 = vmatmul.f32.vlgmr.msra.gmra.mxu1 %v2216_v2  ;;  %2553 = vmatmul.f32.vlgmr.msrb.gmra.mxu2 %v2217_v63  ;;  %v2235_v63 = vmul.f32 %v4989_v36, %v1176_v8  ;;  %v1179_v36 = vadd.f32 %v4403_v7, %v5420_v57  ;;  %v1052_v7 = vadd.f32 %v4371_v20, %v5388_v32 }
 0x326   : > { %2618 = vmatmul.f32.vlgmr.msra.gmra.mxu3 %v4967_v39  ;;  %v2225_v39 = vmul.f32 %v4983_v6, %v1043_v16  ;;  %v990_v20 = vadd.f32 %v4361_v18, %v5409_v34 }
 0x327   : > { %2683 = vmatmul.f32.vlgmr.msrb.gmra.mxu0 %v2219_v47  ;;  %v2240_v47 = vmul.f32 %v5005_v56, %v984_v10  ;;  %v2243_v16 = vmul.f32 %v5007_v62, %v1179_v36  ;;  %v1182_v62 = vadd.f32 %v4419_v42, %v5420_v57  ;;  %v1055_v42 = vadd.f32 %v4387_v46, %v5388_v32  ;;  %v6502_v46 = vld [vmem:[#allocation7_spill] sm:$0xff] }
 0x328   : > { %v5442_v60 = vpop.f32.mrf.mxu2  ;;  %v993_v8 = vadd.f32 %v6502_v46, %v5409_v34  ;;  %v6506_v36 = vld [vmem:[#allocation107_spill] sm:$0xff] }
 0x329   : > { %v5448_v52 = vpop.f32.mrf.mxu3  ;;  %v6513_v46 = vld [vmem:[#allocation111_spill] sm:$0xff] }
 0x32a   : > { %v5450_v17 = vpop.f32.mrf.mxu1 }
 0x32c   : > { %v5456_v55 = vpop.f32.mrf.mxu0 }
 0x32d   : > { %2491 = vmatmul.f32.gmra.mxu1 %v2224_v25  ;;  %2556 = vmatmul.f32.gmra.mxu2 %v2225_v39  ;;  %v2251_v39 = vmul.f32 %v5025_v45, %v1182_v62  ;;  %v1185_v45 = vadd.f32 %v4435_v50, %v5420_v57  ;;  %v6503_v50 = vld [vmem:[#allocation17_spill] sm:$0xff] }
 0x32e   : > { %2621 = vmatmul.f32.gmra.mxu3 %v4985_v54  ;;  %v2233_v54 = vmul.f32 %v5001_v24, %v1046_v21 }
 0x32f   : > { %2686 = vmatmul.f32.gmra.mxu0 %v2227_v44  ;;  %v2256_v44 = vmul.f32 %v5041_v51, %v990_v20  ;;  %v2259_v21 = vmul.f32 %v5043_v19, %v1185_v45  ;;  %v6510_v20 = vld [vmem:[#allocation108_spill] sm:$0xff]  ;;  %v6511_v45 = vld [vmem:[#allocation110_spill] sm:$0xff] }
 0x330   : > { %v5460_v53 = vpop.f32.mrf.mxu2 }
 0x331   : > { %v5466_v37 = vpop.f32.mrf.mxu3 }
 0x332   : > { %v5468_v6 = vpop.f32.mrf.mxu1 }
 0x334   : > { %v5474_v2 = vpop.f32.mrf.mxu0 }
 0x335   : > { %2494 = vmatmul.f32.gmra.mxu1 %v2232_v13  ;;  %2559 = vmatmul.f32.gmra.mxu2 %v2233_v54  ;;  %v1058_v13 = vadd.f32 %v6503_v50, %v5388_v32  ;;  %v6504_v54 = vld [vmem:[#allocation23_spill] sm:$0xff] }
 0x336   : > { %2624 = vmatmul.f32.gmra.mxu3 %v5003_v11  ;;  %v2241_v11 = vmul.f32 %v5019_v29, %v1049_v27  ;;  %v1188_v19 = vadd.f32 %v6504_v54, %v5420_v57  ;;  %v6514_v50 = vld [vmem:[#allocation11_spill] sm:$0xff]  ;;  %v6515_v54 = vld [vmem:[#allocation22_spill] sm:$0xff] }
 0x337   : > { %2689 = vmatmul.f32.gmra.mxu0 %v2235_v63  ;;  %v6505_v63 = vld [vmem:[#allocation106_spill] sm:$0xff] }
 0x338   : > { %v5478_v1 = vpop.f32.mrf.mxu2  ;;  %v2264_v10 = vmul.f32 %v6505_v63, %v993_v8 }
 0x339   : > { %v5484_v58 = vpop.f32.mrf.mxu3 }
 0x33a   : > { %v5486_v24 = vpop.f32.mrf.mxu1 }
 0x33c   : > { %v5492_v5 = vpop.f32.mrf.mxu0 }
 0x33d   : > { %2497 = vmatmul.f32.gmra.mxu1 %v2240_v47  ;;  %2562 = vmatmul.f32.gmra.mxu2 %v2241_v11  ;;  %v2267_v47 = vmul.f32 %v6506_v36, %v1188_v19  ;;  %v1064_v19 = vadd.f32 %v6515_v54, %v5388_v32  ;;  %v2422_v54 = vld [vmem:[%s6356_s9 + $0x270] sm:$0xff] }
 0x33e   : > { %2627 = vmatmul.f32.gmra.mxu3 %v5021_v22  ;;  %v2249_v22 = vmul.f32 %v5037_v0, %v1052_v7  ;;  %v6508_v7 = vld [vmem:[#allocation20_spill] sm:$0xff] }
 0x33f   : > { %2692 = vmatmul.f32.gmra.mxu0 %v2243_v16  ;;  %v6507_v16 = vld [vmem:[#allocation9_spill] sm:$0xff]  ;;  %v1061_v62 = vadd.f32 %v6508_v7, %v5388_v32  ;;  %v6519_v7 = vld [vmem:[#allocation112_spill] sm:$0xff] }
 0x340   : > { %v5496_v9 = vpop.f32.mrf.mxu2  ;;  %v996_v15 = vadd.f32 %v6507_v16, %v5409_v34  ;;  %v6518_v16 = vld [vmem:[#allocation28_spill] sm:$0xff] }
 0x341   : > { %v5502_v56 = vpop.f32.mrf.mxu3 }
 0x342   : > { %v5504_v29 = vpop.f32.mrf.mxu1 }
 0x344   : > { %v5510_v25 = vpop.f32.mrf.mxu0 }
 0x345   : > { %2500 = vmatmul.f32.gmra.mxu1 %v2248_v12  ;;  %2565 = vmatmul.f32.gmra.mxu2 %v2249_v22  ;;  %v6509_v22 = vld [vmem:[#allocation26_spill] sm:$0xff] }
 0x346   : > { %2630 = vmatmul.f32.gmra.mxu3 %v5039_v30  ;;  %v2257_v30 = vmul.f32 %v5055_v31, %v1055_v42  ;;  %v2272_v42 = vmul.f32 %v6510_v20, %v996_v15  ;;  %v1194_v15 = vadd.f32 %v6518_v16, %v5420_v57  ;;  %v6521_v20 = vld [vmem:[#allocation115_spill] sm:$0xff] }
 0x347   : > { %2695 = vmatmul.f32.gmra.mxu0 %v2251_v39  ;;  %v1191_v39 = vadd.f32 %v6509_v22, %v5420_v57  ;;  %v6520_v22 = vld [vmem:[#allocation114_spill] sm:$0xff] }
 0x348   : > { %v5514_v14 = vpop.f32.mrf.mxu2 }
 0x349   : > { %v5520_v3 = vpop.f32.mrf.mxu3 }
 0x34a   : > { %v5522_v0 = vpop.f32.mrf.mxu1 }
 0x34c   : > { %v5528_v4 = vpop.f32.mrf.mxu0 }
 0x34d   : > { %2503 = vmatmul.f32.gmra.mxu1 %v2256_v44  ;;  %2568 = vmatmul.f32.gmra.mxu2 %v2257_v30  ;;  %v6512_v30 = vld [vmem:[#allocation109_spill] sm:$0xff] }
 0x34e   : > { %2633 = vmatmul.f32.gmra.mxu3 %v5057_v33  ;;  %v2265_v33 = vmul.f32 %v5073_v28, %v1058_v13  ;;  %v999_v13 = vadd.f32 %v6514_v50, %v5409_v34  ;;  %v2455_v50 = vld [vmem:[%s6356_s9 + $0x378] sm:$0xff] }
 0x34f   : > { %2698 = vmatmul.f32.gmra.mxu0 %v2259_v21  ;;  %v2275_v21 = vmul.f32 %v6512_v30, %v1191_v39  ;;  %v2281_v39 = vmul.f32 %v6520_v22, %v1064_v19  ;;  %2862 = vmatpush.msrb.mxu3 %v2455_v50  ;;  %v2438_v19 = vld [vmem:[%s6356_s9 + $0x2f0] sm:$0xff]  ;;  %v2471_v22 = vld [vmem:[%s6356_s9 + $0x3f8] sm:$0xff] }
 0x350   : > { %v5532_v18 = vpop.f32.mrf.mxu2  ;;  %2927 = vmatpush.msra.mxu0 %v2471_v22  ;;  %v2469_v22 = vld [vmem:[%s6356_s9 + $0x3e8] sm:$0xff] }
 0x351   : > { %v5538_v51 = vpop.f32.mrf.mxu3 }
 0x352   : > { %v5540_v31 = vpop.f32.mrf.mxu1 }
 0x354   : > { %v5546_v27 = vpop.f32.mrf.mxu0 }
 0x355   : > { %2506 = vmatmul.f32.gmra.mxu1 %v2264_v10  ;;  %2571 = vmatmul.f32.gmra.mxu2 %v2265_v33  ;;  %v6516_v10 = vld [vmem:[#allocation105_spill] sm:$0xff]  ;;  %v6517_v33 = vld [vmem:[#allocation32_spill] sm:$0xff] }
 0x356   : > { %2636 = vmatmul.f32.gmra.mxu3 %v5075_v38  ;;  %v2273_v38 = vmul.f32 %v6511_v45, %v1061_v62  ;;  %v1129_v36 = vadd.f32 %v6517_v33, %v6516_v10  ;;  %v2280_v62 = vmul.f32 %v6519_v7, %v999_v13  ;;  %v2454_v33 = vld [vmem:[%s6356_s9 + $0x370] sm:$0xff] }
 0x357   : > { %2701 = vmatmul.f32.gmra.mxu0 %v2267_v47  ;;  %2863 = vmatpush.msrb.mxu3 %v2454_v33  ;;  %v2470_v33 = vld [vmem:[%s6356_s9 + $0x3f0] sm:$0xff] }
 0x358   : > { %v5550_v11 = vpop.f32.mrf.mxu2  ;;  %2928 = vmatpush.msra.mxu0 %v2470_v33 }
 0x359   : > { %v5556_v12 = vpop.f32.mrf.mxu3 }
 0x35a   : > { %v5558_v28 = vpop.f32.mrf.mxu1  ;;  %2929 = vmatpush.msra.mxu0 %v2469_v22  ;;  %v6540_v22 = vld [vmem:[#allocation119_spill] sm:$0xff] }
 0x35c   : > { %v5564_v44 = vpop.f32.mrf.mxu0 }
 0x35d   : > { %2509 = vmatmul.f32.gmra.mxu1 %v2272_v42  ;;  %2574 = vmatmul.f32.gmra.mxu2 %v2273_v38  ;;  %v2282_v42 = vmul.f32 %v6521_v20, %v1129_v36  ;;  %v6523_v38 = vld [vmem:[#allocation113_spill] sm:$0xff]  ;;  %v6524_v36 = vld [vmem:[#allocation12_spill] sm:$0xff] }
 0x35e   : > { %2639 = vmatmul.f32.gmra.mxu3 %v6513_v46  ;;  %v2283_v30 = vmul.f32 %v6523_v38, %v1194_v15  ;;  %v2439_v46 = vld [vmem:[%s6356_s9 + $0x2f8] sm:$0xff]  ;;  %v1002_v16 = vadd.f32 %v6524_v36, %v5409_v34  ;;  %v6525_v15 = vld [vmem:[#allocation25_spill] sm:$0xff]  ;;  %v2421_v38 = vld [vmem:[%s6356_s9 + $0x268] sm:$0xff] }
 0x35f   : > { %2704 = vmatmul.f32.gmra.mxu0 %v2275_v21  ;;  %v2423_v21 = vld [vmem:[%s6356_s9 + $0x278] sm:$0xff]  ;;  %2797 = vmatpush.msra.mxu2 %v2439_v46  ;;  %v1067_v7 = vadd.f32 %v6525_v15, %v5388_v32  ;;  %v6529_v46 = vld [vmem:[#allocation31_spill] sm:$0xff]  ;;  %v6531_v15 = vld [vmem:[#allocation118_spill] sm:$0xff] }
 0x360   : > { %v5568_v8 = vpop.f32.mrf.mxu2  ;;  %2732 = vmatpush.msrb.mxu1 %v2423_v21  ;;  %v2453_v21 = vld [vmem:[%s6356_s9 + $0x368] sm:$0xff]  ;;  %v1197_v50 = vadd.f32 %v6529_v46, %v5420_v57  ;;  %v2420_v46 = vld [vmem:[%s6356_s9 + $0x260] sm:$0xff] }
 0x361   : > { %v5574_v63 = vpop.f32.mrf.mxu3  ;;  %2798 = vmatpush.msra.mxu2 %v2438_v19  ;;  %v2289_v19 = vmul.f32 %v5177_v48, %v1067_v7  ;;  %2864 = vmatpush.msrb.mxu3 %v2453_v21  ;;  %v2436_v48 = vld [vmem:[%s6356_s9 + $0x2e0] sm:$0xff] }
 0x362   : > { %v5578_v47 = vpop.f32.mrf.mxu1  ;;  %2733 = vmatpush.msrb.mxu1 %v2422_v54  ;;  %v6530_v54 = vld [vmem:[#allocation116_spill] sm:$0xff]  ;;  %v2452_v7 = vld [vmem:[%s6356_s9 + $0x360] sm:$0xff] }
 0x363   : > { %v2288_v36 = vmul.f32 %v6530_v54, %v1002_v16  ;;  %2865 = vmatpush.msrb.mxu3 %v2452_v7  ;;  %v2468_v21 = vld [vmem:[%s6356_s9 + $0x3e0] sm:$0xff] }
 0x364   : > { %v5585_v45 = vpop.f32.mrf.mxu0  ;;  %2734 = vmatpush.msrb.mxu1 %v2421_v38  ;;  %v2451_v38 = vld [vmem:[%s6356_s9 + $0x358] sm:$0xff]  ;;  %v6535_v54 = vld [vmem:[#allocation13_spill] sm:$0xff]  ;;  %2930 = vmatpush.msra.mxu0 %v2468_v21  ;;  %v2466_v21 = vld [vmem:[%s6356_s9 + $0x3d0] sm:$0xff] }
 0x365   : > { %6522 = vst [vmem:[#allocation7_spill] sm:$0xff] %v5585_v45  ;;  %2512 = vmatmul.f32.gmra.mxu1 %v2280_v62  ;;  %2577 = vmatmul.f32.gmra.mxu2 %v2281_v39  ;;  %v6527_v39 = vld [vmem:[#allocation36_spill] sm:$0xff]  ;;  %v6533_v45 = vld [vmem:[#allocation117_spill] sm:$0xff] }
 0x366   : > { %2642 = vmatmul.f32.gmra.mxu3 %v2282_v42  ;;  %v1132_v20 = vadd.f32 %v6527_v39, %v6516_v10  ;;  %v2291_v16 = vmul.f32 %v6533_v45, %v1197_v50  ;;  %v2419_v45 = vld [vmem:[%s6356_s9 + $0x258] sm:$0xff]  ;;  %2735 = vmatpush.msrb.mxu1 %v2420_v46  ;;  %v2418_v50 = vld [vmem:[%s6356_s9 + $0x250] sm:$0xff] }
 0x367   : > { %2707 = vmatmul.f32.gmra.mxu0 %v2283_v30  ;;  %v2437_v30 = vld [vmem:[%s6356_s9 + $0x2e8] sm:$0xff]  ;;  %v2450_v46 = vld [vmem:[%s6356_s9 + $0x350] sm:$0xff]  ;;  %2866 = vmatpush.msrb.mxu3 %v2451_v38  ;;  %v6543_v38 = vld [vmem:[#allocation120_spill] sm:$0xff] }
 0x368   : > { %v5597_v13 = vpop.f32.mrf.mxu2  ;;  %v2290_v39 = vmul.f32 %v6531_v15, %v1132_v20  ;;  %2799 = vmatpush.msra.mxu2 %v2437_v30  ;;  %v2435_v20 = vld [vmem:[%s6356_s9 + $0x2d8] sm:$0xff]  ;;  %2736 = vmatpush.msrb.mxu1 %v2419_v45 }
 0x369   : > { %v5612_v62 = vpop.f32.mrf.mxu3  ;;  %2867 = vmatpush.msrb.mxu3 %v2450_v46  ;;  %v6545_v46 = vld [vmem:[#allocation14_spill] sm:$0xff] }
 0x36a   : > { %6526 = vst [vmem:[#allocation17_spill] sm:$0xff] %v5612_v62  ;;  %v5619_v42 = vpop.f32.mrf.mxu1  ;;  %2800 = vmatpush.msra.mxu2 %v2436_v48  ;;  %2737 = vmatpush.msrb.mxu1 %v2418_v50  ;;  %v2416_v50 = vld [vmem:[%s6356_s9 + $0x240] sm:$0xff] }
 0x36b   : > { %6528 = vst [vmem:[#allocation23_spill] sm:$0xff] %v5619_v42 }
 0x36c   : > { %v5638_v42 = vpop.f32.mrf.mxu0  ;;  %2801 = vmatpush.msra.mxu2 %v2435_v20  ;;  %v2417_v20 = vld [vmem:[%s6356_s9 + $0x248] sm:$0xff] }
 0x36d   : > { %6532 = vst [vmem:[#allocation106_spill] sm:$0xff] %v5638_v42  ;;  %2515 = vmatmul.f32.gmra.mxu1 %v2288_v36  ;;  %2580 = vmatmul.f32.gmra.mxu2 %v2289_v19  ;;  %v1005_v36 = vadd.f32 %v6535_v54, %v5409_v34  ;;  %v6536_v19 = vld [vmem:[#allocation29_spill] sm:$0xff]  ;;  %v6539_v54 = vld [vmem:[#allocation35_spill] sm:$0xff] }
 0x36e   : > { %2645 = vmatmul.f32.gmra.mxu3 %v2290_v39  ;;  %v1070_v33 = vadd.f32 %v6536_v19, %v5388_v32  ;;  %v2434_v39 = vld [vmem:[%s6356_s9 + $0x2d0] sm:$0xff]  ;;  %v1200_v19 = vadd.f32 %v6539_v54, %v5420_v57  ;;  %2738 = vmatpush.msrb.mxu1 %v2417_v20  ;;  %v6546_v54 = vld [vmem:[#allocation34_spill] sm:$0xff]  ;;  %v2447_v20 = vld [vmem:[%s6356_s9 + $0x338] sm:$0xff] }
 0x36f   : > { %2710 = vmatmul.f32.gmra.mxu0 %v2291_v16  ;;  %v6538_v16 = vld [vmem:[#allocation40_spill] sm:$0xff]  ;;  %v2296_v45 = vmul.f32 %v6540_v22, %v1005_v36  ;;  %2802 = vmatpush.msra.mxu2 %v2434_v39 }
 0x370   : > { %v5662_v30 = vpop.f32.mrf.mxu2  ;;  %v1135_v48 = vadd.f32 %v6538_v16, %v6516_v10  ;;  %v2297_v42 = vmul.f32 %v5229_v49, %v1070_v33  ;;  %v2299_v36 = vmul.f32 %v6543_v38, %v1200_v19  ;;  %v2433_v49 = vld [vmem:[%s6356_s9 + $0x2c8] sm:$0xff]  ;;  %v2448_v33 = vld [vmem:[%s6356_s9 + $0x340] sm:$0xff]  ;;  %v2415_v39 = vld [vmem:[%s6356_s9 + $0x238] sm:$0xff]  ;;  %v1073_v19 = vadd.f32 %v6546_v54, %v5388_v32  ;;  %2739 = vmatpush.msrb.mxu1 %v2416_v50 }
 0x371   : > { %6534 = vst [vmem:[#allocation107_spill] sm:$0xff] %v5662_v30  ;;  %v5674_v15 = vpop.f32.mrf.mxu3  ;;  %v6541_v30 = vld [vmem:[#allocation121_spill] sm:$0xff]  ;;  %2803 = vmatpush.msra.mxu2 %v2433_v49  ;;  %v6548_v38 = vld [vmem:[#allocation44_spill] sm:$0xff] }
 0x372   : > { %6537 = vst [vmem:[#allocation9_spill] sm:$0xff] %v5674_v15  ;;  %v5684_v7 = vpop.f32.mrf.mxu1  ;;  %v2467_v15 = vld [vmem:[%s6356_s9 + $0x3d8] sm:$0xff]  ;;  %v2298_v62 = vmul.f32 %v6541_v30, %v1135_v48  ;;  %v2449_v30 = vld [vmem:[%s6356_s9 + $0x348] sm:$0xff]  ;;  %v1008_v48 = vadd.f32 %v6545_v46, %v5409_v34  ;;  %v2305_v54 = vmul.f32 %v5281_v59, %v1073_v19  ;;  %2740 = vmatpush.msrb.mxu1 %v2415_v39  ;;  %v2430_v59 = vld [vmem:[%s6356_s9 + $0x2b0] sm:$0xff] }
 0x373   : > { %2931 = vmatpush.msra.mxu0 %v2467_v15  ;;  %2868 = vmatpush.msrb.mxu3 %v2449_v30  ;;  %v2465_v15 = vld [vmem:[%s6356_s9 + $0x3c8] sm:$0xff]  ;;  %v6549_v30 = vld [vmem:[#allocation39_spill] sm:$0xff]  ;;  %v2463_v39 = vld [vmem:[%s6356_s9 + $0x3b8] sm:$0xff] }
 0x374   : > { %v5694_v16 = vpop.f32.mrf.mxu0  ;;  %v1203_v46 = vadd.f32 %v6549_v30, %v5420_v57  ;;  %v2413_v19 = vld [vmem:[%s6356_s9 + $0x228] sm:$0xff] }
 0x375   : > { %6542 = vst [vmem:[#allocation20_spill] sm:$0xff] %v5694_v16  ;;  %2518 = vmatmul.f32.gmra.mxu1 %v2296_v45  ;;  %2583 = vmatmul.f32.gmra.mxu2 %v2297_v42  ;;  %v2432_v42 = vld [vmem:[%s6356_s9 + $0x2c0] sm:$0xff]  ;;  %v2431_v45 = vld [vmem:[%s6356_s9 + $0x2b8] sm:$0xff] }
 0x376   : > { %2648 = vmatmul.f32.gmra.mxu3 %v2298_v62  ;;  %2932 = vmatpush.msra.mxu0 %v2466_v21  ;;  %v6550_v21 = vld [vmem:[#allocation122_spill] sm:$0xff]  ;;  %v2464_v16 = vld [vmem:[%s6356_s9 + $0x3c0] sm:$0xff] }
 0x377   : > { %2713 = vmatmul.f32.gmra.mxu0 %v2299_v36  ;;  %v1138_v36 = vadd.f32 %v6548_v38, %v6516_v10  ;;  %2804 = vmatpush.msra.mxu2 %v2432_v42  ;;  %v2304_v50 = vmul.f32 %v6550_v21, %v1008_v48  ;;  %v2414_v42 = vld [vmem:[%s6356_s9 + $0x230] sm:$0xff] }
 0x378   : > { %v5718_v62 = vpop.f32.mrf.mxu2  ;;  %2869 = vmatpush.msrb.mxu3 %v2448_v33  ;;  %2933 = vmatpush.msra.mxu0 %v2465_v15  ;;  %v6553_v33 = vld [vmem:[#allocation123_spill] sm:$0xff] }
 0x379   : > { %6544 = vst [vmem:[#allocation26_spill] sm:$0xff] %v5718_v62  ;;  %v5730_v22 = vpop.f32.mrf.mxu3  ;;  %2805 = vmatpush.msra.mxu2 %v2431_v45  ;;  %v2307_v48 = vmul.f32 %v6553_v33, %v1203_v46  ;;  %v2446_v15 = vld [vmem:[%s6356_s9 + $0x330] sm:$0xff]  ;;  %2741 = vmatpush.msrb.mxu1 %v2414_v42  ;;  %v2445_v45 = vld [vmem:[%s6356_s9 + $0x328] sm:$0xff]  ;;  %v2444_v42 = vld [vmem:[%s6356_s9 + $0x320] sm:$0xff] }
 0x37a   : > { %6547 = vst [vmem:[#allocation108_spill] sm:$0xff] %v5730_v22  ;;  %v5740_v49 = vpop.f32.mrf.mxu1  ;;  %v6551_v22 = vld [vmem:[#allocation124_spill] sm:$0xff]  ;;  %2870 = vmatpush.msrb.mxu3 %v2447_v20  ;;  %2934 = vmatpush.msra.mxu0 %v2464_v16  ;;  %v2462_v16 = vld [vmem:[%s6356_s9 + $0x3b0] sm:$0xff]  ;;  %v2412_v20 = vld [vmem:[%s6356_s9 + $0x220] sm:$0xff] }
 0x37b   : > { %v2306_v62 = vmul.f32 %v6551_v22, %v1138_v36  ;;  %v2429_v22 = vld [vmem:[%s6356_s9 + $0x2a8] sm:$0xff]  ;;  %2806 = vmatpush.msra.mxu2 %v2430_v59  ;;  %v6555_v36 = vld [vmem:[#allocation5_spill] sm:$0xff]  ;;  %2742 = vmatpush.msrb.mxu1 %v2413_v19  ;;  %v6558_v33 = vld [vmem:[#allocation47_spill] sm:$0xff] }
 0x37c   : > { %v5750_v38 = vpop.f32.mrf.mxu0  ;;  %2871 = vmatpush.msrb.mxu3 %v2446_v15  ;;  %v1011_v30 = vadd.f32 %v6555_v36, %v5409_v34  ;;  %v6556_v46 = vld [vmem:[#allocation38_spill] sm:$0xff]  ;;  %2935 = vmatpush.msra.mxu0 %v2463_v39  ;;  %v6559_v15 = vld [vmem:[#allocation43_spill] sm:$0xff]  ;;  %v6560_v39 = vld [vmem:[#allocation125_spill] sm:$0xff] }
 0x37d   : > { %6552 = vst [vmem:[#allocation110_spill] sm:$0xff] %v5750_v38  ;;  %2521 = vmatmul.f32.gmra.mxu1 %v2304_v50  ;;  %2586 = vmatmul.f32.gmra.mxu2 %v2305_v54  ;;  %v1076_v21 = vadd.f32 %v6556_v46, %v5388_v32  ;;  %v2428_v54 = vld [vmem:[%s6356_s9 + $0x2a0] sm:$0xff]  ;;  %v1206_v36 = vadd.f32 %v6559_v15, %v5420_v57  ;;  %v2461_v38 = vld [vmem:[%s6356_s9 + $0x3a8] sm:$0xff] }
 0x37e   : > { %2651 = vmatmul.f32.gmra.mxu3 %v2306_v62  ;;  %2807 = vmatpush.msra.mxu2 %v2429_v22  ;;  %v2312_v19 = vmul.f32 %v6560_v39, %v1011_v30  ;;  %v2411_v22 = vld [vmem:[%s6356_s9 + $0x218] sm:$0xff] }
 0x37f   : > { %2716 = vmatmul.f32.gmra.mxu0 %v2307_v48  ;;  %v1141_v48 = vadd.f32 %v6558_v33, %v6516_v10  ;;  %2872 = vmatpush.msrb.mxu3 %v2445_v45  ;;  %v2313_v46 = vmul.f32 %v5333_v26, %v1076_v21  ;;  %v6563_v45 = vld [vmem:[#allocation126_spill] sm:$0xff]  ;;  %v2427_v26 = vld [vmem:[%s6356_s9 + $0x298] sm:$0xff]  ;;  %v2410_v21 = vld [vmem:[%s6356_s9 + $0x210] sm:$0xff] }
 0x380   : > { %v5774_v62 = vpop.f32.mrf.mxu2  ;;  %2936 = vmatpush.msra.mxu0 %v2462_v16  ;;  %2743 = vmatpush.msrb.mxu1 %v2412_v20  ;;  %v2315_v30 = vmul.f32 %v6563_v45, %v1206_v36  ;;  %v2443_v16 = vld [vmem:[%s6356_s9 + $0x318] sm:$0xff]  ;;  %v2460_v20 = vld [vmem:[%s6356_s9 + $0x3a0] sm:$0xff]  ;;  %v6565_v36 = vld [vmem:[#allocation42_spill] sm:$0xff] }
 0x381   : > { %6554 = vst [vmem:[#allocation109_spill] sm:$0xff] %v5774_v62  ;;  %v5786_v50 = vpop.f32.mrf.mxu3  ;;  %2808 = vmatpush.msra.mxu2 %v2428_v54  ;;  %2873 = vmatpush.msrb.mxu3 %v2444_v42  ;;  %v2442_v54 = vld [vmem:[%s6356_s9 + $0x310] sm:$0xff]  ;;  %v2409_v42 = vld [vmem:[%s6356_s9 + $0x208] sm:$0xff]  ;;  %v1079_v39 = vadd.f32 %v6565_v36, %v5388_v32 }
 0x382   : > { %6557 = vst [vmem:[#allocation111_spill] sm:$0xff] %v5786_v50  ;;  %v5796_v59 = vpop.f32.mrf.mxu1  ;;  %v6561_v50 = vld [vmem:[#allocation127_spill] sm:$0xff]  ;;  %2937 = vmatpush.msra.mxu0 %v2461_v38  ;;  %2744 = vmatpush.msrb.mxu1 %v2411_v22  ;;  %v2459_v38 = vld [vmem:[%s6356_s9 + $0x398] sm:$0xff]  ;;  %v2441_v22 = vld [vmem:[%s6356_s9 + $0x308] sm:$0xff] }
 0x383   : > { %v2314_v62 = vmul.f32 %v6561_v50, %v1141_v48  ;;  %v2426_v50 = vld [vmem:[%s6356_s9 + $0x290] sm:$0xff]  ;;  %2809 = vmatpush.msra.mxu2 %v2427_v26  ;;  %2874 = vmatpush.msrb.mxu3 %v2443_v16  ;;  %v6564_v48 = vld [vmem:[#allocation6_spill] sm:$0xff] }
 0x384   : > { %v5806_v33 = vpop.f32.mrf.mxu0  ;;  %v1014_v15 = vadd.f32 %v6564_v48, %v5409_v34  ;;  %2938 = vmatpush.msra.mxu0 %v2460_v20  ;;  %2745 = vmatpush.msrb.mxu1 %v2410_v21  ;;  %v6566_v45 = vld [vmem:[#allocation51_spill] sm:$0xff]  ;;  %v6567_v32 = vld [vmem:[#allocation46_spill] sm:$0xff]  ;;  %v6568_v20 = vld [vmem:[#allocation128_spill] sm:$0xff]  ;;  %v2321_v48 = vmul.f32 %v5376_v41, %v1079_v39 }
 0x385   : > { %6562 = vst [vmem:[#allocation11_spill] sm:$0xff] %v5806_v33  ;;  %2524 = vmatmul.f32.gmra.mxu1 %v2312_v19  ;;  %2589 = vmatmul.f32.gmra.mxu2 %v2313_v46  ;;  %v2425_v46 = vld [vmem:[%s6356_s9 + $0x288] sm:$0xff]  ;;  %v1209_v16 = vadd.f32 %v6567_v32, %v5420_v57  ;;  %v2458_v36 = vld [vmem:[%s6356_s9 + $0x390] sm:$0xff]  ;;  %v2424_v41 = vld [vmem:[%s6356_s9 + $0x280] sm:$0xff] }
 0x386   : > { %2654 = vmatmul.f32.gmra.mxu3 %v2314_v62  ;;  %2810 = vmatpush.msra.mxu2 %v2426_v50  ;;  %v2320_v21 = vmul.f32 %v6568_v20, %v1014_v15  ;;  %v2408_v50 = vld [vmem:[%s6356_s9 + $0x200] sm:$0xff]  ;;  %v6573_v20 = vld [vmem:[#allocation50_spill] sm:$0xff] }
 0x387   : > { %2719 = vmatmul.f32.gmra.mxu0 %v2315_v30  ;;  %v1144_v30 = vadd.f32 %v6566_v45, %v6516_v10  ;;  %2875 = vmatpush.msrb.mxu3 %v2442_v54  ;;  %v6569_v54 = vld [vmem:[#allocation129_spill] sm:$0xff] }
 0x388   : > { %v5830_v62 = vpop.f32.mrf.mxu2  ;;  %2939 = vmatpush.msra.mxu0 %v2459_v38  ;;  %2746 = vmatpush.msrb.mxu1 %v2409_v42  ;;  %v2323_v15 = vmul.f32 %v6569_v54, %v1209_v16  ;;  %v2457_v38 = vld [vmem:[%s6356_s9 + $0x388] sm:$0xff]  ;;  %v2456_v39 = vld [vmem:[%s6356_s9 + $0x380] sm:$0xff] }
 0x389   : > { %v5842_v19 = vpop.f32.mrf.mxu3  ;;  %v2322_v33 = vmul.f32 %v5381_v23, %v1144_v30  ;;  %2811 = vmatpush.msra.mxu2 %v2425_v46  ;;  %2876 = vmatpush.msrb.mxu3 %v2441_v22  ;;  %v2440_v23 = vld [vmem:[%s6356_s9 + $0x300] sm:$0xff]  ;;  %v6570_v46 = vld [vmem:[#allocation8_spill] sm:$0xff] }
 0x38a   : > { %v5852_v26 = vpop.f32.mrf.mxu1  ;;  %2940 = vmatpush.msra.mxu0 %v2458_v36  ;;  %2747 = vmatpush.msrb.mxu1 %v2408_v50  ;;  %v1017_v22 = vadd.f32 %v6570_v46, %v5409_v34  ;;  %v6575_v50 = vld [vmem:[#allocation133_spill] sm:$0xff]  ;;  %v6578_v46 = vld [vmem:[#allocation132_spill] sm:$0xff] }
 0x38b   : > { %2812 = vmatpush.msra.mxu2 %v2424_v41  ;;  %2877 = vmatpush.msrb.mxu3 %v2440_v23  ;;  %v6577_v41 = vld [vmem:[#allocation131_spill] sm:$0xff] }
 0x38c   : > { %v5862_v45 = vpop.f32.mrf.mxu0  ;;  %2941 = vmatpush.msra.mxu0 %v2457_v38 }
 0x38d   : > { %2527 = vmatmul.f32.gmra.mxu1 %v2320_v21  ;;  %2592 = vmatmul.f32.gmra.mxu2 %v2321_v48  ;;  %v1212_v21 = vadd.f32 %v6573_v20, %v5420_v57  ;;  %v6574_v48 = vld [vmem:[#allocation130_spill] sm:$0xff] }
 0x38e   : > { %2657 = vmatmul.f32.gmra.mxu3 %v2322_v33  ;;  %v6571_v33 = vld [vmem:[#allocation55_spill] sm:$0xff]  ;;  %v2328_v36 = vmul.f32 %v6574_v48, %v1017_v22  ;;  %2942 = vmatpush.msra.mxu0 %v2456_v39  ;;  %v6583_v48 = vld [vmem:[#allocation54_spill] sm:$0xff] }
 0x38f   : > { %2722 = vmatmul.f32.gmra.mxu0 %v2323_v15  ;;  %v1147_v32 = vadd.f32 %v6571_v33, %v6516_v10  ;;  %v2331_v23 = vmul.f32 %v6577_v41, %v1212_v21  ;;  %v6579_v33 = vld [vmem:[#allocation10_spill] sm:$0xff]  ;;  %v6581_v39 = vld [vmem:[#allocation59_spill] sm:$0xff]  ;;  %v1215_v21 = vadd.f32 %v6583_v48, %v5420_v57  ;;  %v6589_v48 = vld [vmem:[#allocation48_spill] sm:$0xff] }
 0x390   : > { %v5877_v42 = vpop.f32.mrf.mxu2  ;;  %v1150_v22 = vadd.f32 %v6581_v39, %v6516_v10  ;;  %v6586_v10 = vld [vmem:[#allocation135_spill] sm:$0xff] }
 0x391   : > { %v5884_v30 = vpop.f32.mrf.mxu3  ;;  %v2330_v54 = vmul.f32 %v6575_v50, %v1147_v32  ;;  %v6588_v39 = vld [vmem:[#allocation15_spill] sm:$0xff] }
 0x392   : > { %v5888_v16 = vpop.f32.mrf.mxu1 }
 0x393   : > { %6572 = vst [vmem:[#allocation22_spill] sm:$0xff] %v5888_v16  ;;  %v1020_v16 = vadd.f32 %v6579_v33, %v5409_v34  ;;  %v3777_v34 = vld [vmem:[%s6354_s7] sm:$0xff]  ;;  %v2339_v33 = vmul.f32 %v6586_v10, %v1215_v21  ;;  %v6591_v21 = vld [vmem:[#allocation63_spill] sm:$0xff]  ;;  %v6592_v10 = vld [vmem:[#allocation58_spill] sm:$0xff] }
 0x394   : > { %v5894_v15 = vpop.f32.mrf.mxu0  ;;  %v5923_v57 = vperm.slane %v3777_v34, 6 }
 0x395   : > { %6576 = vst [vmem:[#allocation105_spill] sm:$0xff] %v5894_v15  ;;  %2530 = vmatmul.f32.gmra.mxu1 %v2328_v36  ;;  %2595 = vmatmul.f32.gmra.mxu2 %v6578_v46  ;;  %v6584_v36 = vld [vmem:[#allocation134_spill] sm:$0xff]  ;;  %v5919_v46 = vperm.slane %v3777_v34, 5  ;;  %v6594_v15 = vld [vmem:[#allocation53_spill] sm:$0xff] }
 0x396   : > { %2660 = vmatmul.f32.gmra.mxu3 %v2330_v54  ;;  %v2336_v50 = vmul.f32 %v6584_v36, %v1020_v16  ;;  %v2338_v54 = vmul.f32 %v5430_v43, %v1150_v22  ;;  %v5925_v16 = vperm.slane %v3777_v34, 7 }
 0x397   : > { %2725 = vmatmul.f32.gmra.mxu0 %v2331_v23  ;;  %v5917_v23 = vperm.slane %v3777_v34, 4  ;;  %v1300_v36 = vadd.f32 %v6589_v48, %v5919_v46 }
 0x398   : > { %v5898_v38 = vpop.f32.mrf.mxu2 }
 0x399   : > { %v5902_v20 = vpop.f32.mrf.mxu3  ;;  %v1235_v22 = vadd.f32 %v6588_v39, %v5917_v23 }
 0x39a   : > { %6580 = vst [vmem:[#allocation32_spill] sm:$0xff] %v5902_v20  ;;  %v5906_v32 = vpop.f32.mrf.mxu1 }
 0x39b   : > { %6582 = vst [vmem:[#allocation28_spill] sm:$0xff] %v5906_v32  ;;  %v2220_v34 = vmul.f32 %v5432_v61, %v1235_v22 }
 0x39c   : > { %v5912_v41 = vpop.f32.mrf.mxu0 }
 0x39d   : > { %6585 = vst [vmem:[#allocation112_spill] sm:$0xff] %v5912_v41  ;;  %2533 = vmatmul.f32.gmra.mxu1 %v2336_v50  ;;  %2598 = vmatmul.f32.gmra.mxu2 %v5428_v40  ;;  %v1365_v50 = vadd.f32 %v6591_v21, %v5923_v57  ;;  %v6593_v21 = vld [vmem:[#allocation16_spill] sm:$0xff] }
 0x39e   : > { %2663 = vmatmul.f32.gmra.mxu3 %v2338_v54  ;;  %v1430_v54 = vadd.f32 %v6592_v10, %v5925_v16  ;;  %v1303_v10 = vadd.f32 %v6594_v15, %v5919_v46 }
 0x39f   : > { %2728 = vmatmul.f32.gmra.mxu0 %v2339_v33  ;;  %v2221_v33 = vmul.f32 %v5442_v60, %v1300_v36  ;;  %v6595_v60 = vld [vmem:[#allocation65_spill] sm:$0xff]  ;;  %v6596_v36 = vld [vmem:[#allocation62_spill] sm:$0xff] }
 0x3a0   : > { %v5927_v43 = vpop.f32.mrf.mxu2  ;;  %v2223_v39 = vmul.f32 %v5438_v35, %v1430_v54  ;;  %v1368_v22 = vadd.f32 %v6595_v60, %v5923_v57  ;;  %v1433_v35 = vadd.f32 %v6596_v36, %v5925_v16 }
 0x3a1   : > { %6587 = vst [vmem:[#allocation114_spill] sm:$0xff] %v5927_v43  ;;  %v5933_v41 = vpop.f32.mrf.mxu3  ;;  %v2222_v43 = vmul.f32 %v5448_v52, %v1365_v50 }
 0x3a2   : > { %6590 = vst [vmem:[#allocation115_spill] sm:$0xff] %v5933_v41  ;;  %v2489_v40 = vpop.f32.mrf.mxu1  ;;  %v1238_v41 = vadd.f32 %v6593_v21, %v5917_v23 }
 0x3a4   : > { %v2684_v32 = vpop.f32.mrf.mxu0  ;;  %v2228_v50 = vmul.f32 %v5450_v17, %v1238_v41  ;;  %v6598_v17 = vld [vmem:[#allocation57_spill] sm:$0xff] }
 0x3a5   : > { %2748 = vmatmul.f32.vlgmr.msrb.gmra.mxu1 %v2220_v34  ;;  %2813 = vmatmul.f32.vlgmr.msra.gmra.mxu2 %v2221_v33  ;;  %v2230_v34 = vmul.f32 %v5466_v37, %v1368_v22  ;;  %v1306_v41 = vadd.f32 %v6598_v17, %v5919_v46  ;;  %v6599_v37 = vld [vmem:[#allocation68_spill] sm:$0xff] }
 0x3a6   : > { %2878 = vmatmul.f32.vlgmr.msrb.gmra.mxu3 %v2222_v43  ;;  %v2229_v43 = vmul.f32 %v5460_v53, %v1303_v10  ;;  %v1371_v10 = vadd.f32 %v6599_v37, %v5923_v57 }
 0x3a7   : > { %2943 = vmatmul.f32.vlgmr.msra.gmra.mxu0 %v2223_v39  ;;  %v2231_v39 = vmul.f32 %v5456_v55, %v1433_v35  ;;  %v6600_v55 = vld [vmem:[#allocation64_spill] sm:$0xff]  ;;  %v2237_v22 = vmul.f32 %v5478_v1, %v1306_v41 }
 0x3a8   : > { %v2554_v48 = vpop.f32.mrf.mxu2  ;;  %v1436_v60 = vadd.f32 %v6600_v55, %v5925_v16  ;;  %v2238_v35 = vmul.f32 %v5484_v58, %v1371_v10  ;;  %v6603_v58 = vld [vmem:[#allocation71_spill] sm:$0xff] }
 0x3a9   : > { %v2555_v20 = vadd.f32 %v2554_v48, %v2489_v40  ;;  %v2619_v61 = vpop.f32.mrf.mxu3  ;;  %v6597_v48 = vld [vmem:[#allocation18_spill] sm:$0xff] }
 0x3aa   : > { %v2492_v52 = vpop.f32.mrf.mxu1  ;;  %v1241_v21 = vadd.f32 %v6597_v48, %v5917_v23 }
 0x3ab   : > { %v2620_v54 = vadd.f32 %v2619_v61, %v2555_v20 }
 0x3ac   : > { %v2687_v33 = vpop.f32.mrf.mxu0 }
 0x3ad   : > { %2751 = vmatmul.f32.gmra.mxu1 %v2228_v50  ;;  %2816 = vmatmul.f32.gmra.mxu2 %v2229_v43  ;;  %v5955_v15 = vadd.f32 %v2684_v32, %v2620_v54  ;;  %v2236_v32 = vmul.f32 %v5468_v6, %v1241_v21  ;;  %v2239_v43 = vmul.f32 %v5474_v2, %v1436_v60  ;;  %v6602_v6 = vld [vmem:[#allocation61_spill] sm:$0xff]  ;;  %v6604_v2 = vld [vmem:[#allocation67_spill] sm:$0xff] }
 0x3ae   : > { %2881 = vmatmul.f32.gmra.mxu3 %v2230_v34  ;;  %v6601_v34 = vld [vmem:[#allocation19_spill] sm:$0xff]  ;;  %v1374_v21 = vadd.f32 %v6603_v58, %v5923_v57  ;;  %v1439_v41 = vadd.f32 %v6604_v2, %v5925_v16 }
 0x3af   : > { %2946 = vmatmul.f32.gmra.mxu0 %v2231_v39  ;;  %v1244_v39 = vadd.f32 %v6601_v34, %v5917_v23 }
 0x3b0   : > { %v2557_v40 = vpop.f32.mrf.mxu2  ;;  %v2246_v37 = vmul.f32 %v5502_v56, %v1374_v21  ;;  %v2247_v55 = vmul.f32 %v5492_v5, %v1439_v41  ;;  %v6607_v56 = vld [vmem:[#allocation74_spill] sm:$0xff] }
 0x3b1   : > { %v2558_v53 = vadd.f32 %v2557_v40, %v2492_v52  ;;  %v2622_v20 = vpop.f32.mrf.mxu3  ;;  %v1309_v40 = vadd.f32 %v6602_v6, %v5919_v46  ;;  %v6608_v5 = vld [vmem:[#allocation70_spill] sm:$0xff] }
 0x3b2   : > { %v2495_v61 = vpop.f32.mrf.mxu1  ;;  %v1442_v34 = vadd.f32 %v6608_v5, %v5925_v16 }
 0x3b3   : > { %v2623_v36 = vadd.f32 %v2622_v20, %v2558_v53  ;;  %v2245_v53 = vmul.f32 %v5496_v9, %v1309_v40 }
 0x3b4   : > { %v2690_v50 = vpop.f32.mrf.mxu0 }
 0x3b5   : > { %2754 = vmatmul.f32.gmra.mxu1 %v2236_v32  ;;  %2819 = vmatmul.f32.gmra.mxu2 %v2237_v22  ;;  %v5969_v52 = vadd.f32 %v2687_v33, %v2623_v36  ;;  %v2244_v33 = vmul.f32 %v5486_v24, %v1244_v39  ;;  %v6605_v32 = vld [vmem:[#allocation21_spill] sm:$0xff]  ;;  %v6606_v24 = vld [vmem:[#allocation66_spill] sm:$0xff] }
 0x3b6   : > { %2884 = vmatmul.f32.gmra.mxu3 %v2238_v35  ;;  %v1247_v22 = vadd.f32 %v6605_v32, %v5917_v23  ;;  %v1312_v36 = vadd.f32 %v6606_v24, %v5919_v46 }
 0x3b7   : > { %2949 = vmatmul.f32.gmra.mxu0 %v2239_v43  ;;  %v1377_v43 = vadd.f32 %v6607_v56, %v5923_v57 }
 0x3b8   : > { %v2560_v54 = vpop.f32.mrf.mxu2  ;;  %v2253_v39 = vmul.f32 %v5514_v14, %v1312_v36 }
 0x3b9   : > { %v2561_v1 = vadd.f32 %v2560_v54, %v2495_v61  ;;  %v2625_v48 = vpop.f32.mrf.mxu3  ;;  %v2254_v40 = vmul.f32 %v5520_v3, %v1377_v43  ;;  %v6611_v3 = vld [vmem:[#allocation77_spill] sm:$0xff] }
 0x3ba   : > { %v2498_v17 = vpop.f32.mrf.mxu1 }
 0x3bb   : > { %v2626_v20 = vadd.f32 %v2625_v48, %v2561_v1  ;;  %v2255_v48 = vmul.f32 %v5510_v25, %v1442_v34  ;;  %v6612_v25 = vld [vmem:[#allocation73_spill] sm:$0xff] }
 0x3bc   : > { %v2693_v10 = vpop.f32.mrf.mxu0 }
 0x3bd   : > { %2757 = vmatmul.f32.gmra.mxu1 %v2244_v33  ;;  %2822 = vmatmul.f32.gmra.mxu2 %v2245_v53  ;;  %v5983_v61 = vadd.f32 %v2690_v50, %v2626_v20  ;;  %v2252_v50 = vmul.f32 %v5504_v29, %v1247_v22  ;;  %v6610_v29 = vld [vmem:[#allocation69_spill] sm:$0xff]  ;;  %v1380_v53 = vadd.f32 %v6611_v3, %v5923_v57 }
 0x3be   : > { %2887 = vmatmul.f32.gmra.mxu3 %v2246_v37  ;;  %v1315_v41 = vadd.f32 %v6610_v29, %v5919_v46  ;;  %v1445_v37 = vadd.f32 %v6612_v25, %v5925_v16  ;;  %v6617_v29 = vld [vmem:[#allocation30_spill] sm:$0xff] }
 0x3bf   : > { %2952 = vmatmul.f32.gmra.mxu0 %v2247_v55  ;;  %v2262_v32 = vmul.f32 %v5538_v51, %v1380_v53  ;;  %v6615_v51 = vld [vmem:[#allocation79_spill] sm:$0xff] }
 0x3c0   : > { %v2563_v60 = vpop.f32.mrf.mxu2  ;;  %v2261_v55 = vmul.f32 %v5532_v18, %v1315_v41  ;;  %v2263_v24 = vmul.f32 %v5528_v4, %v1445_v37  ;;  %v1383_v5 = vadd.f32 %v6615_v51, %v5923_v57  ;;  %v6616_v4 = vld [vmem:[#allocation76_spill] sm:$0xff]  ;;  %v1256_v41 = vadd.f32 %v6617_v29, %v5917_v23 }
 0x3c1   : > { %v2564_v9 = vadd.f32 %v2563_v60, %v2498_v17  ;;  %v2628_v35 = vpop.f32.mrf.mxu3  ;;  %v6609_v17 = vld [vmem:[#allocation24_spill] sm:$0xff] }
 0x3c2   : > { %v2501_v54 = vpop.f32.mrf.mxu1  ;;  %v1250_v2 = vadd.f32 %v6609_v17, %v5917_v23  ;;  %v2276_v25 = vmul.f32 %v5558_v28, %v1256_v41  ;;  %v6622_v28 = vld [vmem:[#allocation80_spill] sm:$0xff] }
 0x3c3   : > { %v2629_v6 = vadd.f32 %v2628_v35, %v2564_v9  ;;  %v6613_v35 = vld [vmem:[#allocation27_spill] sm:$0xff] }
 0x3c4   : > { %v2696_v1 = vpop.f32.mrf.mxu0  ;;  %v1253_v56 = vadd.f32 %v6613_v35, %v5917_v23 }
 0x3c5   : > { %2760 = vmatmul.f32.gmra.mxu1 %v2252_v50  ;;  %2825 = vmatmul.f32.gmra.mxu2 %v2253_v39  ;;  %v5997_v58 = vadd.f32 %v2693_v10, %v2629_v6  ;;  %v2260_v10 = vmul.f32 %v5522_v0, %v1250_v2  ;;  %v6614_v0 = vld [vmem:[#allocation72_spill] sm:$0xff]  ;;  %v1448_v50 = vadd.f32 %v6616_v4, %v5925_v16  ;;  %v6625_v4 = vld [vmem:[#allocation17_spill] sm:$0xff] }
 0x3c6   : > { %2890 = vmatmul.f32.gmra.mxu3 %v2254_v40  ;;  %v1318_v43 = vadd.f32 %v6614_v0, %v5919_v46  ;;  %v2268_v39 = vmul.f32 %v5540_v31, %v1253_v56  ;;  %v6618_v31 = vld [vmem:[#allocation75_spill] sm:$0xff]  ;;  %v1324_v56 = vadd.f32 %v6622_v28, %v5919_v46 }
 0x3c7   : > { %2955 = vmatmul.f32.gmra.mxu0 %v2255_v48 }
 0x3c8   : > { %v2566_v21 = vpop.f32.mrf.mxu2  ;;  %v2269_v6 = vmul.f32 %v5550_v11, %v1318_v43 }
 0x3c9   : > { %v2567_v14 = vadd.f32 %v2566_v21, %v2501_v54  ;;  %v2631_v33 = vpop.f32.mrf.mxu3  ;;  %v2271_v21 = vmul.f32 %v5546_v27, %v1448_v50  ;;  %v6620_v27 = vld [vmem:[#allocation78_spill] sm:$0xff] }
 0x3ca   : > { %v2504_v20 = vpop.f32.mrf.mxu1 }
 0x3cb   : > { %v2632_v60 = vadd.f32 %v2631_v33, %v2567_v14  ;;  %v1321_v14 = vadd.f32 %v6618_v31, %v5919_v46  ;;  %v6629_v31 = vld [vmem:[#allocation87_spill] sm:$0xff] }
 0x3cc   : > { %v2699_v22 = vpop.f32.mrf.mxu0 }
 0x3cd   : > { %2763 = vmatmul.f32.gmra.mxu1 %v2260_v10  ;;  %2828 = vmatmul.f32.gmra.mxu2 %v2261_v55  ;;  %v6011_v36 = vadd.f32 %v2696_v1, %v2632_v60  ;;  %v2270_v1 = vmul.f32 %v5556_v12, %v1383_v5  ;;  %v6619_v12 = vld [vmem:[#allocation82_spill] sm:$0xff]  ;;  %v2277_v37 = vmul.f32 %v5568_v8, %v1321_v14 }
 0x3ce   : > { %2893 = vmatmul.f32.gmra.mxu3 %v2262_v32  ;;  %v1386_v3 = vadd.f32 %v6619_v12, %v5923_v57  ;;  %v2285_v5 = vmul.f32 %v5597_v13, %v1324_v56  ;;  %v1392_v14 = vadd.f32 %v6629_v31, %v5923_v57  ;;  %v6636_v56 = vld [vmem:[#allocation86_spill] sm:$0xff] }
 0x3cf   : > { %2958 = vmatmul.f32.gmra.mxu0 %v2263_v24 }
 0x3d0   : > { %v2569_v9 = vpop.f32.mrf.mxu2  ;;  %v2278_v55 = vmul.f32 %v5574_v63, %v1386_v3  ;;  %v6623_v63 = vld [vmem:[#allocation84_spill] sm:$0xff]  ;;  %v6631_v3 = vld [vmem:[#allocation23_spill] sm:$0xff] }
 0x3d1   : > { %v2570_v18 = vadd.f32 %v2569_v9, %v2504_v20  ;;  %v2634_v54 = vpop.f32.mrf.mxu3  ;;  %v1451_v20 = vadd.f32 %v6620_v27, %v5925_v16  ;;  %v6621_v9 = vld [vmem:[#allocation33_spill] sm:$0xff]  ;;  %v1389_v43 = vadd.f32 %v6623_v63, %v5923_v57  ;;  %v6632_v27 = vld [vmem:[#allocation107_spill] sm:$0xff] }
 0x3d2   : > { %v2507_v34 = vpop.f32.mrf.mxu1  ;;  %v1259_v35 = vadd.f32 %v6621_v9, %v5917_v23 }
 0x3d3   : > { %v2635_v40 = vadd.f32 %v2634_v54, %v2570_v18  ;;  %v2279_v32 = vmul.f32 %v5564_v44, %v1451_v20  ;;  %v6624_v44 = vld [vmem:[#allocation81_spill] sm:$0xff]  ;;  %v2286_v50 = vmul.f32 %v6625_v4, %v1389_v43  ;;  %v6637_v43 = vld [vmem:[#allocation90_spill] sm:$0xff] }
 0x3d4   : > { %v2702_v48 = vpop.f32.mrf.mxu0  ;;  %v1454_v54 = vadd.f32 %v6624_v44, %v5925_v16  ;;  %v2284_v51 = vmul.f32 %v5578_v47, %v1259_v35  ;;  %v6628_v47 = vld [vmem:[#allocation83_spill] sm:$0xff]  ;;  %v6635_v35 = vld [vmem:[#allocation41_spill] sm:$0xff] }
 0x3d5   : > { %2766 = vmatmul.f32.gmra.mxu1 %v2268_v39  ;;  %2831 = vmatmul.f32.gmra.mxu2 %v2269_v6  ;;  %v6025_v17 = vadd.f32 %v2699_v22, %v2635_v40  ;;  %v6626_v6 = vld [vmem:[#allocation7_spill] sm:$0xff]  ;;  %v1327_v29 = vadd.f32 %v6628_v47, %v5919_v46  ;;  %v1265_v28 = vadd.f32 %v6635_v35, %v5917_v23 }
 0x3d6   : > { %2896 = vmatmul.f32.gmra.mxu3 %v2270_v1  ;;  %v2287_v40 = vmul.f32 %v6626_v6, %v1454_v54  ;;  %v6638_v54 = vld [vmem:[#allocation88_spill] sm:$0xff] }
 0x3d7   : > { %2961 = vmatmul.f32.gmra.mxu0 %v2271_v21  ;;  %v6627_v21 = vld [vmem:[#allocation37_spill] sm:$0xff]  ;;  %v2293_v20 = vmul.f32 %v6632_v27, %v1327_v29 }
 0x3d8   : > { %v2572_v2 = vpop.f32.mrf.mxu2  ;;  %v6642_v29 = vld [vmem:[#allocation45_spill] sm:$0xff] }
 0x3d9   : > { %v2573_v11 = vadd.f32 %v2572_v2, %v2507_v34  ;;  %v2637_v33 = vpop.f32.mrf.mxu3  ;;  %v1262_v2 = vadd.f32 %v6627_v21, %v5917_v23 }
 0x3da   : > { %v2510_v53 = vpop.f32.mrf.mxu1 }
 0x3db   : > { %v2638_v10 = vadd.f32 %v2637_v33, %v2573_v11  ;;  %v6630_v33 = vld [vmem:[#allocation85_spill] sm:$0xff] }
 0x3dc   : > { %v2705_v60 = vpop.f32.mrf.mxu0  ;;  %v1457_v12 = vadd.f32 %v6630_v33, %v5925_v16 }
 0x3dd   : > { %2769 = vmatmul.f32.gmra.mxu1 %v2276_v25  ;;  %2834 = vmatmul.f32.gmra.mxu2 %v2277_v37  ;;  %v6039_v22 = vadd.f32 %v2702_v48, %v2638_v10  ;;  %v6633_v37 = vld [vmem:[#allocation9_spill] sm:$0xff] }
 0x3de   : > { %2899 = vmatmul.f32.gmra.mxu3 %v2278_v55  ;;  %v2294_v10 = vmul.f32 %v6633_v37, %v1392_v14 }
 0x3df   : > { %2964 = vmatmul.f32.gmra.mxu0 %v2279_v32 }
 0x3e0   : > { %v2575_v24 = vpop.f32.mrf.mxu2 }
 0x3e1   : > { %v2576_v8 = vadd.f32 %v2575_v24, %v2510_v53  ;;  %v2640_v0 = vpop.f32.mrf.mxu3  ;;  %v2292_v53 = vmul.f32 %v6631_v3, %v1262_v2  ;;  %v6645_v3 = vld [vmem:[#allocation91_spill] sm:$0xff] }
 0x3e2   : > { %v2513_v18 = vpop.f32.mrf.mxu1 }
 0x3e3   : > { %v2641_v34 = vadd.f32 %v2640_v0, %v2576_v8  ;;  %v1330_v8 = vadd.f32 %v6636_v56, %v5919_v46  ;;  %v6649_v56 = vld [vmem:[#allocation49_spill] sm:$0xff] }
 0x3e4   : > { %v2708_v39 = vpop.f32.mrf.mxu0 }
 0x3e5   : > { %2772 = vmatmul.f32.gmra.mxu1 %v2284_v51  ;;  %2837 = vmatmul.f32.gmra.mxu2 %v2285_v5  ;;  %v6053_v1 = vadd.f32 %v2705_v60, %v2641_v34  ;;  %v6634_v60 = vld [vmem:[#allocation106_spill] sm:$0xff]  ;;  %v1460_v51 = vadd.f32 %v6638_v54, %v5925_v16  ;;  %v2300_v5 = vmul.f32 %v5684_v7, %v1265_v28  ;;  %v6643_v7 = vld [vmem:[#allocation89_spill] sm:$0xff] }
 0x3e6   : > { %2902 = vmatmul.f32.gmra.mxu3 %v2286_v50  ;;  %v2295_v32 = vmul.f32 %v6634_v60, %v1457_v12  ;;  %v6639_v34 = vld [vmem:[#allocation26_spill] sm:$0xff] }
 0x3e7   : > { %2967 = vmatmul.f32.gmra.mxu0 %v2287_v40  ;;  %v2301_v4 = vmul.f32 %v6639_v34, %v1330_v8  ;;  %v1271_v8 = vadd.f32 %v6649_v56, %v5917_v23 }
 0x3e8   : > { %v2578_v48 = vpop.f32.mrf.mxu2 }
 0x3e9   : > { %v2579_v13 = vadd.f32 %v2578_v48, %v2513_v18  ;;  %v2643_v41 = vpop.f32.mrf.mxu3  ;;  %v1395_v18 = vadd.f32 %v6637_v43, %v5923_v57  ;;  %v6641_v48 = vld [vmem:[#allocation20_spill] sm:$0xff]  ;;  %v2316_v34 = vmul.f32 %v5796_v59, %v1271_v8 }
 0x3ea   : > { %v2516_v11 = vpop.f32.mrf.mxu1  ;;  %v2303_v21 = vmul.f32 %v6641_v48, %v1460_v51  ;;  %v6652_v51 = vld [vmem:[#allocation94_spill] sm:$0xff]  ;;  %v6655_v59 = vld [vmem:[#allocation96_spill] sm:$0xff] }
 0x3eb   : > { %v2644_v25 = vadd.f32 %v2643_v41, %v2579_v13  ;;  %v1268_v13 = vadd.f32 %v6642_v29, %v5917_v23  ;;  %v1333_v41 = vadd.f32 %v6643_v7, %v5919_v46  ;;  %v6654_v29 = vld [vmem:[#allocation52_spill] sm:$0xff]  ;;  %v1339_v7 = vadd.f32 %v6655_v59, %v5919_v46 }
 0x3ec   : > { %v2711_v55 = vpop.f32.mrf.mxu0  ;;  %v6668_v59 = vld [vmem:[#allocation104_spill] sm:$0xff] }
 0x3ed   : > { %2775 = vmatmul.f32.gmra.mxu1 %v2292_v53  ;;  %2840 = vmatmul.f32.gmra.mxu2 %v2293_v20  ;;  %v6067_v24 = vadd.f32 %v2708_v39, %v2644_v25  ;;  %v6640_v39 = vld [vmem:[#allocation108_spill] sm:$0xff]  ;;  %v1463_v53 = vadd.f32 %v6645_v3, %v5925_v16  ;;  %v2308_v27 = vmul.f32 %v5740_v49, %v1268_v13  ;;  %v6646_v20 = vld [vmem:[#allocation109_spill] sm:$0xff] }
 0x3ee   : > { %2905 = vmatmul.f32.gmra.mxu3 %v2294_v10  ;;  %v2302_v6 = vmul.f32 %v6640_v39, %v1395_v18  ;;  %v2309_v25 = vmul.f32 %v6646_v20, %v1333_v41  ;;  %v6647_v10 = vld [vmem:[#allocation111_spill] sm:$0xff]  ;;  %v6650_v49 = vld [vmem:[#allocation93_spill] sm:$0xff]  ;;  %v1274_v13 = vadd.f32 %v6654_v29, %v5917_v23  ;;  %v2325_v3 = vmul.f32 %v5877_v42, %v1339_v7 }
 0x3ef   : > { %2970 = vmatmul.f32.gmra.mxu0 %v2295_v32  ;;  %v6648_v32 = vld [vmem:[#allocation110_spill] sm:$0xff]  ;;  %v6651_v18 = vld [vmem:[#allocation95_spill] sm:$0xff]  ;;  %v1475_v7 = vadd.f32 %v6668_v59, %v5925_v16 }
 0x3f0   : > { %v2581_v9 = vpop.f32.mrf.mxu2 }
 0x3f1   : > { %v2582_v0 = vadd.f32 %v2581_v9, %v2516_v11  ;;  %v2646_v63 = vpop.f32.mrf.mxu3  ;;  %v6644_v11 = vld [vmem:[#allocation92_spill] sm:$0xff]  ;;  %v2311_v9 = vmul.f32 %v6648_v32, %v1463_v53 }
 0x3f2   : > { %v2519_v44 = vpop.f32.mrf.mxu1  ;;  %v1398_v33 = vadd.f32 %v6644_v11, %v5923_v57  ;;  %v6657_v11 = vld [vmem:[#allocation98_spill] sm:$0xff] }
 0x3f3   : > { %v2647_v50 = vadd.f32 %v2646_v63, %v2582_v0  ;;  %v1336_v0 = vadd.f32 %v6650_v49, %v5919_v46  ;;  %v6662_v49 = vld [vmem:[#allocation22_spill] sm:$0xff] }
 0x3f4   : > { %v2714_v40 = vpop.f32.mrf.mxu0 }
 0x3f5   : > { %2778 = vmatmul.f32.gmra.mxu1 %v2300_v5  ;;  %2843 = vmatmul.f32.gmra.mxu2 %v2301_v4  ;;  %v6081_v2 = vadd.f32 %v2711_v55, %v2647_v50  ;;  %v2310_v55 = vmul.f32 %v6647_v10, %v1398_v33  ;;  %v1466_v5 = vadd.f32 %v6652_v51, %v5925_v16  ;;  %v6664_v51 = vld [vmem:[#allocation105_spill] sm:$0xff] }
 0x3f6   : > { %2908 = vmatmul.f32.gmra.mxu3 %v2302_v6  ;;  %v2317_v4 = vmul.f32 %v5830_v62, %v1336_v0  ;;  %v1469_v33 = vadd.f32 %v6657_v11, %v5925_v16  ;;  %v6671_v11 = vld [vmem:[#allocation115_spill] sm:$0xff] }
 0x3f7   : > { %2973 = vmatmul.f32.gmra.mxu0 %v2303_v21 }
 0x3f8   : > { %v2584_v47 = vpop.f32.mrf.mxu2 }
 0x3f9   : > { %v2585_v31 = vadd.f32 %v2584_v47, %v2519_v44  ;;  %v2649_v14 = vpop.f32.mrf.mxu3  ;;  %v1401_v44 = vadd.f32 %v6651_v18, %v5923_v57  ;;  %v6663_v18 = vld [vmem:[#allocation32_spill] sm:$0xff] }
 0x3fa   : > { %v2522_v12 = vpop.f32.mrf.mxu1 }
 0x3fb   : > { %v2650_v37 = vadd.f32 %v2649_v14, %v2585_v31  ;;  %v2318_v39 = vmul.f32 %v5842_v19, %v1401_v44  ;;  %v6656_v19 = vld [vmem:[#allocation97_spill] sm:$0xff] }
 0x3fc   : > { %v2717_v60 = vpop.f32.mrf.mxu0  ;;  %v1404_v31 = vadd.f32 %v6656_v19, %v5923_v57  ;;  %v6670_v19 = vld [vmem:[#allocation114_spill] sm:$0xff] }
 0x3fd   : > { %2781 = vmatmul.f32.gmra.mxu1 %v2308_v27  ;;  %2846 = vmatmul.f32.gmra.mxu2 %v2309_v25  ;;  %v6095_v35 = vadd.f32 %v2714_v40, %v2650_v37  ;;  %v6653_v40 = vld [vmem:[#allocation11_spill] sm:$0xff]  ;;  %v2327_v25 = vmul.f32 %v5862_v45, %v1469_v33  ;;  %v6661_v45 = vld [vmem:[#allocation101_spill] sm:$0xff] }
 0x3fe   : > { %2911 = vmatmul.f32.gmra.mxu3 %v2310_v55  ;;  %v2319_v48 = vmul.f32 %v6653_v40, %v1466_v5  ;;  %v2326_v27 = vmul.f32 %v5884_v30, %v1404_v31  ;;  %v6658_v55 = vld [vmem:[#allocation56_spill] sm:$0xff]  ;;  %v1472_v8 = vadd.f32 %v6661_v45, %v5925_v16 }
 0x3ff   : > { %2976 = vmatmul.f32.gmra.mxu0 %v2311_v9  ;;  %v6660_v30 = vld [vmem:[#allocation100_spill] sm:$0xff] }
 0x400   : > { %v2587_v28 = vpop.f32.mrf.mxu2  ;;  %v2335_v5 = vmul.f32 %v6664_v51, %v1472_v8 }
 0x401   : > { %v2588_v63 = vadd.f32 %v2587_v28, %v2522_v12  ;;  %v2652_v43 = vpop.f32.mrf.mxu3  ;;  %v2324_v12 = vmul.f32 %v5852_v26, %v1274_v13  ;;  %v6659_v26 = vld [vmem:[#allocation99_spill] sm:$0xff]  ;;  %v1407_v28 = vadd.f32 %v6660_v30, %v5923_v57 }
 0x402   : > { %v2525_v54 = vpop.f32.mrf.mxu1  ;;  %v1342_v32 = vadd.f32 %v6659_v26, %v5919_v46 }
 0x403   : > { %v2653_v50 = vadd.f32 %v2652_v43, %v2588_v63  ;;  %v2334_v44 = vmul.f32 %v6663_v18, %v1407_v28 }
 0x404   : > { %v2720_v6 = vpop.f32.mrf.mxu0  ;;  %v2333_v63 = vmul.f32 %v5898_v38, %v1342_v32 }
 0x405   : > { %2784 = vmatmul.f32.gmra.mxu1 %v2316_v34  ;;  %2849 = vmatmul.f32.gmra.mxu2 %v2317_v4  ;;  %v6109_v21 = vadd.f32 %v2717_v60, %v2653_v50  ;;  %v1277_v60 = vadd.f32 %v6658_v55, %v5917_v23  ;;  %v6665_v50 = vld [vmem:[#allocation60_spill] sm:$0xff] }
 0x406   : > { %2914 = vmatmul.f32.gmra.mxu3 %v2318_v39  ;;  %v1280_v39 = vadd.f32 %v6665_v50, %v5917_v23 }
 0x407   : > { %2979 = vmatmul.f32.gmra.mxu0 %v2319_v48  ;;  %v2332_v0 = vmul.f32 %v6662_v49, %v1277_v60 }
 0x408   : > { %v2590_v47 = vpop.f32.mrf.mxu2 }
 0x409   : > { %v2591_v62 = vadd.f32 %v2590_v47, %v2525_v54  ;;  %v2655_v41 = vpop.f32.mrf.mxu3  ;;  %v6667_v47 = vld [vmem:[#allocation103_spill] sm:$0xff] }
 0x40a   : > { %v2528_v14 = vpop.f32.mrf.mxu1  ;;  %v1410_v29 = vadd.f32 %v6667_v47, %v5923_v57 }
 0x40b   : > { %v2656_v53 = vadd.f32 %v2655_v41, %v2591_v62  ;;  %v6669_v62 = vld [vmem:[#allocation28_spill] sm:$0xff] }
 0x40c   : > { %v2723_v20 = vpop.f32.mrf.mxu0  ;;  %v2340_v41 = vmul.f32 %v6669_v62, %v1280_v39  ;;  %v2342_v33 = vmul.f32 %v6671_v11, %v1410_v29 }
 0x40d   : > { %2787 = vmatmul.f32.gmra.mxu1 %v2324_v12  ;;  %2852 = vmatmul.f32.gmra.mxu2 %v2325_v3  ;;  %v6123_v37 = vadd.f32 %v2720_v6, %v2656_v53  ;;  %v6666_v6 = vld [vmem:[#allocation102_spill] sm:$0xff]  ;;  %v6672_v12 = vld [vmem:[#allocation112_spill] sm:$0xff] }
 0x40e   : > { %2917 = vmatmul.f32.gmra.mxu3 %v2326_v27  ;;  %v1345_v40 = vadd.f32 %v6666_v6, %v5919_v46  ;;  %v2343_v3 = vmul.f32 %v6672_v12, %v1475_v7 }
 0x40f   : > { %2982 = vmatmul.f32.gmra.mxu0 %v2327_v25 }
 0x410   : > { %v2593_v10 = vpop.f32.mrf.mxu2  ;;  %v2341_v31 = vmul.f32 %v6670_v19, %v1345_v40 }
 0x411   : > { %v2594_v42 = vadd.f32 %v2593_v10, %v2528_v14  ;;  %v2658_v9 = vpop.f32.mrf.mxu3 }
 0x412   : > { %v2531_v56 = vpop.f32.mrf.mxu1 }
 0x413   : > { %v2659_v43 = vadd.f32 %v2658_v9, %v2594_v42 }
 0x414   : > { %v2726_v54 = vpop.f32.mrf.mxu0 }
 0x415   : > { %2790 = vmatmul.f32.gmra.mxu1 %v2332_v0  ;;  %2855 = vmatmul.f32.gmra.mxu2 %v2333_v63  ;;  %v6137_v34 = vadd.f32 %v2723_v20, %v2659_v43 }
 0x416   : > { %2920 = vmatmul.f32.gmra.mxu3 %v2334_v44 }
 0x417   : > { %2985 = vmatmul.f32.gmra.mxu0 %v2335_v5 }
 0x418   : > { %v2596_v4 = vpop.f32.mrf.mxu2 }
 0x419   : > { %v2597_v38 = vadd.f32 %v2596_v4, %v2531_v56  ;;  %v2661_v48 = vpop.f32.mrf.mxu3 }
 0x41a   : > { %v2534_v13 = vpop.f32.mrf.mxu1 }
 0x41b   : > { %v2662_v14 = vadd.f32 %v2661_v48, %v2597_v38 }
 0x41c   : > { %v2729_v23 = vpop.f32.mrf.mxu0 }
 0x41d   : > { %2793 = vmatmul.f32.gmra.mxu1 %v2340_v41  ;;  %2858 = vmatmul.f32.gmra.mxu2 %v2341_v31  ;;  %v6151_v46 = vadd.f32 %v2726_v54, %v2662_v14 }
 0x41e   : > { %2923 = vmatmul.f32.gmra.mxu3 %v2342_v33 }
 0x41f   : > { %2988 = vmatmul.f32.gmra.mxu0 %v2343_v3 }
 0x420   : > { %v2599_v57 = vpop.f32.mrf.mxu2 }
 0x421   : > { %v2600_v53 = vadd.f32 %v2599_v57, %v2534_v13  ;;  %v2664_v27 = vpop.f32.mrf.mxu3 }
 0x422   : > { %v2749_v16 = vpop.f32.mrf.mxu1 }
 0x423   : > { %v2665_v20 = vadd.f32 %v2664_v27, %v2600_v53  ;;  %v2750_v25 = vadd.f32 %v2749_v16, %v5955_v15 }
 0x424   : > { %v2944_v10 = vpop.f32.mrf.mxu0 }
 0x425   : > { %v6154_v55 = vadd.f32 %v2729_v23, %v2665_v20 }
 0x428   : > { %v2814_v60 = vpop.f32.mrf.mxu2 }
 0x429   : > { %v2815_v26 = vadd.f32 %v2814_v60, %v2750_v25  ;;  %v2879_v32 = vpop.f32.mrf.mxu3 }
 0x42a   : > { %v2752_v42 = vpop.f32.mrf.mxu1 }
 0x42b   : > { %v2880_v9 = vadd.f32 %v2879_v32, %v2815_v26  ;;  %v2753_v30 = vadd.f32 %v2752_v42, %v5969_v52 }
 0x42c   : > { %v2947_v28 = vpop.f32.mrf.mxu0 }
 0x42d   : > { %v6157_v56 = vadd.f32 %v2944_v10, %v2880_v9 }
 0x430   : > { %v2817_v45 = vpop.f32.mrf.mxu2 }
 0x431   : > { %v2818_v8 = vadd.f32 %v2817_v45, %v2753_v30  ;;  %v2882_v49 = vpop.f32.mrf.mxu3 }
 0x432   : > { %v2755_v0 = vpop.f32.mrf.mxu1 }
 0x433   : > { %v2883_v63 = vadd.f32 %v2882_v49, %v2818_v8  ;;  %v2756_v15 = vadd.f32 %v2755_v0, %v5983_v61 }
 0x434   : > { %v2950_v43 = vpop.f32.mrf.mxu0 }
 0x435   : > { %v6160_v18 = vadd.f32 %v2947_v28, %v2883_v63 }
 0x438   : > { %v2820_v44 = vpop.f32.mrf.mxu2 }
 0x439   : > { %v2821_v54 = vadd.f32 %v2820_v44, %v2756_v15  ;;  %v2885_v51 = vpop.f32.mrf.mxu3 }
 0x43a   : > { %v2758_v5 = vpop.f32.mrf.mxu1 }
 0x43b   : > { %v2886_v4 = vadd.f32 %v2885_v51, %v2821_v54  ;;  %v2759_v52 = vadd.f32 %v2758_v5, %v5997_v58 }
 0x43c   : > { %v2953_v50 = vpop.f32.mrf.mxu0 }
 0x43d   : > { %v6163_v39 = vadd.f32 %v2950_v43, %v2886_v4 }
 0x440   : > { %v2823_v6 = vpop.f32.mrf.mxu2 }
 0x441   : > { %v2824_v40 = vadd.f32 %v2823_v6, %v2759_v52  ;;  %v2888_v38 = vpop.f32.mrf.mxu3 }
 0x442   : > { %v2761_v48 = vpop.f32.mrf.mxu1 }
 0x443   : > { %v2889_v47 = vadd.f32 %v2888_v38, %v2824_v40  ;;  %v2762_v61 = vadd.f32 %v2761_v48, %v6011_v36 }
 0x444   : > { %v2956_v29 = vpop.f32.mrf.mxu0 }
 0x445   : > { %v6166_v13 = vadd.f32 %v2953_v50, %v2889_v47 }
 0x448   : > { %v2826_v59 = vpop.f32.mrf.mxu2 }
 0x449   : > { %v2827_v7 = vadd.f32 %v2826_v59, %v2762_v61  ;;  %v2891_v62 = vpop.f32.mrf.mxu3 }
 0x44a   : > { %v2764_v41 = vpop.f32.mrf.mxu1 }
 0x44b   : > { %v2892_v19 = vadd.f32 %v2891_v62, %v2827_v7  ;;  %v2765_v58 = vadd.f32 %v2764_v41, %v6025_v17 }
 0x44c   : > { %v2959_v31 = vpop.f32.mrf.mxu0 }
 0x44d   : > { %v6169_v14 = vadd.f32 %v2956_v29, %v2892_v19 }
 0x450   : > { %v2829_v11 = vpop.f32.mrf.mxu2 }
 0x451   : > { %v2830_v33 = vadd.f32 %v2829_v11, %v2765_v58  ;;  %v2894_v23 = vpop.f32.mrf.mxu3 }
 0x452   : > { %v2767_v12 = vpop.f32.mrf.mxu1 }
 0x453   : > { %v2895_v3 = vadd.f32 %v2894_v23, %v2830_v33  ;;  %v2768_v36 = vadd.f32 %v2767_v12, %v6039_v22 }
 0x454   : > { %v2962_v57 = vpop.f32.mrf.mxu0 }
 0x455   : > { %v6172_v53 = vadd.f32 %v2959_v31, %v2895_v3 }
 0x458   : > { %v2832_v27 = vpop.f32.mrf.mxu2 }
 0x459   : > { %v2833_v16 = vadd.f32 %v2832_v27, %v2768_v36  ;;  %v2897_v20 = vpop.f32.mrf.mxu3 }
 0x45a   : > { %v2770_v25 = vpop.f32.mrf.mxu1 }
 0x45b   : > { %v2898_v10 = vadd.f32 %v2897_v20, %v2833_v16  ;;  %v2771_v17 = vadd.f32 %v2770_v25, %v6053_v1 }
 0x45c   : > { %v2965_v60 = vpop.f32.mrf.mxu0 }
 0x45d   : > { %v6175_v26 = vadd.f32 %v2962_v57, %v2898_v10 }
 0x460   : > { %v2835_v32 = vpop.f32.mrf.mxu2 }
 0x461   : > { %v2836_v42 = vadd.f32 %v2835_v32, %v2771_v17  ;;  %v2900_v9 = vpop.f32.mrf.mxu3 }
 0x462   : > { %v2773_v30 = vpop.f32.mrf.mxu1 }
 0x463   : > { %v2901_v28 = vadd.f32 %v2900_v9, %v2836_v42  ;;  %v2774_v22 = vadd.f32 %v2773_v30, %v6067_v24 }
 0x464   : > { %v2968_v45 = vpop.f32.mrf.mxu0 }
 0x465   : > { %v6178_v8 = vadd.f32 %v2965_v60, %v2901_v28 }
 0x468   : > { %v2838_v49 = vpop.f32.mrf.mxu2 }
 0x469   : > { %v2839_v0 = vadd.f32 %v2838_v49, %v2774_v22  ;;  %v2903_v63 = vpop.f32.mrf.mxu3 }
 0x46a   : > { %v2776_v15 = vpop.f32.mrf.mxu1 }
 0x46b   : > { %v2904_v43 = vadd.f32 %v2903_v63, %v2839_v0  ;;  %v2777_v28 = vadd.f32 %v2776_v15, %v6081_v2  ;;  %v3000_v2 = vld [vmem:[%s3943_s23] sm:$0xff] }
 0x46c   : > { %v2971_v44 = vpop.f32.mrf.mxu0  ;;  %v3004_v15 = vld [vmem:[%s3943_s23 + $0x20] sm:$0xff] }
 0x46d   : > { %v2969_v1 = vadd.f32 %v2968_v45, %v2904_v43 }
 0x470   : > { %v2841_v54 = vpop.f32.mrf.mxu2 }
 0x471   : > { %v2906_v51 = vpop.f32.mrf.mxu3 }
 0x472   : > { %v2779_v5 = vpop.f32.mrf.mxu1 }
 0x473   : > { %v2780_v9 = vadd.f32 %v2779_v5, %v6095_v35 }
 0x474   : > { %v2974_v4 = vpop.f32.mrf.mxu0 }
 0x478   : > { %v2844_v52 = vpop.f32.mrf.mxu2 }
 0x479   : > { %v2909_v50 = vpop.f32.mrf.mxu3 }
 0x47a   : > { %v2782_v6 = vpop.f32.mrf.mxu1 }
 0x47b   : > { %v2783_v10 = vadd.f32 %v2782_v6, %v6109_v21 }
 0x47c   : > { %v2977_v40 = vpop.f32.mrf.mxu0 }
 0x480   : > { %v2847_v38 = vpop.f32.mrf.mxu2 }
 0x481   : > { %v2912_v24 = vpop.f32.mrf.mxu3 }
 0x482   : > { %v2785_v48 = vpop.f32.mrf.mxu1 }
 0x483   : > { %v2786_v27 = vadd.f32 %v2785_v48, %v6123_v37  ;;  %v2842_v37 = vadd.f32 %v2841_v54, %v2777_v28  ;;  %v2996_v48 = vld [vmem:[#allocation2 + $0x20] sm:$0xff] }
 0x484   : > { %v2980_v47 = vpop.f32.mrf.mxu0 }
 0x485   : > { %v2907_v43 = vadd.f32 %v2906_v51, %v2842_v37 }
 0x487   : > { %v2972_v5 = vadd.f32 %v2971_v44, %v2907_v43 }
 0x488   : > { %v2850_v61 = vpop.f32.mrf.mxu2 }
 0x489   : > { %v2915_v29 = vpop.f32.mrf.mxu3  ;;  %v2851_v17 = vadd.f32 %v2850_v61, %v2786_v27 }
 0x48a   : > { %v2788_v59 = vpop.f32.mrf.mxu1 }
 0x48b   : > { %v2789_v12 = vadd.f32 %v2788_v59, %v6137_v34  ;;  %v2916_v22 = vadd.f32 %v2915_v29, %v2851_v17  ;;  %v2997_v29 = vld [vmem:[#allocation2 + $0x28] sm:$0xff] }
 0x48c   : > { %v2983_v7 = vpop.f32.mrf.mxu0 }
 0x48d   : > { %v2981_v63 = vadd.f32 %v2980_v47, %v2916_v22 }
 0x490   : > { %v2853_v62 = vpop.f32.mrf.mxu2 }
 0x491   : > { %v2918_v41 = vpop.f32.mrf.mxu3  ;;  %v2854_v16 = vadd.f32 %v2853_v62, %v2789_v12  ;;  %v2998_v62 = vld [vmem:[#allocation2 + $0x30] sm:$0xff] }
 0x492   : > { %v2791_v19 = vpop.f32.mrf.mxu1 }
 0x493   : > { %v2792_v23 = vadd.f32 %v2791_v19, %v6151_v46  ;;  %v2848_v46 = vadd.f32 %v2847_v38, %v2783_v10  ;;  %v2919_v30 = vadd.f32 %v2918_v41, %v2854_v16 }
 0x494   : > { %v2986_v11 = vpop.f32.mrf.mxu0 }
 0x495   : > { %v2913_v49 = vadd.f32 %v2912_v24, %v2848_v46  ;;  %v2984_v0 = vadd.f32 %v2983_v7, %v2919_v30 }
 0x497   : > { %v2978_v6 = vadd.f32 %v2977_v40, %v2913_v49  ;;  %v2995_v40 = vld [vmem:[#allocation2 + $0x18] sm:$0xff] }
 0x498   : > { %v2856_v58 = vpop.f32.mrf.mxu2 }
 0x499   : > { %v2921_v31 = vpop.f32.mrf.mxu3  ;;  %v2857_v3 = vadd.f32 %v2856_v58, %v2792_v23  ;;  %v2999_v58 = vld [vmem:[#allocation2 + $0x38] sm:$0xff] }
 0x49a   : > { %v2794_v33 = vpop.f32.mrf.mxu1 }
 0x49b   : > { %v2795_v36 = vadd.f32 %v2794_v33, %v6154_v55  ;;  %v2922_v60 = vadd.f32 %v2921_v31, %v2857_v3  ;;  %v2845_v55 = vadd.f32 %v2844_v52, %v2780_v9 }
 0x49c   : > { %v2989_v42 = vpop.f32.mrf.mxu0 }
 0x49d   : > { %v2987_v45 = vadd.f32 %v2986_v11, %v2922_v60  ;;  %v2910_v21 = vadd.f32 %v2909_v50, %v2845_v55 }
 0x49f   : > { %v2975_v35 = vadd.f32 %v2974_v4, %v2910_v21  ;;  %v2994_v4 = vld [vmem:[#allocation2 + $0x10] sm:$0xff] }
 0x4a0   : > { %v2859_v57 = vpop.f32.mrf.mxu2 }
 0x4a1   : > { %v2860_v20 = vadd.f32 %v2859_v57, %v2795_v36  ;;  %v2924_v25 = vpop.f32.mrf.mxu3 }
 0x4a3   : > { %v2925_v32 = vadd.f32 %v2924_v25, %v2860_v20 }
 0x4a5   : > { %v2990_v34 = vadd.f32 %v2989_v42, %v2925_v32 }
 0x4a7   : > { %3008 = vmatpush.msra.mxu1 %v2990_v34 }
 0x4a9   : > { %3009 = vmatpush.msra.mxu1 %v2987_v45 }
 0x4ab   : > { %3010 = vmatpush.msra.mxu1 %v2984_v0 }
 0x4ad   : > { %3011 = vmatpush.msra.mxu1 %v2981_v63 }
 0x4af   : > { %3012 = vmatpush.msra.mxu1 %v2978_v6 }
 0x4b1   : > { %3013 = vmatpush.msra.mxu1 %v2975_v35 }
 0x4b3   : > { %3014 = vmatpush.msra.mxu1 %v2972_v5 }
 0x4b5   : > { %3015 = vmatpush.msra.mxu1 %v2969_v1 }
 0x4b7   : > { %3016 = vmatpush.msra.mxu1 %v6178_v8  ;;  %v3001_v8 = vld [vmem:[%s3943_s23 + $0x8] sm:$0xff] }
 0x4b9   : > { %3017 = vmatpush.msra.mxu1 %v6175_v26  ;;  %v3002_v26 = vld [vmem:[%s3943_s23 + $0x10] sm:$0xff] }
 0x4bb   : > { %3018 = vmatpush.msra.mxu1 %v6172_v53  ;;  %v3003_v53 = vld [vmem:[%s3943_s23 + $0x18] sm:$0xff] }
 0x4bd   : > { %3019 = vmatpush.msra.mxu1 %v6169_v14  ;;  %v3005_v14 = vld [vmem:[%s3943_s23 + $0x28] sm:$0xff] }
 0x4bf   : > { %3020 = vmatpush.msra.mxu1 %v6166_v13  ;;  %v3006_v13 = vld [vmem:[%s3943_s23 + $0x30] sm:$0xff] }
 0x4c1   : > { %3021 = vmatpush.msra.mxu1 %v6163_v39  ;;  %v3007_v39 = vld [vmem:[%s3943_s23 + $0x38] sm:$0xff] }
 0x4c3   : > { %3022 = vmatpush.msra.mxu1 %v6160_v18  ;;  %v2992_v18 = vld [vmem:[#allocation2] sm:$0xff] }
 0x4c5   : > { %3023 = vmatpush.msra.mxu1 %v6157_v56  ;;  %v2993_v56 = vld [vmem:[#allocation2 + $0x8] sm:$0xff] }
 0x4c6   : > { %3024 = vmatmul.f32.vlgmr.msra.gmra.mxu1 %v3000_v2 }
 0x4ce   : > { %3027 = vmatmul.f32.gmra.mxu1 %v3001_v8 }
 0x4d6   : > { %3030 = vmatmul.f32.gmra.mxu1 %v3002_v26 }
 0x4de   : > { %3033 = vmatmul.f32.gmra.mxu1 %v3003_v53 }
 0x4e6   : > { %3036 = vmatmul.f32.gmra.mxu1 %v3004_v15 }
 0x4ee   : > { %3039 = vmatmul.f32.gmra.mxu1 %v3005_v14 }
 0x4f6   : > { %3042 = vmatmul.f32.gmra.mxu1 %v3006_v13 }
 0x4fe   : > { %3045 = vmatmul.f32.gmra.mxu1 %v3007_v39 }
 0x543   : > { %v3025_v44 = vpop.f32.mrf.mxu1 }
 0x544   : > { %v3049_v1 = vadd.f32 %v3025_v44, %v2992_v18 }
 0x546   : > { %3057 = vst.msk [vmem:[#allocation2] sm:$0xff] %vm1647_vm3, %v3049_v1 }
 0x54b   : > { %v3028_v54 = vpop.f32.mrf.mxu1 }
 0x54c   : > { %v3050_v51 = vadd.f32 %v3028_v54, %v2993_v56 }
 0x54e   : > { %3058 = vst.msk [vmem:[#allocation2 + $0x8] sm:$0xff] %vm1647_vm3, %v3050_v51 }
 0x553   : > { %v3031_v52 = vpop.f32.mrf.mxu1 }
 0x554   : > { %v3051_v50 = vadd.f32 %v3031_v52, %v2994_v4 }
 0x556   : > { %3059 = vst.msk [vmem:[#allocation2 + $0x10] sm:$0xff] %vm1647_vm3, %v3051_v50 }
 0x55b   : > { %v3034_v38 = vpop.f32.mrf.mxu1 }
 0x55c   : > { %v3052_v24 = vadd.f32 %v3034_v38, %v2995_v40 }
 0x55e   : > { %3060 = vst.msk [vmem:[#allocation2 + $0x18] sm:$0xff] %vm1647_vm3, %v3052_v24 }
 0x563   : > { %v3037_v47 = vpop.f32.mrf.mxu1 }
 0x564   : > { %v3053_v61 = vadd.f32 %v3037_v47, %v2996_v48 }
 0x566   : > { %3061 = vst.msk [vmem:[#allocation2 + $0x20] sm:$0xff] %vm1647_vm3, %v3053_v61 }
 0x56b   : > { %v3040_v59 = vpop.f32.mrf.mxu1 }
 0x56c   : > { %v3054_v7 = vadd.f32 %v3040_v59, %v2997_v29 }
 0x56e   : > { %3062 = vst.msk [vmem:[#allocation2 + $0x28] sm:$0xff] %vm1647_vm3, %v3054_v7 }
 0x573   : > { %v3043_v41 = vpop.f32.mrf.mxu1 }
 0x574   : > { %v3055_v19 = vadd.f32 %v3043_v41, %v2998_v62 }
 0x576   : > { %3063 = vst.msk [vmem:[#allocation2 + $0x30] sm:$0xff] %vm1647_vm3, %v3055_v19 }
 0x57a   : > { %3068 = sbr.rel (%p3687_p10) target bundleno = 1852 (0x73c), region = 130 }
 0x57b   : > { %v3046_v31 = vpop.f32.mrf.mxu1 }
 0x57c   : > { %v3056_v11 = vadd.f32 %v3046_v31, %v2999_v58 }
 0x57e   : > { %3064 = vst.msk [vmem:[#allocation2 + $0x38] sm:$0xff] %vm1647_vm3, %v3056_v11 }
 0x57f   : > { %v3088_v33 = vld [vmem:[%s6357_s10 + $0x18] sm:$0xff]  ;;  %v3087_v23 = vld [vmem:[%s6357_s10 + $0x10] sm:$0xff]  ;;  %v3086_v12 = vld [vmem:[%s6357_s10 + $0x8] sm:$0xff]  ;;  %vm3336_vm4 = vcmask 15360  }
 0x580   : > { %3125 = vmatpush.msra.mxu0 %v3088_v33  ;;  %3720 = vmatpush.msra.mxu3 %v3088_v33  ;;  %v3085_v3 = vld [vmem:[%s6357_s10] sm:$0xff]  ;;  %v3075_v57 = vld [vmem:[%s6350_s3 + $0x30] sm:$0xff]  ;;  %v3070_v27 = vld [vmem:[%s6350_s3 + $0x8] sm:$0xff] }
 0x581   : > { %v3069_v36 = vld [vmem:[%s6350_s3] sm:$0xff]  ;;  %v3076_v16 = vld [vmem:[%s6350_s3 + $0x38] sm:$0xff]  ;;  %v3071_v20 = vld [vmem:[%s6350_s3 + $0x10] sm:$0xff] }
 0x582   : > { %3126 = vmatpush.msra.mxu0 %v3087_v23  ;;  %3721 = vmatpush.msra.mxu3 %v3087_v23  ;;  %v3072_v25 = vld [vmem:[%s6350_s3 + $0x18] sm:$0xff]  ;;  %v3073_v10 = vld [vmem:[%s6350_s3 + $0x20] sm:$0xff]  ;;  %v3074_v17 = vld [vmem:[%s6350_s3 + $0x28] sm:$0xff] }
 0x583   : > { %v3185_v60 = vld [vmem:[%s6359_s12 + $0x18] sm:$0xff]  ;;  %v3184_v32 = vld [vmem:[%s6359_s12 + $0x10] sm:$0xff]  ;;  %v3183_v42 = vld [vmem:[%s6359_s12 + $0x8] sm:$0xff] }
 0x584   : > { %3127 = vmatpush.msra.mxu0 %v3086_v12  ;;  %3722 = vmatpush.msra.mxu3 %v3086_v12  ;;  %v3182_v9 = vld [vmem:[%s6359_s12] sm:$0xff]  ;;  %v3083_v22 = vld [vmem:[#allocation2 + $0x30] sm:$0xff]  ;;  %v3078_v37 = vld [vmem:[#allocation2 + $0x8] sm:$0xff] }
 0x585   : > { %3226 = vmatpush.msra.mxu1 %v3185_v60  ;;  %v3077_v46 = vld [vmem:[#allocation2] sm:$0xff]  ;;  %v3084_v5 = vld [vmem:[#allocation2 + $0x38] sm:$0xff]  ;;  %v3079_v8 = vld [vmem:[#allocation2 + $0x10] sm:$0xff] }
 0x586   : > { %3128 = vmatpush.msra.mxu0 %v3085_v3  ;;  %3723 = vmatpush.msra.mxu3 %v3085_v3  ;;  %v3778_v30 = vld [vmem:[%s6358_s11] ss:$0 sm:$0xff]  ;;  %v3266_v15 = vld [vmem:[%s6361_s14 + $0x18] sm:$0xff]  ;;  %v3082_v47 = vld [vmem:[#allocation2 + $0x28] sm:$0xff] }
 0x587   : > { %3688 = vmatmul.msk.f32.vlgmr.msra.gmra.mxu0 %vm1647_vm3, %v3069_v36  ;;  %3694 = vmatmul.msk.f32.vlgmr.msra.gmra.mxu3 %vm1647_vm3, %v3075_v57  ;;  %v3080_v56 = vld [vmem:[#allocation2 + $0x18] sm:$0xff]  ;;  %v3081_v50 = vld [vmem:[#allocation2 + $0x20] sm:$0xff]  ;;  %v3265_v62 = vld [vmem:[%s6361_s14 + $0x10] sm:$0xff] }
 0x588   : > { %3724 = vmatpush.msrb.mxu3 %v3185_v60  ;;  %3227 = vmatpush.msra.mxu1 %v3184_v32  ;;  %v3264_v41 = vld [vmem:[%s6361_s14 + $0x8] sm:$0xff]  ;;  %v3263_v19 = vld [vmem:[%s6361_s14] sm:$0xff] }
 0x589   : > { %3307 = vmatpush.msra.mxu2 %v3266_v15  ;;  %v3779_v58 = vld [vmem:[%s6360_s13] ss:$0 sm:$0xff] }
 0x58a   : > { %3725 = vmatpush.msrb.mxu3 %v3184_v32  ;;  %3228 = vmatpush.msra.mxu1 %v3183_v42 }
 0x58b   : > { %3308 = vmatpush.msra.mxu2 %v3265_v62 }
 0x58c   : > { %3726 = vmatpush.msrb.mxu3 %v3183_v42  ;;  %3229 = vmatpush.msra.mxu1 %v3182_v9 }
 0x58d   : > { %3309 = vmatpush.msra.mxu2 %v3264_v41 }
 0x58e   : > { %3727 = vmatpush.msrb.mxu3 %v3182_v9 }
 0x58f   : > { %3689 = vmatmul.msk.f32.gmra.mxu0 %vm1647_vm3, %v3070_v27  ;;  %3695 = vmatmul.msk.f32.gmra.mxu3 %vm1647_vm3, %v3076_v16 }
 0x590   : > { %3728 = vmatpush.msra.mxu3 %v3266_v15  ;;  %3310 = vmatpush.msra.mxu2 %v3263_v19 }
 0x592   : > { %3729 = vmatpush.msra.mxu3 %v3265_v62 }
 0x594   : > { %3730 = vmatpush.msra.mxu3 %v3264_v41 }
 0x596   : > { %3731 = vmatpush.msra.mxu3 %v3263_v19 }
 0x597   : > { %3690 = vmatmul.msk.f32.gmra.mxu0 %vm1647_vm3, %v3071_v20 }
 0x59f   : > { %3691 = vmatmul.msk.f32.gmra.mxu0 %vm1647_vm3, %v3072_v25 }
 0x5a7   : > { %3692 = vmatmul.msk.f32.gmra.mxu0 %vm1647_vm3, %v3073_v10 }
 0x5af   : > { %3693 = vmatmul.msk.f32.gmra.mxu0 %vm1647_vm3, %v3074_v17 }
 0x604   : > { %v3130_v34 = vpop.f32.mrf.mxu0 }
 0x605   : > { %v3154_v28 = vadd.f32 %v3130_v34, %v3077_v46 }
 0x607   : > { %v3166_v55 = vadd.f32 %v3778_v30, %v3154_v28 }
 0x609   : > { %v3174_v45 = vmax.f32 %v3166_v55, 0.0 }
 0x60a   : > { %v3148_v49 = vpop.f32.mrf.mxu3 }
 0x60b   : > { %3696 = vmatmul.msk.f32.vlgmr.msra.gmra.mxu1 %vm1647_vm3, %v3174_v45  ;;  %v3160_v0 = vadd.f32 %v3148_v49, %v3083_v22  ;;  %v3780_v45 = vld [vmem:[%s6362_s15] ss:$0 sm:$0xff] }
 0x60c   : > { %v3133_v21 = vpop.f32.mrf.mxu0 }
 0x60d   : > { %v3155_v63 = vadd.f32 %v3133_v21, %v3078_v37  ;;  %v3172_v43 = vadd.f32 %v3778_v30, %v3160_v0 }
 0x60f   : > { %v3167_v6 = vadd.f32 %v3778_v30, %v3155_v63  ;;  %v3180_v35 = vmax.f32 %v3172_v43, 0.0 }
 0x611   : > { %v3175_v2 = vmax.f32 %v3167_v6, 0.0  ;;  %3702 = vmatmul.msk.f32.vlgmr.msrb.gmra.mxu3 %vm1647_vm3, %v3180_v35 }
 0x612   : > { %v3151_v26 = vpop.f32.mrf.mxu3 }
 0x613   : > { %3697 = vmatmul.msk.f32.gmra.mxu1 %vm1647_vm3, %v3175_v2  ;;  %v3161_v53 = vadd.f32 %v3151_v26, %v3084_v5 }
 0x614   : > { %v3136_v14 = vpop.f32.mrf.mxu0 }
 0x615   : > { %v3156_v13 = vadd.f32 %v3136_v14, %v3079_v8  ;;  %v3173_v39 = vadd.f32 %v3778_v30, %v3161_v53 }
 0x617   : > { %v3168_v18 = vadd.f32 %v3778_v30, %v3156_v13  ;;  %v3181_v44 = vmax.f32 %v3173_v39, 0.0 }
 0x619   : > { %v3176_v1 = vmax.f32 %v3168_v18, 0.0  ;;  %3703 = vmatmul.msk.f32.gmra.mxu3 %vm1647_vm3, %v3181_v44 }
 0x61b   : > { %3698 = vmatmul.msk.f32.gmra.mxu1 %vm1647_vm3, %v3176_v1 }
 0x61c   : > { %v3139_v54 = vpop.f32.mrf.mxu0 }
 0x61d   : > { %v3157_v51 = vadd.f32 %v3139_v54, %v3080_v56 }
 0x61f   : > { %v3169_v4 = vadd.f32 %v3778_v30, %v3157_v51 }
 0x621   : > { %v3177_v52 = vmax.f32 %v3169_v4, 0.0 }
 0x623   : > { %3699 = vmatmul.msk.f32.gmra.mxu1 %vm1647_vm3, %v3177_v52 }
 0x624   : > { %v3142_v40 = vpop.f32.mrf.mxu0 }
 0x625   : > { %v3158_v38 = vadd.f32 %v3142_v40, %v3081_v50 }
 0x627   : > { %v3170_v24 = vadd.f32 %v3778_v30, %v3158_v38 }
 0x629   : > { %v3178_v48 = vmax.f32 %v3170_v24, 0.0 }
 0x62b   : > { %3700 = vmatmul.msk.f32.gmra.mxu1 %vm1647_vm3, %v3178_v48 }
 0x62c   : > { %v3145_v61 = vpop.f32.mrf.mxu0 }
 0x62d   : > { %v3159_v29 = vadd.f32 %v3145_v61, %v3082_v47 }
 0x62f   : > { %v3171_v59 = vadd.f32 %v3778_v30, %v3159_v29 }
 0x631   : > { %v3179_v7 = vmax.f32 %v3171_v59, 0.0 }
 0x633   : > { %3701 = vmatmul.msk.f32.gmra.mxu1 %vm1647_vm3, %v3179_v7 }
 0x688   : > { %v3231_v31 = vpop.f32.mrf.mxu1 }
 0x689   : > { %v3232_v11 = vadd.f32 %v3779_v58, %v3231_v31 }
 0x68b   : > { %v3255_v33 = vmax.f32 %v3232_v11, 0.0 }
 0x68d   : > { %3704 = vmatmul.msk.f32.vlgmr.msra.gmra.mxu2 %vm1647_vm3, %v3255_v33 }
 0x690   : > { %v3234_v23 = vpop.f32.mrf.mxu1 }
 0x691   : > { %v3235_v12 = vadd.f32 %v3779_v58, %v3234_v23 }
 0x693   : > { %v3256_v3 = vmax.f32 %v3235_v12, 0.0 }
 0x694   : > { %v3249_v36 = vpop.f32.mrf.mxu3 }
 0x695   : > { %3705 = vmatmul.msk.f32.gmra.mxu2 %vm1647_vm3, %v3256_v3  ;;  %v3250_v57 = vadd.f32 %v3779_v58, %v3249_v36 }
 0x697   : > { %v3261_v27 = vmax.f32 %v3250_v57, 0.0 }
 0x698   : > { %v3237_v16 = vpop.f32.mrf.mxu1 }
 0x699   : > { %v3238_v20 = vadd.f32 %v3779_v58, %v3237_v16  ;;  %3710 = vmatmul.msk.f32.vlgmr.msra.gmra.mxu3 %vm1647_vm3, %v3261_v27 }
 0x69b   : > { %v3257_v25 = vmax.f32 %v3238_v20, 0.0 }
 0x69c   : > { %v3252_v10 = vpop.f32.mrf.mxu3 }
 0x69d   : > { %3706 = vmatmul.msk.f32.gmra.mxu2 %vm1647_vm3, %v3257_v25  ;;  %v3253_v17 = vadd.f32 %v3779_v58, %v3252_v10 }
 0x69f   : > { %v3262_v60 = vmax.f32 %v3253_v17, 0.0 }
 0x6a0   : > { %v3240_v32 = vpop.f32.mrf.mxu1 }
 0x6a1   : > { %v3241_v42 = vadd.f32 %v3779_v58, %v3240_v32  ;;  %3711 = vmatmul.msk.f32.gmra.mxu3 %vm1647_vm3, %v3262_v60 }
 0x6a3   : > { %v3258_v9 = vmax.f32 %v3241_v42, 0.0 }
 0x6a5   : > { %3707 = vmatmul.msk.f32.gmra.mxu2 %vm1647_vm3, %v3258_v9 }
 0x6a8   : > { %v3243_v46 = vpop.f32.mrf.mxu1 }
 0x6a9   : > { %v3244_v30 = vadd.f32 %v3779_v58, %v3243_v46 }
 0x6ab   : > { %v3259_v34 = vmax.f32 %v3244_v30, 0.0 }
 0x6ad   : > { %3708 = vmatmul.msk.f32.gmra.mxu2 %vm1647_vm3, %v3259_v34 }
 0x6b0   : > { %v3246_v28 = vpop.f32.mrf.mxu1 }
 0x6b1   : > { %v3247_v55 = vadd.f32 %v3779_v58, %v3246_v28 }
 0x6b3   : > { %v3260_v22 = vmax.f32 %v3247_v55, 0.0 }
 0x6b5   : > { %3709 = vmatmul.msk.f32.gmra.mxu2 %vm1647_vm3, %v3260_v22 }
 0x710   : > { %v3312_v37 = vpop.f32.mrf.mxu2 }
 0x711   : > { %v3313_v49 = vadd.f32 %v3780_v45, %v3312_v37 }
 0x713   : > { %3337 = vst.msk [vmem:[%s6363_s16] sm:$0xff] %vm3336_vm4, %v3313_v49 }
 0x718   : > { %v3315_v0 = vpop.f32.mrf.mxu2 }
 0x719   : > { %v3316_v21 = vadd.f32 %v3780_v45, %v3315_v0 }
 0x71b   : > { %3338 = vst.msk [vmem:[%s6363_s16 + $0x8] sm:$0xff] %vm3336_vm4, %v3316_v21 }
 0x71c   : > { %v3330_v63 = vpop.f32.mrf.mxu3 }
 0x71d   : > { %v3331_v43 = vadd.f32 %v3780_v45, %v3330_v63 }
 0x71f   : > { %3343 = vst.msk [vmem:[%s6363_s16 + $0x30] sm:$0xff] %vm3336_vm4, %v3331_v43 }
 0x720   : > { %v3318_v6 = vpop.f32.mrf.mxu2 }
 0x721   : > { %v3319_v35 = vadd.f32 %v3780_v45, %v3318_v6 }
 0x723   : > { %3339 = vst.msk [vmem:[%s6363_s16 + $0x10] sm:$0xff] %vm3336_vm4, %v3319_v35 }
 0x724   : > { %v3333_v5 = vpop.f32.mrf.mxu3 }
 0x725   : > { %v3334_v2 = vadd.f32 %v3780_v45, %v3333_v5 }
 0x727   : > { %3344 = vst.msk [vmem:[%s6363_s16 + $0x38] sm:$0xff] %vm3336_vm4, %v3334_v2 }
 0x728   : > { %v3321_v8 = vpop.f32.mrf.mxu2 }
 0x729   : > { %v3322_v26 = vadd.f32 %v3780_v45, %v3321_v8 }
 0x72b   : > { %3340 = vst.msk [vmem:[%s6363_s16 + $0x18] sm:$0xff] %vm3336_vm4, %v3322_v26 }
 0x730   : > { %v3324_v53 = vpop.f32.mrf.mxu2 }
 0x731   : > { %v3325_v15 = vadd.f32 %v3780_v45, %v3324_v53 }
 0x733   : > { %3341 = vst.msk [vmem:[%s6363_s16 + $0x20] sm:$0xff] %vm3336_vm4, %v3325_v15 }
 0x738   : > { %v3327_v14 = vpop.f32.mrf.mxu2 }
 0x739   : > { %v3328_v13 = vadd.f32 %v3780_v45, %v3327_v14 }
 0x73b   : > { %3342 = vst.msk [vmem:[%s6363_s16 + $0x28] sm:$0xff] %vm3336_vm4, %v3328_v13 }
 0x73c PF: > { %s6673_s29 = sld [smem:[#allocation4_spill]]  ;;  %p23_p11 = scmp.ge.s32.totalorder %s3912_s25, 4  }
 0x73d   : > { %s6674_s21 = smov %s3799_s22  ;;  %s6676_s23 = smov %s3912_s25 }
 0x73e   :  { %25 = sbr.rel (!%p23_p11) target bundleno = 5 (0x5), region = 167 }
 0x742   : > { %s6675_s22 = smov %s6673_s29 }

</bundles_post_ra>
